<compile_context>
chip_gen: v7x
topology: tpu7x:2x2x1
jax: 0.10.0
libtpu: 0.0.40
codegen_flags: <defaults>
</compile_context>

<pallas_src>
import jax
import jax.numpy as jnp
from jax import lax
from jax.experimental import pallas as pl
from jax.experimental.pallas import tpu as pltpu

_LANE = 128
_SUBLANE = 8
_TM_TARGET = 2048                      # rows per grid step (multiple of 8)
_VMEM_LIMIT = 32 * 1024 * 1024         # safe on v5e/v6e/v7x; tiles use only ~8 MiB


def _round_up(x, m):
    return ((x + m - 1) // m) * m


def _compiler_params():
    return pltpu.CompilerParams(
        dimension_semantics=("parallel",),   # grid steps independent -> 2 TCs on v7x
        vmem_limit_bytes=_VMEM_LIMIT)


# ----------------------------- Pallas kernels --------------------------------

def _mm_stats_kernel(x_ref, w_ref, y_ref, sum_ref, sq_ref):
    """One M-tile of y = x @ w (bf16 in, f32 acc) + per-channel sum / sum(y^2)."""
    y = jnp.dot(x_ref[...], w_ref[...], preferred_element_type=jnp.float32)
    y_ref[...] = y
    # One-pass BN statistics (E[y], E[y^2]); padded rows are exactly zero so
    # they add nothing — the host divides by the true row count.
    sum_ref[...] = jnp.sum(y, axis=0, keepdims=True)[None]
    sq_ref[...] = jnp.sum(y * y, axis=0, keepdims=True)[None]


def _scale_shift_relu_kernel(y_ref, scale_ref, shift_ref, o_ref):
    """Elementwise BN affine + ReLU (lane-dense, memory bound)."""
    v = jnp.maximum(y_ref[...] * scale_ref[...] + shift_ref[...], 0.0)
    o_ref[...] = v.astype(o_ref.dtype)


def _mm_bias_kernel(x_ref, w_ref, b_ref, o_ref):
    """y = x @ w + b (prediction heads: no norm, no activation)."""
    o_ref[...] = jnp.dot(x_ref[...], w_ref[...],
                         preferred_element_type=jnp.float32) + b_ref[...]


# --------------------------- pallas_call wrappers -----------------------------

def _tiling(m, k, cout):
    kp = _round_up(k, _LANE)
    cp = _round_up(cout, _LANE)
    tm = min(_TM_TARGET, _round_up(m, _SUBLANE))
    mp = _round_up(m, tm)
    return kp, cp, tm, mp


def _matmul_stats(x, w):
    """x: (M, K), w: (K, Cout) ->
       (y_pad (Mp, Cp) f32, col_sum (Cp,), col_sumsq (Cp,), Cp, TM)."""
    m, k = x.shape
    cout = w.shape[1]
    kp, cp, tm, mp = _tiling(m, k, cout)
    g = mp // tm
    xb = jnp.pad(x.astype(jnp.bfloat16), ((0, mp - m), (0, kp - k)))
    wb = jnp.pad(w.astype(jnp.bfloat16), ((0, kp - k), (0, cp - cout)))

    y, sums, sqs = pl.pallas_call(
        _mm_stats_kernel,
        grid=(g,),
        in_specs=[
            pl.BlockSpec((tm, kp), lambda i: (i, 0)),
            pl.BlockSpec((kp, cp), lambda i: (0, 0)),
        ],
        out_specs=(
            pl.BlockSpec((tm, cp), lambda i: (i, 0)),
            pl.BlockSpec((1, 1, cp), lambda i: (i, 0, 0)),
            pl.BlockSpec((1, 1, cp), lambda i: (i, 0, 0)),
        ),
        out_shape=(
            jax.ShapeDtypeStruct((mp, cp), jnp.float32),
            jax.ShapeDtypeStruct((g, 1, cp), jnp.float32),
            jax.ShapeDtypeStruct((g, 1, cp), jnp.float32),
        ),
        compiler_params=_compiler_params(),
    )(xb, wb)
    return y, jnp.sum(sums, axis=(0, 1)), jnp.sum(sqs, axis=(0, 1)), cp, tm


def _scale_shift_relu(y_pad, scale, shift, tm, out_dtype=jnp.float32):
    mp, cp = y_pad.shape
    g = mp // tm
    kwargs = {}
    if jnp.dtype(out_dtype) == jnp.dtype(jnp.float32):
        # Normalize in place; the f32 matmul output is dead afterwards.
        kwargs["input_output_aliases"] = {0: 0}
    return pl.pallas_call(
        _scale_shift_relu_kernel,
        grid=(g,),
        in_specs=[
            pl.BlockSpec((tm, cp), lambda i: (i, 0)),
            pl.BlockSpec((1, cp), lambda i: (0, 0)),
            pl.BlockSpec((1, cp), lambda i: (0, 0)),
        ],
        out_specs=pl.BlockSpec((tm, cp), lambda i: (i, 0)),
        out_shape=jax.ShapeDtypeStruct((mp, cp), out_dtype),
        compiler_params=_compiler_params(),
        **kwargs,
    )(y_pad,
      scale.reshape(1, cp).astype(jnp.float32),
      shift.reshape(1, cp).astype(jnp.float32))


def _matmul_bias(x, w, bias):
    m, k = x.shape
    cout = w.shape[1]
    kp, cp, tm, mp = _tiling(m, k, cout)
    g = mp // tm
    xb = jnp.pad(x.astype(jnp.bfloat16), ((0, mp - m), (0, kp - k)))
    wb = jnp.pad(w.astype(jnp.bfloat16), ((0, kp - k), (0, cp - cout)))
    bb = jnp.pad(bias.astype(jnp.float32), (0, cp - cout)).reshape(1, cp)
    out = pl.pallas_call(
        _mm_bias_kernel,
        grid=(g,),
        in_specs=[
            pl.BlockSpec((tm, kp), lambda i: (i, 0)),
            pl.BlockSpec((kp, cp), lambda i: (0, 0)),
            pl.BlockSpec((1, cp), lambda i: (0, 0)),
        ],
        out_specs=pl.BlockSpec((tm, cp), lambda i: (i, 0)),
        out_shape=jax.ShapeDtypeStruct((mp, cp), jnp.float32),
        compiler_params=_compiler_params(),
    )(xb, wb, bb)
    return out[:m, :cout]


# ------------------------------ layer helpers ---------------------------------

def _im2col_3x3(x_nhwc):
    # Patch matrix built in bf16 (the MXU consumes bf16 anyway) to halve HBM
    # traffic of the 9x-amplified im2col buffer.
    # TODO(synk): build the 3x3 windows inside the matmul kernel via halo tiles
    # (manual DMA) instead of materializing the 9x-amplified patch matrix in HBM.
    n, h, w, c = x_nhwc.shape
    xp = jnp.pad(x_nhwc.astype(jnp.bfloat16), ((0, 0), (1, 1), (1, 1), (0, 0)))
    cols = [xp[:, i:i + h, j:j + w, :] for i in range(3) for j in range(3)]
    return jnp.concatenate(cols, axis=-1).reshape(n * h * w, 9 * c)


def _bn_affine(col_sum, col_sq, count, gamma, beta, eps, cp):
    """Per-column training-mode BN scale/shift from one-pass sums."""
    cout = gamma.shape[0]
    mean = col_sum[:cout] / count
    var = jnp.maximum(col_sq[:cout] / count - mean * mean, 0.0)
    inv = lax.rsqrt(var + eps)
    scale = gamma.astype(jnp.float32) * inv
    shift = beta.astype(jnp.float32) - mean * scale
    scale = jnp.pad(scale, (0, cp - cout), constant_values=1.0)
    shift = jnp.pad(shift, (0, cp - cout))
    return scale, shift


def conv2d_bn_relu(x_nhwc, w_oihw, gamma, beta, eps=1e-5, out_dtype=jnp.bfloat16):
    """3x3 / stride 1 / pad 1 conv (bias-free) + BatchNorm(training) + ReLU."""
    n, h, w, cin = x_nhwc.shape
    cout = w_oihw.shape[0]
    m = n * h * w
    patches = _im2col_3x3(x_nhwc)
    w_mat = jnp.transpose(w_oihw, (2, 3, 1, 0)).reshape(9 * cin, cout)
    y_pad, col_sum, col_sq, cp, tm = _matmul_stats(patches, w_mat)
    scale, shift = _bn_affine(col_sum, col_sq, float(m), gamma, beta, eps, cp)
    out = _scale_shift_relu(y_pad, scale, shift, tm, out_dtype=out_dtype)
    return out[:m, :cout].reshape(n, h, w, cout)


def _depth_mix_weight(w3d):
    """(Cout, Cin, 3, 1, 1) Conv3d weight -> (2*Cin, 2*Cout) per-pixel matmul
    weight for a depth-2 stack with padding 1 along depth."""
    w0 = w3d[:, :, 0, 0, 0].T   # (Cin, Cout)
    w1 = w3d[:, :, 1, 0, 0].T
    w2 = w3d[:, :, 2, 0, 0].T
    top = jnp.concatenate([w1, w0], axis=1)   # input depth 0 -> [out d0 | out d1]
    bot = jnp.concatenate([w2, w1], axis=1)   # input depth 1 -> [out d0 | out d1]
    return jnp.concatenate([top, bot], axis=0)


def depth_mix_bn_relu(feat, w3d, gamma, beta, eps=1e-5, out_dtype=jnp.bfloat16):
    """Conv3d(k=(3,1,1), pad=(1,0,0)) on the depth-2 stack as a per-pixel
    (2C -> 2C) matmul, + BatchNorm3d(training) + ReLU.
    feat: (N*H*W, 2C) with columns [depth-0 channels | depth-1 channels].
    (The Conv3d bias is dropped: a per-channel bias cancels under training BN.)"""
    m, twoc = feat.shape
    c = twoc // 2
    w_big = _depth_mix_weight(w3d)
    y_pad, col_sum, col_sq, cp, tm = _matmul_stats(feat, w_big)
    # BatchNorm3d statistics: per channel, pooled over both depth slices.
    cnt = 2.0 * m
    mean = (col_sum[:c] + col_sum[c:twoc]) / cnt
    var = jnp.maximum((col_sq[:c] + col_sq[c:twoc]) / cnt - mean * mean, 0.0)
    inv = lax.rsqrt(var + eps)
    scale_c = gamma.astype(jnp.float32) * inv
    shift_c = beta.astype(jnp.float32) - mean * scale_c
    scale = jnp.pad(jnp.concatenate([scale_c, scale_c]), (0, cp - twoc),
                    constant_values=1.0)
    shift = jnp.pad(jnp.concatenate([shift_c, shift_c]), (0, cp - twoc))
    out = _scale_shift_relu(y_pad, scale, shift, tm, out_dtype=out_dtype)
    return out[:m, :twoc]


def conv2d_bias(x_nhwc, w_oihw, bias):
    """3x3 / stride 1 / pad 1 conv with bias (prediction heads)."""
    n, h, w, cin = x_nhwc.shape
    cout = w_oihw.shape[0]
    patches = _im2col_3x3(x_nhwc)
    w_mat = jnp.transpose(w_oihw, (2, 3, 1, 0)).reshape(9 * cin, cout)
    out = _matmul_bias(patches, w_mat, bias)
    return out.reshape(n, h, w, cout)


# ------------------------------- Split forward --------------------------------

def split_forward(x_nchw, params, eps=1e-5):
    """Forward pass of `Split` (training-mode batch-norm statistics).
    Returns (x, x_pred, edge, edge_pred) in NCHW, like the PyTorch module."""
    n, c, h, w = x_nchw.shape
    # bf16 intermediates throughout (MXU consumes bf16 anyway); f32 only where
    # the module output requires it.
    xh = jnp.transpose(x_nchw, (0, 2, 3, 1)).astype(jnp.bfloat16)   # NHWC
    m = n * h * w

    # edge_conv: Conv2d(C,C,3,1,1,bias=False) + BN2d + ReLU
    edge_h = conv2d_bn_relu(xh, params["edge_w"], params["edge_g"],
                            params["edge_b"], eps)

    # x_cat = stack([x, edge]) along depth (d0 = x, d1 = edge), kept as per-pixel
    # [d0 | d1] feature rows for the fusion stack.
    feat = jnp.concatenate([xh, edge_h], axis=-1).reshape(m, 2 * c)

    # fusion[0]: Conv3d(k=(3,1,1), pad=(1,0,0)) + BN3d + ReLU
    feat = depth_mix_bn_relu(feat, params["f1_w"], params["f1_g"], params["f1_b"], eps)

    # fusion[1]: Conv3d(k=(1,3,3), pad=(0,1,1)) + BN3d + ReLU
    # == 2D 3x3 conv applied per depth slice, depth folded into the batch.
    # (Conv bias dropped: exactly cancelled by training-mode BN.)
    feat = feat.reshape(n, h, w, 2, c).transpose(0, 3, 1, 2, 4).reshape(2 * n, h, w, c)
    feat = conv2d_bn_relu(feat, params["f2_w"][:, :, 0], params["f2_g"], params["f2_b"], eps)
    feat = feat.reshape(n, 2, h, w, c).transpose(0, 2, 3, 1, 4).reshape(m, 2 * c)

    # fusion[2], fusion[3]  (last layer produces module outputs -> keep f32)
    feat = depth_mix_bn_relu(feat, params["f3_w"], params["f3_g"], params["f3_b"], eps)
    feat = feat.reshape(n, h, w, 2, c).transpose(0, 3, 1, 2, 4).reshape(2 * n, h, w, c)
    feat = conv2d_bn_relu(feat, params["f4_w"][:, :, 0], params["f4_g"], params["f4_b"],
                          eps, out_dtype=jnp.float32)
    feat = feat.reshape(n, 2, h, w, c)

    x_h = feat[:, 0]          # depth 0 -> region branch (f32)
    edge_out_h = feat[:, 1]   # depth 1 -> edge branch (f32)

    # region_pred: CBR + Conv2d(C, 1, 3, 1, 1)
    r = conv2d_bn_relu(x_h, params["rp_w"], params["rp_g"], params["rp_b"], eps)
    x_pred_h = conv2d_bias(r, params["rp_out_w"], params["rp_out_b"])

    # edge_pred: CBR + Conv2d(C, 1, 3, 1, 1)
    e = conv2d_bn_relu(edge_out_h, params["ep_w"], params["ep_g"], params["ep_b"], eps)
    edge_pred_h = conv2d_bias(e, params["ep_out_w"], params["ep_out_b"])

    nchw = lambda t: jnp.transpose(t, (0, 3, 1, 2))
    return nchw(x_h), nchw(x_pred_h), nchw(edge_out_h), nchw(edge_pred_h)


# ----------------------------------- demo -------------------------------------

if __name__ == "__main__":
    # Small deterministic example: batch=2, channel=4, spatial 16x16
    # (the PyTorch module defaults to channel=64; 4 keeps the demo small).
    N, C, H, W = 2, 4, 16, 16
    key = jax.random.PRNGKey(0)
    ks = iter(jax.random.split(key, 32))

    def conv2d_w(cout, cin):
        return 0.1 * jax.random.normal(next(ks), (cout, cin, 3, 3), jnp.float32)

    def bn(cch):
        g = 1.0 + 0.1 * jax.random.normal(next(ks), (cch,), jnp.float32)
        b = 0.1 * jax.random.normal(next(ks), (cch,), jnp.float32)
        return g, b

    params = {}
    params["edge_w"] = conv2d_w(C, C)
    params["edge_g"], params["edge_b"] = bn(C)
    params["f1_w"] = 0.1 * jax.random.normal(next(ks), (C, C, 3, 1, 1), jnp.float32)
    params["f1_g"], params["f1_b"] = bn(C)
    params["f2_w"] = 0.1 * jax.random.normal(next(ks), (C, C, 1, 3, 3), jnp.float32)
    params["f2_g"], params["f2_b"] = bn(C)
    params["f3_w"] = 0.1 * jax.random.normal(next(ks), (C, C, 3, 1, 1), jnp.float32)
    params["f3_g"], params["f3_b"] = bn(C)
    params["f4_w"] = 0.1 * jax.random.normal(next(ks), (C, C, 1, 3, 3), jnp.float32)
    params["f4_g"], params["f4_b"] = bn(C)
    params["rp_w"] = conv2d_w(C, C)
    params["rp_g"], params["rp_b"] = bn(C)
    params["rp_out_w"] = conv2d_w(1, C)
    params["rp_out_b"] = 0.1 * jax.random.normal(next(ks), (1,), jnp.float32)
    params["ep_w"] = conv2d_w(C, C)
    params["ep_g"], params["ep_b"] = bn(C)
    params["ep_out_w"] = conv2d_w(1, C)
    params["ep_out_b"] = 0.1 * jax.random.normal(next(ks), (1,), jnp.float32)

    x = jax.random.normal(next(ks), (N, C, H, W), jnp.float32)

    fwd = jax.jit(split_forward)
    x_out, x_pred, edge_out, edge_pred = jax.block_until_ready(fwd(x, params))

    assert x_out.shape == (N, C, H, W)
    assert edge_out.shape == (N, C, H, W)
    assert x_pred.shape == (N, 1, H, W)
    assert edge_pred.shape == (N, 1, H, W)
    for t in (x_out, x_pred, edge_out, edge_pred):
        assert bool(jnp.all(jnp.isfinite(t)))
    print("KERNEL_OK")
</pallas_src>

<mosaic_0001>
module attributes {stable_mosaic.version = 11 : i64} {
  func.func @_mm_stats_kernel(%arg0: i32, %arg1: memref<512x128xbf16, #tpu.memory_space<vmem>>, %arg2: memref<128x128xbf16, #tpu.memory_space<vmem>>, %arg3: memref<512x128xf32, #tpu.memory_space<vmem>>, %arg4: memref<1x1x128xf32, #tpu.memory_space<vmem>>, %arg5: memref<1x1x128xf32, #tpu.memory_space<vmem>>) attributes {dimension_semantics = [#tpu.dimension_semantics<parallel>], iteration_bounds = array<i64: 1>, scalar_prefetch = 0 : i64, scratch_operands = 0 : i64, tpu.core_type = #tpu.core_type<tc>, window_params = [{transform_indices = @transform_0, window_bounds = array<i64: 512, 128>}, {pipeline_mode = #tpu.pipeline_mode<synchronous>, transform_indices = @transform_1, window_bounds = array<i64: 128, 128>}, {transform_indices = @transform_2, window_bounds = array<i64: 512, 128>}, {transform_indices = @transform_3, window_bounds = array<i64: 1, 1, 128>}, {transform_indices = @transform_4, window_bounds = array<i64: 1, 1, 128>}]} {
    %c0 = arith.constant 0 : index
    %c0_0 = arith.constant 0 : index
    %0 = vector.load %arg1[%c0, %c0_0] : memref<512x128xbf16, #tpu.memory_space<vmem>>, vector<512x128xbf16>
    %c0_1 = arith.constant 0 : index
    %c0_2 = arith.constant 0 : index
    %1 = vector.load %arg2[%c0_1, %c0_2] : memref<128x128xbf16, #tpu.memory_space<vmem>>, vector<128x128xbf16>
    %cst = arith.constant dense<0.000000e+00> : vector<512x128xf32>
    %2 = tpu.matmul %0, %1, %cst {dimension_numbers = #tpu.dot_dimension_numbers<[1], [0], [0], [1], [0, 0, 1, 1], [], []>} : vector<512x128xbf16>, vector<128x128xbf16>, vector<512x128xf32> -> vector<512x128xf32>
    %c0_3 = arith.constant 0 : index
    %c0_4 = arith.constant 0 : index
    %3 = vector.load %arg3[%c0_3, %c0_4] : memref<512x128xf32, #tpu.memory_space<vmem>>, vector<512x128xf32>
    tpu.vector_store %arg3[%c0_3, %c0_4], %2 {strides = array<i32>} : memref<512x128xf32, #tpu.memory_space<vmem>>, vector<512x128xf32>,
    %cst_5 = arith.constant dense<0.000000e+00> : vector<128xf32>
    %4 = vector.multi_reduction <add>, %2, %cst_5 [0] : vector<512x128xf32> to vector<128xf32>
    %5 = vector.shape_cast %4 : vector<128xf32> to vector<1x128xf32>
    %6 = vector.shape_cast %5 : vector<1x128xf32> to vector<1x1x128xf32>
    %c0_6 = arith.constant 0 : index
    %c0_7 = arith.constant 0 : index
    %c0_8 = arith.constant 0 : index
    %7 = vector.load %arg4[%c0_6, %c0_7, %c0_8] : memref<1x1x128xf32, #tpu.memory_space<vmem>>, vector<1x1x128xf32>
    tpu.vector_store %arg4[%c0_6, %c0_7, %c0_8], %6 {strides = array<i32>} : memref<1x1x128xf32, #tpu.memory_space<vmem>>, vector<1x1x128xf32>,
    %8 = arith.mulf %2, %2 : vector<512x128xf32>
    %cst_9 = arith.constant dense<0.000000e+00> : vector<128xf32>
    %9 = vector.multi_reduction <add>, %8, %cst_9 [0] : vector<512x128xf32> to vector<128xf32>
    %10 = vector.shape_cast %9 : vector<128xf32> to vector<1x128xf32>
    %11 = vector.shape_cast %10 : vector<1x128xf32> to vector<1x1x128xf32>
    %c0_10 = arith.constant 0 : index
    %c0_11 = arith.constant 0 : index
    %c0_12 = arith.constant 0 : index
    %12 = vector.load %arg5[%c0_10, %c0_11, %c0_12] : memref<1x1x128xf32, #tpu.memory_space<vmem>>, vector<1x1x128xf32>
    tpu.vector_store %arg5[%c0_10, %c0_11, %c0_12], %11 {strides = array<i32>} : memref<1x1x128xf32, #tpu.memory_space<vmem>>, vector<1x1x128xf32>,
    return
  }
  func.func @transform_0(%arg0: i32) -> (i32, i32) {
    %c0_i32 = arith.constant 0 : i32
    %c0_i32_0 = arith.constant 0 : i32
    return %arg0, %c0_i32 : i32, i32
  }
  func.func @transform_1(%arg0: i32) -> (i32, i32) {
    %c0_i32 = arith.constant 0 : i32
    %c0_i32_0 = arith.constant 0 : i32
    %c0_i32_1 = arith.constant 0 : i32
    return %c0_i32, %c0_i32_0 : i32, i32
  }
  func.func @transform_2(%arg0: i32) -> (i32, i32) {
    %c0_i32 = arith.constant 0 : i32
    %c0_i32_0 = arith.constant 0 : i32
    return %arg0, %c0_i32 : i32, i32
  }
  func.func @transform_3(%arg0: i32) -> (i32, i32, i32) {
    %c0_i32 = arith.constant 0 : i32
    %c0_i32_0 = arith.constant 0 : i32
    %c0_i32_1 = arith.constant 0 : i32
    return %arg0, %c0_i32, %c0_i32_0 : i32, i32, i32
  }
  func.func @transform_4(%arg0: i32) -> (i32, i32, i32) {
    %c0_i32 = arith.constant 0 : i32
    %c0_i32_0 = arith.constant 0 : i32
    %c0_i32_1 = arith.constant 0 : i32
    return %arg0, %c0_i32, %c0_i32_0 : i32, i32, i32
  }
}

module attributes {stable_mosaic.version = 11 : i64} {
  func.func @_scale_shift_relu_kernel(%arg0: i32, %arg1: memref<512x128xf32, #tpu.memory_space<vmem>>, %arg2: memref<1x128xf32, #tpu.memory_space<vmem>>, %arg3: memref<1x128xf32, #tpu.memory_space<vmem>>, %arg4: memref<512x128xbf16, #tpu.memory_space<vmem>>) attributes {dimension_semantics = [#tpu.dimension_semantics<parallel>], iteration_bounds = array<i64: 1>, scalar_prefetch = 0 : i64, scratch_operands = 0 : i64, tpu.core_type = #tpu.core_type<tc>, window_params = [{transform_indices = @transform_0, window_bounds = array<i64: 512, 128>}, {pipeline_mode = #tpu.pipeline_mode<synchronous>, transform_indices = @transform_1, window_bounds = array<i64: 1, 128>}, {pipeline_mode = #tpu.pipeline_mode<synchronous>, transform_indices = @transform_2, window_bounds = array<i64: 1, 128>}, {transform_indices = @transform_3, window_bounds = array<i64: 512, 128>}]} {
    %c0 = arith.constant 0 : index
    %c0_0 = arith.constant 0 : index
    %0 = vector.load %arg1[%c0, %c0_0] : memref<512x128xf32, #tpu.memory_space<vmem>>, vector<512x128xf32>
    %c0_1 = arith.constant 0 : index
    %c0_2 = arith.constant 0 : index
    %1 = vector.load %arg2[%c0_1, %c0_2] : memref<1x128xf32, #tpu.memory_space<vmem>>, vector<1x128xf32>
    %2 = vector.broadcast %1 : vector<1x128xf32> to vector<512x128xf32>
    %3 = arith.mulf %0, %2 : vector<512x128xf32>
    %c0_3 = arith.constant 0 : index
    %c0_4 = arith.constant 0 : index
    %4 = vector.load %arg3[%c0_3, %c0_4] : memref<1x128xf32, #tpu.memory_space<vmem>>, vector<1x128xf32>
    %5 = vector.broadcast %4 : vector<1x128xf32> to vector<512x128xf32>
    %6 = arith.addf %3, %5 : vector<512x128xf32>
    %cst = arith.constant 0.000000e+00 : f32
    %7 = vector.broadcast %cst : f32 to vector<512x128xf32>
    %8 = arith.maximumf %6, %7 : vector<512x128xf32>
    %9 = arith.truncf %8 : vector<512x128xf32> to vector<512x128xbf16>
    %c0_5 = arith.constant 0 : index
    %c0_6 = arith.constant 0 : index
    %10 = vector.load %arg4[%c0_5, %c0_6] : memref<512x128xbf16, #tpu.memory_space<vmem>>, vector<512x128xbf16>
    tpu.vector_store %arg4[%c0_5, %c0_6], %9 {strides = array<i32>} : memref<512x128xbf16, #tpu.memory_space<vmem>>, vector<512x128xbf16>,
    return
  }
  func.func @transform_0(%arg0: i32) -> (i32, i32) {
    %c0_i32 = arith.constant 0 : i32
    %c0_i32_0 = arith.constant 0 : i32
    return %arg0, %c0_i32 : i32, i32
  }
  func.func @transform_1(%arg0: i32) -> (i32, i32) {
    %c0_i32 = arith.constant 0 : i32
    %c0_i32_0 = arith.constant 0 : i32
    %c0_i32_1 = arith.constant 0 : i32
    return %c0_i32, %c0_i32_0 : i32, i32
  }
  func.func @transform_2(%arg0: i32) -> (i32, i32) {
    %c0_i32 = arith.constant 0 : i32
    %c0_i32_0 = arith.constant 0 : i32
    %c0_i32_1 = arith.constant 0 : i32
    return %c0_i32, %c0_i32_0 : i32, i32
  }
  func.func @transform_3(%arg0: i32) -> (i32, i32) {
    %c0_i32 = arith.constant 0 : i32
    %c0_i32_0 = arith.constant 0 : i32
    return %arg0, %c0_i32 : i32, i32
  }
}

module attributes {stable_mosaic.version = 11 : i64} {
  func.func @_mm_stats_kernel(%arg0: i32, %arg1: memref<1024x128xbf16, #tpu.memory_space<vmem>>, %arg2: memref<128x128xbf16, #tpu.memory_space<vmem>>, %arg3: memref<1024x128xf32, #tpu.memory_space<vmem>>, %arg4: memref<1x1x128xf32, #tpu.memory_space<vmem>>, %arg5: memref<1x1x128xf32, #tpu.memory_space<vmem>>) attributes {dimension_semantics = [#tpu.dimension_semantics<parallel>], iteration_bounds = array<i64: 1>, scalar_prefetch = 0 : i64, scratch_operands = 0 : i64, tpu.core_type = #tpu.core_type<tc>, window_params = [{transform_indices = @transform_0, window_bounds = array<i64: 1024, 128>}, {pipeline_mode = #tpu.pipeline_mode<synchronous>, transform_indices = @transform_1, window_bounds = array<i64: 128, 128>}, {transform_indices = @transform_2, window_bounds = array<i64: 1024, 128>}, {transform_indices = @transform_3, window_bounds = array<i64: 1, 1, 128>}, {transform_indices = @transform_4, window_bounds = array<i64: 1, 1, 128>}]} {
    %c0 = arith.constant 0 : index
    %c0_0 = arith.constant 0 : index
    %0 = vector.load %arg1[%c0, %c0_0] : memref<1024x128xbf16, #tpu.memory_space<vmem>>, vector<1024x128xbf16>
    %c0_1 = arith.constant 0 : index
    %c0_2 = arith.constant 0 : index
    %1 = vector.load %arg2[%c0_1, %c0_2] : memref<128x128xbf16, #tpu.memory_space<vmem>>, vector<128x128xbf16>
    %cst = arith.constant dense<0.000000e+00> : vector<1024x128xf32>
    %2 = tpu.matmul %0, %1, %cst {dimension_numbers = #tpu.dot_dimension_numbers<[1], [0], [0], [1], [0, 0, 1, 1], [], []>} : vector<1024x128xbf16>, vector<128x128xbf16>, vector<1024x128xf32> -> vector<1024x128xf32>
    %c0_3 = arith.constant 0 : index
    %c0_4 = arith.constant 0 : index
    %3 = vector.load %arg3[%c0_3, %c0_4] : memref<1024x128xf32, #tpu.memory_space<vmem>>, vector<1024x128xf32>
    tpu.vector_store %arg3[%c0_3, %c0_4], %2 {strides = array<i32>} : memref<1024x128xf32, #tpu.memory_space<vmem>>, vector<1024x128xf32>,
    %cst_5 = arith.constant dense<0.000000e+00> : vector<128xf32>
    %4 = vector.multi_reduction <add>, %2, %cst_5 [0] : vector<1024x128xf32> to vector<128xf32>
    %5 = vector.shape_cast %4 : vector<128xf32> to vector<1x128xf32>
    %6 = vector.shape_cast %5 : vector<1x128xf32> to vector<1x1x128xf32>
    %c0_6 = arith.constant 0 : index
    %c0_7 = arith.constant 0 : index
    %c0_8 = arith.constant 0 : index
    %7 = vector.load %arg4[%c0_6, %c0_7, %c0_8] : memref<1x1x128xf32, #tpu.memory_space<vmem>>, vector<1x1x128xf32>
    tpu.vector_store %arg4[%c0_6, %c0_7, %c0_8], %6 {strides = array<i32>} : memref<1x1x128xf32, #tpu.memory_space<vmem>>, vector<1x1x128xf32>,
    %8 = arith.mulf %2, %2 : vector<1024x128xf32>
    %cst_9 = arith.constant dense<0.000000e+00> : vector<128xf32>
    %9 = vector.multi_reduction <add>, %8, %cst_9 [0] : vector<1024x128xf32> to vector<128xf32>
    %10 = vector.shape_cast %9 : vector<128xf32> to vector<1x128xf32>
    %11 = vector.shape_cast %10 : vector<1x128xf32> to vector<1x1x128xf32>
    %c0_10 = arith.constant 0 : index
    %c0_11 = arith.constant 0 : index
    %c0_12 = arith.constant 0 : index
    %12 = vector.load %arg5[%c0_10, %c0_11, %c0_12] : memref<1x1x128xf32, #tpu.memory_space<vmem>>, vector<1x1x128xf32>
    tpu.vector_store %arg5[%c0_10, %c0_11, %c0_12], %11 {strides = array<i32>} : memref<1x1x128xf32, #tpu.memory_space<vmem>>, vector<1x1x128xf32>,
    return
  }
  func.func @transform_0(%arg0: i32) -> (i32, i32) {
    %c0_i32 = arith.constant 0 : i32
    %c0_i32_0 = arith.constant 0 : i32
    return %arg0, %c0_i32 : i32, i32
  }
  func.func @transform_1(%arg0: i32) -> (i32, i32) {
    %c0_i32 = arith.constant 0 : i32
    %c0_i32_0 = arith.constant 0 : i32
    %c0_i32_1 = arith.constant 0 : i32
    return %c0_i32, %c0_i32_0 : i32, i32
  }
  func.func @transform_2(%arg0: i32) -> (i32, i32) {
    %c0_i32 = arith.constant 0 : i32
    %c0_i32_0 = arith.constant 0 : i32
    return %arg0, %c0_i32 : i32, i32
  }
  func.func @transform_3(%arg0: i32) -> (i32, i32, i32) {
    %c0_i32 = arith.constant 0 : i32
    %c0_i32_0 = arith.constant 0 : i32
    %c0_i32_1 = arith.constant 0 : i32
    return %arg0, %c0_i32, %c0_i32_0 : i32, i32, i32
  }
  func.func @transform_4(%arg0: i32) -> (i32, i32, i32) {
    %c0_i32 = arith.constant 0 : i32
    %c0_i32_0 = arith.constant 0 : i32
    %c0_i32_1 = arith.constant 0 : i32
    return %arg0, %c0_i32, %c0_i32_0 : i32, i32, i32
  }
}

module attributes {stable_mosaic.version = 11 : i64} {
  func.func @_scale_shift_relu_kernel(%arg0: i32, %arg1: memref<1024x128xf32, #tpu.memory_space<vmem>>, %arg2: memref<1x128xf32, #tpu.memory_space<vmem>>, %arg3: memref<1x128xf32, #tpu.memory_space<vmem>>, %arg4: memref<1024x128xbf16, #tpu.memory_space<vmem>>) attributes {dimension_semantics = [#tpu.dimension_semantics<parallel>], iteration_bounds = array<i64: 1>, scalar_prefetch = 0 : i64, scratch_operands = 0 : i64, tpu.core_type = #tpu.core_type<tc>, window_params = [{transform_indices = @transform_0, window_bounds = array<i64: 1024, 128>}, {pipeline_mode = #tpu.pipeline_mode<synchronous>, transform_indices = @transform_1, window_bounds = array<i64: 1, 128>}, {pipeline_mode = #tpu.pipeline_mode<synchronous>, transform_indices = @transform_2, window_bounds = array<i64: 1, 128>}, {transform_indices = @transform_3, window_bounds = array<i64: 1024, 128>}]} {
    %c0 = arith.constant 0 : index
    %c0_0 = arith.constant 0 : index
    %0 = vector.load %arg1[%c0, %c0_0] : memref<1024x128xf32, #tpu.memory_space<vmem>>, vector<1024x128xf32>
    %c0_1 = arith.constant 0 : index
    %c0_2 = arith.constant 0 : index
    %1 = vector.load %arg2[%c0_1, %c0_2] : memref<1x128xf32, #tpu.memory_space<vmem>>, vector<1x128xf32>
    %2 = vector.broadcast %1 : vector<1x128xf32> to vector<1024x128xf32>
    %3 = arith.mulf %0, %2 : vector<1024x128xf32>
    %c0_3 = arith.constant 0 : index
    %c0_4 = arith.constant 0 : index
    %4 = vector.load %arg3[%c0_3, %c0_4] : memref<1x128xf32, #tpu.memory_space<vmem>>, vector<1x128xf32>
    %5 = vector.broadcast %4 : vector<1x128xf32> to vector<1024x128xf32>
    %6 = arith.addf %3, %5 : vector<1024x128xf32>
    %cst = arith.constant 0.000000e+00 : f32
    %7 = vector.broadcast %cst : f32 to vector<1024x128xf32>
    %8 = arith.maximumf %6, %7 : vector<1024x128xf32>
    %9 = arith.truncf %8 : vector<1024x128xf32> to vector<1024x128xbf16>
    %c0_5 = arith.constant 0 : index
    %c0_6 = arith.constant 0 : index
    %10 = vector.load %arg4[%c0_5, %c0_6] : memref<1024x128xbf16, #tpu.memory_space<vmem>>, vector<1024x128xbf16>
    tpu.vector_store %arg4[%c0_5, %c0_6], %9 {strides = array<i32>} : memref<1024x128xbf16, #tpu.memory_space<vmem>>, vector<1024x128xbf16>,
    return
  }
  func.func @transform_0(%arg0: i32) -> (i32, i32) {
    %c0_i32 = arith.constant 0 : i32
    %c0_i32_0 = arith.constant 0 : i32
    return %arg0, %c0_i32 : i32, i32
  }
  func.func @transform_1(%arg0: i32) -> (i32, i32) {
    %c0_i32 = arith.constant 0 : i32
    %c0_i32_0 = arith.constant 0 : i32
    %c0_i32_1 = arith.constant 0 : i32
    return %c0_i32, %c0_i32_0 : i32, i32
  }
  func.func @transform_2(%arg0: i32) -> (i32, i32) {
    %c0_i32 = arith.constant 0 : i32
    %c0_i32_0 = arith.constant 0 : i32
    %c0_i32_1 = arith.constant 0 : i32
    return %c0_i32, %c0_i32_0 : i32, i32
  }
  func.func @transform_3(%arg0: i32) -> (i32, i32) {
    %c0_i32 = arith.constant 0 : i32
    %c0_i32_0 = arith.constant 0 : i32
    return %arg0, %c0_i32 : i32, i32
  }
}

module attributes {stable_mosaic.version = 11 : i64} {
  func.func @_scale_shift_relu_kernel(%arg0: i32, %arg1: memref<1024x128xf32, #tpu.memory_space<vmem>>, %arg2: memref<1x128xf32, #tpu.memory_space<vmem>>, %arg3: memref<1x128xf32, #tpu.memory_space<vmem>>, %arg4: memref<1024x128xf32, #tpu.memory_space<vmem>>) attributes {dimension_semantics = [#tpu.dimension_semantics<parallel>], iteration_bounds = array<i64: 1>, scalar_prefetch = 0 : i64, scratch_operands = 0 : i64, tpu.core_type = #tpu.core_type<tc>, window_params = [{transform_indices = @transform_0, window_bounds = array<i64: 1024, 128>}, {pipeline_mode = #tpu.pipeline_mode<synchronous>, transform_indices = @transform_1, window_bounds = array<i64: 1, 128>}, {pipeline_mode = #tpu.pipeline_mode<synchronous>, transform_indices = @transform_2, window_bounds = array<i64: 1, 128>}, {transform_indices = @transform_3, window_bounds = array<i64: 1024, 128>}]} {
    %c0 = arith.constant 0 : index
    %c0_0 = arith.constant 0 : index
    %0 = vector.load %arg1[%c0, %c0_0] : memref<1024x128xf32, #tpu.memory_space<vmem>>, vector<1024x128xf32>
    %c0_1 = arith.constant 0 : index
    %c0_2 = arith.constant 0 : index
    %1 = vector.load %arg2[%c0_1, %c0_2] : memref<1x128xf32, #tpu.memory_space<vmem>>, vector<1x128xf32>
    %2 = vector.broadcast %1 : vector<1x128xf32> to vector<1024x128xf32>
    %3 = arith.mulf %0, %2 : vector<1024x128xf32>
    %c0_3 = arith.constant 0 : index
    %c0_4 = arith.constant 0 : index
    %4 = vector.load %arg3[%c0_3, %c0_4] : memref<1x128xf32, #tpu.memory_space<vmem>>, vector<1x128xf32>
    %5 = vector.broadcast %4 : vector<1x128xf32> to vector<1024x128xf32>
    %6 = arith.addf %3, %5 : vector<1024x128xf32>
    %cst = arith.constant 0.000000e+00 : f32
    %7 = vector.broadcast %cst : f32 to vector<1024x128xf32>
    %8 = arith.maximumf %6, %7 : vector<1024x128xf32>
    %c0_5 = arith.constant 0 : index
    %c0_6 = arith.constant 0 : index
    %9 = vector.load %arg4[%c0_5, %c0_6] : memref<1024x128xf32, #tpu.memory_space<vmem>>, vector<1024x128xf32>
    tpu.vector_store %arg4[%c0_5, %c0_6], %8 {strides = array<i32>} : memref<1024x128xf32, #tpu.memory_space<vmem>>, vector<1024x128xf32>,
    return
  }
  func.func @transform_0(%arg0: i32) -> (i32, i32) {
    %c0_i32 = arith.constant 0 : i32
    %c0_i32_0 = arith.constant 0 : i32
    return %arg0, %c0_i32 : i32, i32
  }
  func.func @transform_1(%arg0: i32) -> (i32, i32) {
    %c0_i32 = arith.constant 0 : i32
    %c0_i32_0 = arith.constant 0 : i32
    %c0_i32_1 = arith.constant 0 : i32
    return %c0_i32, %c0_i32_0 : i32, i32
  }
  func.func @transform_2(%arg0: i32) -> (i32, i32) {
    %c0_i32 = arith.constant 0 : i32
    %c0_i32_0 = arith.constant 0 : i32
    %c0_i32_1 = arith.constant 0 : i32
    return %c0_i32, %c0_i32_0 : i32, i32
  }
  func.func @transform_3(%arg0: i32) -> (i32, i32) {
    %c0_i32 = arith.constant 0 : i32
    %c0_i32_0 = arith.constant 0 : i32
    return %arg0, %c0_i32 : i32, i32
  }
}

module attributes {stable_mosaic.version = 11 : i64} {
  func.func @_mm_bias_kernel(%arg0: i32, %arg1: memref<512x128xbf16, #tpu.memory_space<vmem>>, %arg2: memref<128x128xbf16, #tpu.memory_space<vmem>>, %arg3: memref<1x128xf32, #tpu.memory_space<vmem>>, %arg4: memref<512x128xf32, #tpu.memory_space<vmem>>) attributes {dimension_semantics = [#tpu.dimension_semantics<parallel>], iteration_bounds = array<i64: 1>, scalar_prefetch = 0 : i64, scratch_operands = 0 : i64, tpu.core_type = #tpu.core_type<tc>, window_params = [{transform_indices = @transform_0, window_bounds = array<i64: 512, 128>}, {pipeline_mode = #tpu.pipeline_mode<synchronous>, transform_indices = @transform_1, window_bounds = array<i64: 128, 128>}, {pipeline_mode = #tpu.pipeline_mode<synchronous>, transform_indices = @transform_2, window_bounds = array<i64: 1, 128>}, {transform_indices = @transform_3, window_bounds = array<i64: 512, 128>}]} {
    %c0 = arith.constant 0 : index
    %c0_0 = arith.constant 0 : index
    %0 = vector.load %arg1[%c0, %c0_0] : memref<512x128xbf16, #tpu.memory_space<vmem>>, vector<512x128xbf16>
    %c0_1 = arith.constant 0 : index
    %c0_2 = arith.constant 0 : index
    %1 = vector.load %arg2[%c0_1, %c0_2] : memref<128x128xbf16, #tpu.memory_space<vmem>>, vector<128x128xbf16>
    %cst = arith.constant dense<0.000000e+00> : vector<512x128xf32>
    %2 = tpu.matmul %0, %1, %cst {dimension_numbers = #tpu.dot_dimension_numbers<[1], [0], [0], [1], [0, 0, 1, 1], [], []>} : vector<512x128xbf16>, vector<128x128xbf16>, vector<512x128xf32> -> vector<512x128xf32>
    %c0_3 = arith.constant 0 : index
    %c0_4 = arith.constant 0 : index
    %3 = vector.load %arg3[%c0_3, %c0_4] : memref<1x128xf32, #tpu.memory_space<vmem>>, vector<1x128xf32>
    %4 = vector.broadcast %3 : vector<1x128xf32> to vector<512x128xf32>
    %5 = arith.addf %2, %4 : vector<512x128xf32>
    %c0_5 = arith.constant 0 : index
    %c0_6 = arith.constant 0 : index
    %6 = vector.load %arg4[%c0_5, %c0_6] : memref<512x128xf32, #tpu.memory_space<vmem>>, vector<512x128xf32>
    tpu.vector_store %arg4[%c0_5, %c0_6], %5 {strides = array<i32>} : memref<512x128xf32, #tpu.memory_space<vmem>>, vector<512x128xf32>,
    return
  }
  func.func @transform_0(%arg0: i32) -> (i32, i32) {
    %c0_i32 = arith.constant 0 : i32
    %c0_i32_0 = arith.constant 0 : i32
    return %arg0, %c0_i32 : i32, i32
  }
  func.func @transform_1(%arg0: i32) -> (i32, i32) {
    %c0_i32 = arith.constant 0 : i32
    %c0_i32_0 = arith.constant 0 : i32
    %c0_i32_1 = arith.constant 0 : i32
    return %c0_i32, %c0_i32_0 : i32, i32
  }
  func.func @transform_2(%arg0: i32) -> (i32, i32) {
    %c0_i32 = arith.constant 0 : i32
    %c0_i32_0 = arith.constant 0 : i32
    %c0_i32_1 = arith.constant 0 : i32
    return %c0_i32, %c0_i32_0 : i32, i32
  }
  func.func @transform_3(%arg0: i32) -> (i32, i32) {
    %c0_i32 = arith.constant 0 : i32
    %c0_i32_0 = arith.constant 0 : i32
    return %arg0, %c0_i32 : i32, i32
  }
}

</mosaic_0001>

<bundles_post_ra>
// kernel: split_forward.17
= control target key start
LH: loop header
LB: loop body
LE: loop exit
PB: predicated region body
PF: predicated region fallthrough
CT: control target
= control target key end

     0   :  { %s1375_s0 = inlined_call_operand.vmem [shape: f32[512,128], index: 0, kind: input, shape index: {}]   ;;  %s1376_s1 = inlined_call_operand.vmem [shape: f32[1,128], index: 1, kind: input, shape index: {}]   ;;  %s1377_s2 = inlined_call_operand.vmem [shape: f32[1,128], index: 2, kind: input, shape index: {}]   ;;  %s1378_s3 = inlined_call_operand.vmem [shape: bf16[512,128], index: 3, kind: output, shape index: {}]  }
   0x1   :  { %v14_v0 = vld [vmem:[%s1375_s0] sm:$0xff]  ;;  %v15_v1 = vld [vmem:[%s1375_s0 + $0x8] sm:$0xff]  ;;  %v16_v6 = vld [vmem:[%s1375_s0 + $0x10] sm:$0xff] }
   0x2   :  { %v958_v2 = vld [vmem:[%s1376_s1] ss:$0 sm:$0xff]  ;;  %v17_v7 = vld [vmem:[%s1375_s0 + $0x18] sm:$0xff]  ;;  %v19_v11 = vld [vmem:[%s1375_s0 + $0x28] sm:$0xff] }
   0x3   :  { %v85_v3 = vmul.f32 %v958_v2, %v14_v0  ;;  %v86_v4 = vmul.f32 %v958_v2, %v15_v1  ;;  %v965_v5 = vld [vmem:[%s1377_s2] ss:$0 sm:$0xff]  ;;  %v87_v8 = vmul.f32 %v958_v2, %v16_v6  ;;  %v88_v9 = vmul.f32 %v958_v2, %v17_v7  ;;  %v20_v12 = vld [vmem:[%s1375_s0 + $0x30] sm:$0xff]  ;;  %v21_v17 = vld [vmem:[%s1375_s0 + $0x38] sm:$0xff] }
   0x4   :  { %v18_v10 = vld [vmem:[%s1375_s0 + $0x20] sm:$0xff]  ;;  %v90_v16 = vmul.f32 %v958_v2, %v19_v11  ;;  %v91_v20 = vmul.f32 %v958_v2, %v20_v12  ;;  %v92_v21 = vmul.f32 %v958_v2, %v21_v17  ;;  %v23_v27 = vld [vmem:[%s1375_s0 + $0x48] sm:$0xff]  ;;  %v24_v32 = vld [vmem:[%s1375_s0 + $0x50] sm:$0xff] }
   0x5   :  { %v156_v13 = vadd.f32 %v965_v5, %v85_v3  ;;  %v157_v14 = vadd.f32 %v965_v5, %v86_v4  ;;  %v89_v15 = vmul.f32 %v958_v2, %v18_v10  ;;  %v158_v18 = vadd.f32 %v965_v5, %v87_v8  ;;  %v22_v22 = vld [vmem:[%s1375_s0 + $0x40] sm:$0xff]  ;;  %v25_v33 = vld [vmem:[%s1375_s0 + $0x58] sm:$0xff]  ;;  %v27_v39 = vld [vmem:[%s1375_s0 + $0x68] sm:$0xff] }
   0x6   :  { %v159_v19 = vadd.f32 %v965_v5, %v88_v9  ;;  %v161_v26 = vadd.f32 %v965_v5, %v90_v16  ;;  %v162_v30 = vadd.f32 %v965_v5, %v91_v20  ;;  %v163_v31 = vadd.f32 %v965_v5, %v92_v21  ;;  %v26_v38 = vld [vmem:[%s1375_s0 + $0x60] sm:$0xff]  ;;  %v28_v44 = vld [vmem:[%s1375_s0 + $0x70] sm:$0xff]  ;;  %v29_v49 = vld [vmem:[%s1375_s0 + $0x78] sm:$0xff] }
   0x7   :  { %v220_v23 = vmax.f32 %v156_v13, 0.0  ;;  %v221_v24 = vmax.f32 %v157_v14, 0.0  ;;  %v160_v25 = vadd.f32 %v965_v5, %v89_v15  ;;  %v222_v28 = vmax.f32 %v158_v18, 0.0  ;;  %v30_v54 = vld [vmem:[%s1375_s0 + $0x80] sm:$0xff]  ;;  %v31_v63 = vld [vmem:[%s1375_s0 + $0x88] sm:$0xff]  ;;  %v32_v6 = vld [vmem:[%s1375_s0 + $0x90] sm:$0xff] }
   0x8   :  { %v223_v29 = vmax.f32 %v159_v19, 0.0  ;;  %v225_v36 = vmax.f32 %v161_v26, 0.0  ;;  %v93_v37 = vmul.f32 %v958_v2, %v22_v22  ;;  %v226_v41 = vmax.f32 %v162_v30, 0.0  ;;  %v33_v7 = vld [vmem:[%s1375_s0 + $0x98] sm:$0xff]  ;;  %v34_v12 = vld [vmem:[%s1375_s0 + $0xa0] sm:$0xff]  ;;  %v35_v13 = vld [vmem:[%s1375_s0 + $0xa8] sm:$0xff] }
   0x9   :  { %v741_v34 = vpack.c.bf16 %v221_v24, %v220_v23  ;;  %v224_v35 = vmax.f32 %v160_v25, 0.0  ;;  %v227_v42 = vmax.f32 %v163_v31, 0.0  ;;  %v94_v43 = vmul.f32 %v958_v2, %v23_v27  ;;  %v36_v18 = vld [vmem:[%s1375_s0 + $0xb0] sm:$0xff]  ;;  %v37_v23 = vld [vmem:[%s1375_s0 + $0xb8] sm:$0xff] }
   0xa   :  { %v746_v40 = vpack.c.bf16 %v223_v29, %v222_v28  ;;  %v164_v46 = vadd.f32 %v965_v5, %v93_v37  ;;  %v95_v47 = vmul.f32 %v958_v2, %v24_v32  ;;  %v96_v48 = vmul.f32 %v958_v2, %v25_v33  ;;  %v38_v28 = vld [vmem:[%s1375_s0 + $0xc0] sm:$0xff]  ;;  %v39_v37 = vld [vmem:[%s1375_s0 + $0xc8] sm:$0xff] }
   0xb   :  { %742 = vst [vmem:[%s1378_s3] sm:$0xff] %v741_v34   ;;  %v751_v45 = vpack.c.bf16 %v225_v36, %v224_v35  ;;  %v756_v50 = vpack.c.bf16 %v227_v42, %v226_v41  ;;  %v165_v51 = vadd.f32 %v965_v5, %v94_v43  ;;  %v97_v52 = vmul.f32 %v958_v2, %v26_v38  ;;  %v40_v42 = vld [vmem:[%s1375_s0 + $0xd0] sm:$0xff]  ;;  %v41_v43 = vld [vmem:[%s1375_s0 + $0xd8] sm:$0xff] }
   0xc   :  { %898 = vst [vmem:[%s1378_s3 + $0x8] sm:$0xff] %v746_v40   ;;  %v98_v53 = vmul.f32 %v958_v2, %v27_v39  ;;  %v228_v55 = vmax.f32 %v164_v46, 0.0  ;;  %v166_v56 = vadd.f32 %v965_v5, %v95_v47  ;;  %v167_v57 = vadd.f32 %v965_v5, %v96_v48  ;;  %v42_v48 = vld [vmem:[%s1375_s0 + $0xe0] sm:$0xff] }
   0xd   :  { %899 = vst [vmem:[%s1378_s3 + $0x10] sm:$0xff] %v751_v45   ;;  %v99_v58 = vmul.f32 %v958_v2, %v28_v44  ;;  %900 = vst [vmem:[%s1378_s3 + $0x18] sm:$0xff] %v756_v50   ;;  %v229_v59 = vmax.f32 %v165_v51, 0.0  ;;  %v168_v60 = vadd.f32 %v965_v5, %v97_v52  ;;  %v100_v62 = vmul.f32 %v958_v2, %v29_v49  ;;  %v43_v49 = vld [vmem:[%s1375_s0 + $0xe8] sm:$0xff] }
   0xe   :  { %v169_v61 = vadd.f32 %v965_v5, %v98_v53  ;;  %v230_v0 = vmax.f32 %v166_v56, 0.0  ;;  %v231_v1 = vmax.f32 %v167_v57, 0.0  ;;  %v101_v4 = vmul.f32 %v958_v2, %v30_v54  ;;  %v44_v54 = vld [vmem:[%s1375_s0 + $0xf0] sm:$0xff] }
   0xf   :  { %v170_v3 = vadd.f32 %v965_v5, %v99_v58  ;;  %v761_v8 = vpack.c.bf16 %v229_v59, %v228_v55  ;;  %v232_v9 = vmax.f32 %v168_v60, 0.0  ;;  %v171_v11 = vadd.f32 %v965_v5, %v100_v62  ;;  %v45_v59 = vld [vmem:[%s1375_s0 + $0xf8] sm:$0xff] }
  0x10   :  { %v233_v10 = vmax.f32 %v169_v61, 0.0  ;;  %v766_v14 = vpack.c.bf16 %v231_v1, %v230_v0  ;;  %v102_v16 = vmul.f32 %v958_v2, %v31_v63  ;;  %v172_v17 = vadd.f32 %v965_v5, %v101_v4  ;;  %v46_v0 = vld [vmem:[%s1375_s0 + $0x100] sm:$0xff] }
  0x11   :  { %v234_v15 = vmax.f32 %v170_v3, 0.0  ;;  %901 = vst [vmem:[%s1378_s3 + $0x20] sm:$0xff] %v761_v8   ;;  %v235_v20 = vmax.f32 %v171_v11, 0.0  ;;  %v103_v21 = vmul.f32 %v958_v2, %v32_v6  ;;  %v104_v22 = vmul.f32 %v958_v2, %v33_v7  ;;  %v47_v11 = vld [vmem:[%s1375_s0 + $0x108] sm:$0xff] }
  0x12   :  { %v771_v19 = vpack.c.bf16 %v233_v10, %v232_v9  ;;  %902 = vst [vmem:[%s1378_s3 + $0x28] sm:$0xff] %v766_v14   ;;  %v173_v24 = vadd.f32 %v965_v5, %v102_v16  ;;  %v236_v25 = vmax.f32 %v172_v17, 0.0  ;;  %v105_v26 = vmul.f32 %v958_v2, %v34_v12  ;;  %v48_v16 = vld [vmem:[%s1375_s0 + $0x110] sm:$0xff]  ;;  %v49_v17 = vld [vmem:[%s1375_s0 + $0x118] sm:$0xff] }
  0x13   :  { %v106_v27 = vmul.f32 %v958_v2, %v35_v13  ;;  %v776_v29 = vpack.c.bf16 %v235_v20, %v234_v15  ;;  %v174_v30 = vadd.f32 %v965_v5, %v103_v21  ;;  %v175_v31 = vadd.f32 %v965_v5, %v104_v22  ;;  %v50_v22 = vld [vmem:[%s1375_s0 + $0x120] sm:$0xff] }
  0x14   :  { %903 = vst [vmem:[%s1378_s3 + $0x30] sm:$0xff] %v771_v19   ;;  %v107_v32 = vmul.f32 %v958_v2, %v36_v18  ;;  %v237_v33 = vmax.f32 %v173_v24, 0.0  ;;  %v176_v34 = vadd.f32 %v965_v5, %v105_v26  ;;  %v108_v36 = vmul.f32 %v958_v2, %v37_v23  ;;  %v51_v23 = vld [vmem:[%s1375_s0 + $0x128] sm:$0xff] }
  0x15   :  { %v177_v35 = vadd.f32 %v965_v5, %v106_v27  ;;  %904 = vst [vmem:[%s1378_s3 + $0x38] sm:$0xff] %v776_v29   ;;  %v238_v38 = vmax.f32 %v174_v30, 0.0  ;;  %v239_v39 = vmax.f32 %v175_v31, 0.0  ;;  %v109_v41 = vmul.f32 %v958_v2, %v38_v28  ;;  %v52_v28 = vld [vmem:[%s1375_s0 + $0x130] sm:$0xff] }
  0x16   :  { %v178_v40 = vadd.f32 %v965_v5, %v107_v32  ;;  %v781_v44 = vpack.c.bf16 %v237_v33, %v236_v25  ;;  %v240_v45 = vmax.f32 %v176_v34, 0.0  ;;  %v179_v47 = vadd.f32 %v965_v5, %v108_v36  ;;  %v53_v33 = vld [vmem:[%s1375_s0 + $0x138] sm:$0xff] }
  0x17   :  { %v241_v46 = vmax.f32 %v177_v35, 0.0  ;;  %v786_v50 = vpack.c.bf16 %v239_v39, %v238_v38  ;;  %v110_v52 = vmul.f32 %v958_v2, %v39_v37  ;;  %v180_v53 = vadd.f32 %v965_v5, %v109_v41  ;;  %v54_v38 = vld [vmem:[%s1375_s0 + $0x140] sm:$0xff] }
  0x18   :  { %v242_v51 = vmax.f32 %v178_v40, 0.0  ;;  %905 = vst [vmem:[%s1378_s3 + $0x40] sm:$0xff] %v781_v44   ;;  %v243_v56 = vmax.f32 %v179_v47, 0.0  ;;  %v111_v57 = vmul.f32 %v958_v2, %v40_v42  ;;  %v112_v58 = vmul.f32 %v958_v2, %v41_v43  ;;  %v55_v47 = vld [vmem:[%s1375_s0 + $0x148] sm:$0xff] }
  0x19   :  { %v791_v55 = vpack.c.bf16 %v241_v46, %v240_v45  ;;  %906 = vst [vmem:[%s1378_s3 + $0x48] sm:$0xff] %v786_v50   ;;  %v181_v60 = vadd.f32 %v965_v5, %v110_v52  ;;  %v244_v61 = vmax.f32 %v180_v53, 0.0  ;;  %v113_v62 = vmul.f32 %v958_v2, %v42_v48  ;;  %v56_v52 = vld [vmem:[%s1375_s0 + $0x150] sm:$0xff]  ;;  %v57_v53 = vld [vmem:[%s1375_s0 + $0x158] sm:$0xff] }
  0x1a   :  { %v114_v63 = vmul.f32 %v958_v2, %v43_v49  ;;  %v796_v1 = vpack.c.bf16 %v243_v56, %v242_v51  ;;  %v182_v3 = vadd.f32 %v965_v5, %v111_v57  ;;  %v183_v4 = vadd.f32 %v965_v5, %v112_v58  ;;  %v58_v58 = vld [vmem:[%s1375_s0 + $0x160] sm:$0xff] }
  0x1b   :  { %907 = vst [vmem:[%s1378_s3 + $0x50] sm:$0xff] %v791_v55   ;;  %v115_v6 = vmul.f32 %v958_v2, %v44_v54  ;;  %v245_v7 = vmax.f32 %v181_v60, 0.0  ;;  %v184_v8 = vadd.f32 %v965_v5, %v113_v62  ;;  %v116_v10 = vmul.f32 %v958_v2, %v45_v59  ;;  %v59_v59 = vld [vmem:[%s1375_s0 + $0x168] sm:$0xff] }
  0x1c   :  { %v185_v9 = vadd.f32 %v965_v5, %v114_v63  ;;  %908 = vst [vmem:[%s1378_s3 + $0x58] sm:$0xff] %v796_v1   ;;  %v246_v12 = vmax.f32 %v182_v3, 0.0  ;;  %v247_v13 = vmax.f32 %v183_v4, 0.0  ;;  %v117_v15 = vmul.f32 %v958_v2, %v46_v0  ;;  %v60_v0 = vld [vmem:[%s1375_s0 + $0x170] sm:$0xff] }
  0x1d   :  { %v186_v14 = vadd.f32 %v965_v5, %v115_v6  ;;  %v801_v18 = vpack.c.bf16 %v245_v7, %v244_v61  ;;  %v248_v19 = vmax.f32 %v184_v8, 0.0  ;;  %v187_v21 = vadd.f32 %v965_v5, %v116_v10  ;;  %v61_v7 = vld [vmem:[%s1375_s0 + $0x178] sm:$0xff] }
  0x1e   :  { %v249_v20 = vmax.f32 %v185_v9, 0.0  ;;  %v806_v24 = vpack.c.bf16 %v247_v13, %v246_v12  ;;  %v118_v26 = vmul.f32 %v958_v2, %v47_v11  ;;  %v188_v27 = vadd.f32 %v965_v5, %v117_v15  ;;  %v62_v12 = vld [vmem:[%s1375_s0 + $0x180] sm:$0xff] }
  0x1f   :  { %v250_v25 = vmax.f32 %v186_v14, 0.0  ;;  %909 = vst [vmem:[%s1378_s3 + $0x60] sm:$0xff] %v801_v18   ;;  %v251_v30 = vmax.f32 %v187_v21, 0.0  ;;  %v119_v31 = vmul.f32 %v958_v2, %v48_v16  ;;  %v120_v32 = vmul.f32 %v958_v2, %v49_v17  ;;  %v63_v21 = vld [vmem:[%s1375_s0 + $0x188] sm:$0xff] }
  0x20   :  { %v811_v29 = vpack.c.bf16 %v249_v20, %v248_v19  ;;  %910 = vst [vmem:[%s1378_s3 + $0x68] sm:$0xff] %v806_v24   ;;  %v189_v34 = vadd.f32 %v965_v5, %v118_v26  ;;  %v252_v35 = vmax.f32 %v188_v27, 0.0  ;;  %v121_v36 = vmul.f32 %v958_v2, %v50_v22  ;;  %v64_v26 = vld [vmem:[%s1375_s0 + $0x190] sm:$0xff]  ;;  %v65_v27 = vld [vmem:[%s1375_s0 + $0x198] sm:$0xff] }
  0x21   :  { %v122_v37 = vmul.f32 %v958_v2, %v51_v23  ;;  %v816_v39 = vpack.c.bf16 %v251_v30, %v250_v25  ;;  %v190_v40 = vadd.f32 %v965_v5, %v119_v31  ;;  %v191_v41 = vadd.f32 %v965_v5, %v120_v32  ;;  %v66_v32 = vld [vmem:[%s1375_s0 + $0x1a0] sm:$0xff] }
  0x22   :  { %911 = vst [vmem:[%s1378_s3 + $0x70] sm:$0xff] %v811_v29   ;;  %v123_v42 = vmul.f32 %v958_v2, %v52_v28  ;;  %v253_v43 = vmax.f32 %v189_v34, 0.0  ;;  %v192_v44 = vadd.f32 %v965_v5, %v121_v36  ;;  %v124_v46 = vmul.f32 %v958_v2, %v53_v33  ;;  %v67_v33 = vld [vmem:[%s1375_s0 + $0x1a8] sm:$0xff] }
  0x23   :  { %v193_v45 = vadd.f32 %v965_v5, %v122_v37  ;;  %912 = vst [vmem:[%s1378_s3 + $0x78] sm:$0xff] %v816_v39   ;;  %v254_v48 = vmax.f32 %v190_v40, 0.0  ;;  %v255_v49 = vmax.f32 %v191_v41, 0.0  ;;  %v125_v51 = vmul.f32 %v958_v2, %v54_v38  ;;  %v68_v38 = vld [vmem:[%s1375_s0 + $0x1b0] sm:$0xff] }
  0x24   :  { %v194_v50 = vadd.f32 %v965_v5, %v123_v42  ;;  %v821_v54 = vpack.c.bf16 %v253_v43, %v252_v35  ;;  %v256_v55 = vmax.f32 %v192_v44, 0.0  ;;  %v195_v57 = vadd.f32 %v965_v5, %v124_v46  ;;  %v69_v43 = vld [vmem:[%s1375_s0 + $0x1b8] sm:$0xff] }
  0x25   :  { %v257_v56 = vmax.f32 %v193_v45, 0.0  ;;  %v826_v60 = vpack.c.bf16 %v255_v49, %v254_v48  ;;  %v126_v62 = vmul.f32 %v958_v2, %v55_v47  ;;  %v196_v63 = vadd.f32 %v965_v5, %v125_v51  ;;  %v70_v48 = vld [vmem:[%s1375_s0 + $0x1c0] sm:$0xff] }
  0x26   :  { %v258_v61 = vmax.f32 %v194_v50, 0.0  ;;  %913 = vst [vmem:[%s1378_s3 + $0x80] sm:$0xff] %v821_v54   ;;  %v259_v3 = vmax.f32 %v195_v57, 0.0  ;;  %v127_v4 = vmul.f32 %v958_v2, %v56_v52  ;;  %v128_v6 = vmul.f32 %v958_v2, %v57_v53  ;;  %v71_v57 = vld [vmem:[%s1375_s0 + $0x1c8] sm:$0xff] }
  0x27   :  { %v831_v1 = vpack.c.bf16 %v257_v56, %v256_v55  ;;  %914 = vst [vmem:[%s1378_s3 + $0x88] sm:$0xff] %v826_v60   ;;  %v197_v8 = vadd.f32 %v965_v5, %v126_v62  ;;  %v260_v9 = vmax.f32 %v196_v63, 0.0  ;;  %v129_v10 = vmul.f32 %v958_v2, %v58_v58  ;;  %v72_v62 = vld [vmem:[%s1375_s0 + $0x1d0] sm:$0xff]  ;;  %v73_v63 = vld [vmem:[%s1375_s0 + $0x1d8] sm:$0xff] }
  0x28   :  { %v130_v11 = vmul.f32 %v958_v2, %v59_v59  ;;  %v836_v13 = vpack.c.bf16 %v259_v3, %v258_v61  ;;  %v198_v14 = vadd.f32 %v965_v5, %v127_v4  ;;  %v199_v15 = vadd.f32 %v965_v5, %v128_v6  ;;  %v74_v6 = vld [vmem:[%s1375_s0 + $0x1e0] sm:$0xff] }
  0x29   :  { %915 = vst [vmem:[%s1378_s3 + $0x90] sm:$0xff] %v831_v1   ;;  %v131_v16 = vmul.f32 %v958_v2, %v60_v0  ;;  %v261_v17 = vmax.f32 %v197_v8, 0.0  ;;  %v200_v18 = vadd.f32 %v965_v5, %v129_v10  ;;  %v132_v20 = vmul.f32 %v958_v2, %v61_v7  ;;  %v75_v7 = vld [vmem:[%s1375_s0 + $0x1e8] sm:$0xff] }
  0x2a   :  { %v201_v19 = vadd.f32 %v965_v5, %v130_v11  ;;  %916 = vst [vmem:[%s1378_s3 + $0x98] sm:$0xff] %v836_v13   ;;  %v262_v22 = vmax.f32 %v198_v14, 0.0  ;;  %v263_v23 = vmax.f32 %v199_v15, 0.0  ;;  %v133_v25 = vmul.f32 %v958_v2, %v62_v12  ;;  %v76_v12 = vld [vmem:[%s1375_s0 + $0x1f0] sm:$0xff] }
  0x2b   :  { %v202_v24 = vadd.f32 %v965_v5, %v131_v16  ;;  %v841_v28 = vpack.c.bf16 %v261_v17, %v260_v9  ;;  %v264_v29 = vmax.f32 %v200_v18, 0.0  ;;  %v203_v31 = vadd.f32 %v965_v5, %v132_v20  ;;  %v77_v17 = vld [vmem:[%s1375_s0 + $0x1f8] sm:$0xff] }
  0x2c   :  { %v265_v30 = vmax.f32 %v201_v19, 0.0  ;;  %v846_v34 = vpack.c.bf16 %v263_v23, %v262_v22  ;;  %v134_v36 = vmul.f32 %v958_v2, %v63_v21  ;;  %v204_v37 = vadd.f32 %v965_v5, %v133_v25 }
  0x2d   :  { %v266_v35 = vmax.f32 %v202_v24, 0.0  ;;  %917 = vst [vmem:[%s1378_s3 + $0xa0] sm:$0xff] %v841_v28   ;;  %v267_v40 = vmax.f32 %v203_v31, 0.0  ;;  %v135_v41 = vmul.f32 %v958_v2, %v64_v26  ;;  %v136_v42 = vmul.f32 %v958_v2, %v65_v27 }
  0x2e   :  { %v851_v39 = vpack.c.bf16 %v265_v30, %v264_v29  ;;  %918 = vst [vmem:[%s1378_s3 + $0xa8] sm:$0xff] %v846_v34   ;;  %v205_v44 = vadd.f32 %v965_v5, %v134_v36  ;;  %v268_v45 = vmax.f32 %v204_v37, 0.0  ;;  %v137_v46 = vmul.f32 %v958_v2, %v66_v32 }
  0x2f   :  { %v138_v47 = vmul.f32 %v958_v2, %v67_v33  ;;  %v856_v49 = vpack.c.bf16 %v267_v40, %v266_v35  ;;  %v206_v50 = vadd.f32 %v965_v5, %v135_v41  ;;  %v207_v51 = vadd.f32 %v965_v5, %v136_v42 }
  0x30   :  { %919 = vst [vmem:[%s1378_s3 + $0xb0] sm:$0xff] %v851_v39   ;;  %v139_v52 = vmul.f32 %v958_v2, %v68_v38  ;;  %v269_v53 = vmax.f32 %v205_v44, 0.0  ;;  %v208_v54 = vadd.f32 %v965_v5, %v137_v46  ;;  %v140_v56 = vmul.f32 %v958_v2, %v69_v43 }
  0x31   :  { %v209_v55 = vadd.f32 %v965_v5, %v138_v47  ;;  %920 = vst [vmem:[%s1378_s3 + $0xb8] sm:$0xff] %v856_v49   ;;  %v270_v58 = vmax.f32 %v206_v50, 0.0  ;;  %v271_v59 = vmax.f32 %v207_v51, 0.0  ;;  %v141_v61 = vmul.f32 %v958_v2, %v70_v48 }
  0x32   :  { %v210_v60 = vadd.f32 %v965_v5, %v139_v52  ;;  %v861_v0 = vpack.c.bf16 %v269_v53, %v268_v45  ;;  %v272_v1 = vmax.f32 %v208_v54, 0.0  ;;  %v211_v4 = vadd.f32 %v965_v5, %v140_v56 }
  0x33   :  { %v273_v3 = vmax.f32 %v209_v55, 0.0  ;;  %v866_v8 = vpack.c.bf16 %v271_v59, %v270_v58  ;;  %v142_v10 = vmul.f32 %v958_v2, %v71_v57  ;;  %v212_v11 = vadd.f32 %v965_v5, %v141_v61 }
  0x34   :  { %v274_v9 = vmax.f32 %v210_v60, 0.0  ;;  %921 = vst [vmem:[%s1378_s3 + $0xc0] sm:$0xff] %v861_v0   ;;  %v275_v14 = vmax.f32 %v211_v4, 0.0  ;;  %v143_v15 = vmul.f32 %v958_v2, %v72_v62  ;;  %v144_v16 = vmul.f32 %v958_v2, %v73_v63 }
  0x35   :  { %v871_v13 = vpack.c.bf16 %v273_v3, %v272_v1  ;;  %922 = vst [vmem:[%s1378_s3 + $0xc8] sm:$0xff] %v866_v8   ;;  %v213_v18 = vadd.f32 %v965_v5, %v142_v10  ;;  %v276_v19 = vmax.f32 %v212_v11, 0.0  ;;  %v145_v20 = vmul.f32 %v958_v2, %v74_v6 }
  0x36   :  { %v146_v21 = vmul.f32 %v958_v2, %v75_v7  ;;  %v876_v22 = vpack.c.bf16 %v275_v14, %v274_v9  ;;  %v214_v23 = vadd.f32 %v965_v5, %v143_v15  ;;  %v215_v24 = vadd.f32 %v965_v5, %v144_v16 }
  0x37   :  { %923 = vst [vmem:[%s1378_s3 + $0xd0] sm:$0xff] %v871_v13   ;;  %v147_v25 = vmul.f32 %v958_v2, %v76_v12  ;;  %v277_v26 = vmax.f32 %v213_v18, 0.0  ;;  %v216_v27 = vadd.f32 %v965_v5, %v145_v20  ;;  %v148_v29 = vmul.f32 %v958_v2, %v77_v17 }
  0x38   :  { %v217_v28 = vadd.f32 %v965_v5, %v146_v21  ;;  %924 = vst [vmem:[%s1378_s3 + $0xd8] sm:$0xff] %v876_v22   ;;  %v278_v30 = vmax.f32 %v214_v23, 0.0  ;;  %v279_v31 = vmax.f32 %v215_v24, 0.0 }
  0x39   :  { %v218_v32 = vadd.f32 %v965_v5, %v147_v25  ;;  %v881_v33 = vpack.c.bf16 %v277_v26, %v276_v19  ;;  %v280_v34 = vmax.f32 %v216_v27, 0.0  ;;  %v219_v36 = vadd.f32 %v965_v5, %v148_v29 }
  0x3a   :  { %v281_v35 = vmax.f32 %v217_v28, 0.0  ;;  %v886_v37 = vpack.c.bf16 %v279_v31, %v278_v30 }
  0x3b   :  { %v282_v38 = vmax.f32 %v218_v32, 0.0  ;;  %925 = vst [vmem:[%s1378_s3 + $0xe0] sm:$0xff] %v881_v33   ;;  %v283_v39 = vmax.f32 %v219_v36, 0.0 }
  0x3c   :  { %v891_v2 = vpack.c.bf16 %v281_v35, %v280_v34  ;;  %926 = vst [vmem:[%s1378_s3 + $0xe8] sm:$0xff] %v886_v37  }
  0x3d   :  { %v896_v40 = vpack.c.bf16 %v283_v39, %v282_v38 }
  0x3e   :  { %927 = vst [vmem:[%s1378_s3 + $0xf0] sm:$0xff] %v891_v2  }
  0x3f   :  { %928 = vst [vmem:[%s1378_s3 + $0xf8] sm:$0xff] %v896_v40  }

// kernel: split_forward.16
= control target key start
LH: loop header
LB: loop body
LE: loop exit
PB: predicated region body
PF: predicated region fallthrough
CT: control target
= control target key end

     0   :  { %s1655_s1 = inlined_call_operand.vmem [shape: bf16[128,128], index: 1, kind: input, shape index: {}]   ;;  %s1656_s0 = inlined_call_operand.vmem [shape: bf16[512,128], index: 0, kind: input, shape index: {}]   ;;  %s1657_s2 = inlined_call_operand.vmem [shape: f32[512,128], index: 2, kind: output, shape index: {0}]   ;;  %s1658_s3 = inlined_call_operand.vmem [shape: f32[1,1,128], index: 3, kind: output, shape index: {1}]   ;;  %s1659_s4 = inlined_call_operand.vmem [shape: f32[1,1,128], index: 4, kind: output, shape index: {2}]  }
   0x1   :  { %v1080_v0 = vld [vmem:[%s1655_s1] sm:$0xff]   ;;  %v1081_v1 = vld [vmem:[%s1655_s1 + $0x8] sm:$0xff]   ;;  %v1082_v2 = vld [vmem:[%s1655_s1 + $0x10] sm:$0xff]  }
   0x2   :  { %984 = vmatprep.subr.bf16.mxu0 %v1080_v0  ;;  %1064 = vmatprep.subr.bf16.mxu1 %v1080_v0  ;;  %v1083_v3 = vld [vmem:[%s1655_s1 + $0x18] sm:$0xff]   ;;  %v1088_v4 = vld [vmem:[%s1656_s0] sm:$0xff]   ;;  %v1085_v6 = vld [vmem:[%s1655_s1 + $0x28] sm:$0xff]  }
   0x3   :  { %985 = vmatpush3.bf16.msra.mxu0 %v1080_v0  ;;  %1072 = vmatpush3.bf16.msra.mxu1 %v1080_v0  ;;  %v1084_v5 = vld [vmem:[%s1655_s1 + $0x20] sm:$0xff]   ;;  %v1086_v7 = vld [vmem:[%s1655_s1 + $0x30] sm:$0xff]   ;;  %v1087_v8 = vld [vmem:[%s1655_s1 + $0x38] sm:$0xff]  }
   0x4   :  { %986 = vmatprep.subr.bf16.mxu0 %v1081_v1  ;;  %1065 = vmatprep.subr.bf16.mxu1 %v1081_v1  ;;  %v1104_v9 = vld [vmem:[%s1656_s0 + $0x80] sm:$0xff]   ;;  %v1089_v10 = vld [vmem:[%s1656_s0 + $0x8] sm:$0xff]   ;;  %v1090_v11 = vld [vmem:[%s1656_s0 + $0x10] sm:$0xff]  }
   0x5   :  { %1000 = vmatprep.mubr.bf16.mxu0 %v1088_v4  ;;  %1032 = vmatprep.mubr.bf16.mxu1 %v1104_v9  ;;  %v1105_v12 = vld [vmem:[%s1656_s0 + $0x88] sm:$0xff]   ;;  %v1106_v13 = vld [vmem:[%s1656_s0 + $0x90] sm:$0xff]   ;;  %v1091_v14 = vld [vmem:[%s1656_s0 + $0x18] sm:$0xff]  }
   0x6   :  { %v1092_v15 = vld [vmem:[%s1656_s0 + $0x20] sm:$0xff]   ;;  %v1107_v16 = vld [vmem:[%s1656_s0 + $0x98] sm:$0xff]   ;;  %v1093_v18 = vld [vmem:[%s1656_s0 + $0x28] sm:$0xff]  }
   0x7   :  { %987 = vmatpush3.bf16.msra.mxu0 %v1081_v1  ;;  %1073 = vmatpush3.bf16.msra.mxu1 %v1081_v1  ;;  %v1108_v17 = vld [vmem:[%s1656_s0 + $0xa0] sm:$0xff]   ;;  %v1109_v19 = vld [vmem:[%s1656_s0 + $0xa8] sm:$0xff]   ;;  %v1094_v20 = vld [vmem:[%s1656_s0 + $0x30] sm:$0xff]  }
   0x8   :  { %988 = vmatprep.subr.bf16.mxu0 %v1082_v2  ;;  %1066 = vmatprep.subr.bf16.mxu1 %v1082_v2  ;;  %v1110_v21 = vld [vmem:[%s1656_s0 + $0xb0] sm:$0xff]   ;;  %v1095_v22 = vld [vmem:[%s1656_s0 + $0x38] sm:$0xff]   ;;  %v1096_v24 = vld [vmem:[%s1656_s0 + $0x40] sm:$0xff]  }
   0x9   :  { %v1111_v23 = vld [vmem:[%s1656_s0 + $0xb8] sm:$0xff]   ;;  %v1112_v25 = vld [vmem:[%s1656_s0 + $0xc0] sm:$0xff]   ;;  %v1097_v26 = vld [vmem:[%s1656_s0 + $0x48] sm:$0xff]  }
   0xa   :  { %v1113_v27 = vld [vmem:[%s1656_s0 + $0xc8] sm:$0xff]   ;;  %v1098_v28 = vld [vmem:[%s1656_s0 + $0x50] sm:$0xff]   ;;  %v1099_v30 = vld [vmem:[%s1656_s0 + $0x58] sm:$0xff]  }
   0xb   :  { %989 = vmatpush3.bf16.msra.mxu0 %v1082_v2  ;;  %1074 = vmatpush3.bf16.msra.mxu1 %v1082_v2  ;;  %v1114_v29 = vld [vmem:[%s1656_s0 + $0xd0] sm:$0xff]   ;;  %v1115_v31 = vld [vmem:[%s1656_s0 + $0xd8] sm:$0xff]   ;;  %v1100_v32 = vld [vmem:[%s1656_s0 + $0x60] sm:$0xff]  }
   0xc   :  { %990 = vmatprep.subr.bf16.mxu0 %v1083_v3  ;;  %1067 = vmatprep.subr.bf16.mxu1 %v1083_v3  ;;  %v1116_v33 = vld [vmem:[%s1656_s0 + $0xe0] sm:$0xff]   ;;  %v1101_v34 = vld [vmem:[%s1656_s0 + $0x68] sm:$0xff]   ;;  %v1102_v36 = vld [vmem:[%s1656_s0 + $0x70] sm:$0xff]  }
   0xd   :  { %v1117_v35 = vld [vmem:[%s1656_s0 + $0xe8] sm:$0xff]   ;;  %v1118_v37 = vld [vmem:[%s1656_s0 + $0xf0] sm:$0xff]   ;;  %v1103_v38 = vld [vmem:[%s1656_s0 + $0x78] sm:$0xff]  }
   0xe   :  { %v1119_v39 = vld [vmem:[%s1656_s0 + $0xf8] sm:$0xff]  }
   0xf   :  { %991 = vmatpush3.bf16.msra.mxu0 %v1083_v3  ;;  %1075 = vmatpush3.bf16.msra.mxu1 %v1083_v3 }
  0x10   :  { %992 = vmatprep.subr.bf16.mxu0 %v1084_v5  ;;  %1068 = vmatprep.subr.bf16.mxu1 %v1084_v5 }
  0x13   :  { %993 = vmatpush3.bf16.msra.mxu0 %v1084_v5  ;;  %1076 = vmatpush3.bf16.msra.mxu1 %v1084_v5 }
  0x14   :  { %994 = vmatprep.subr.bf16.mxu0 %v1085_v6  ;;  %1069 = vmatprep.subr.bf16.mxu1 %v1085_v6 }
  0x17   :  { %995 = vmatpush3.bf16.msra.mxu0 %v1085_v6  ;;  %1077 = vmatpush3.bf16.msra.mxu1 %v1085_v6 }
  0x18   :  { %996 = vmatprep.subr.bf16.mxu0 %v1086_v7  ;;  %1070 = vmatprep.subr.bf16.mxu1 %v1086_v7 }
  0x1b   :  { %997 = vmatpush3.bf16.msra.mxu0 %v1086_v7  ;;  %1078 = vmatpush3.bf16.msra.mxu1 %v1086_v7 }
  0x1c   :  { %998 = vmatprep.subr.bf16.mxu0 %v1087_v8  ;;  %1071 = vmatprep.subr.bf16.mxu1 %v1087_v8 }
  0x1f   :  { %999 = vmatpush3.bf16.msra.mxu0 %v1087_v8  ;;  %1079 = vmatpush3.bf16.msra.mxu1 %v1087_v8 }
  0x22   :  { %1001 = vmatmul.mubr.bf16.vlgmr.msra.gmra.mrb[0].mxu0 %v1089_v10  ;;  %1033 = vmatmul.mubr.bf16.vlgmr.msra.gmra.mrb[0].mxu1 %v1105_v12 }
  0x23   :  { %1004 = vmatprep.mubr.bf16.mxu0 %v1090_v11  ;;  %1036 = vmatprep.mubr.bf16.mxu1 %v1106_v13 }
  0x2a   :  { %1005 = vmatmul.mubr.bf16.gmra.mrb[4].mxu0 %v1091_v14  ;;  %1037 = vmatmul.mubr.bf16.gmra.mrb[4].mxu1 %v1107_v16 }
  0x2b   :  { %1008 = vmatprep.mubr.bf16.mxu0 %v1092_v15  ;;  %1040 = vmatprep.mubr.bf16.mxu1 %v1108_v17 }
  0x32   :  { %1009 = vmatmul.mubr.bf16.gmra.mrb[8].mxu0 %v1093_v18  ;;  %1041 = vmatmul.mubr.bf16.gmra.mrb[8].mxu1 %v1109_v19 }
  0x33   :  { %1012 = vmatprep.mubr.bf16.mxu0 %v1094_v20  ;;  %1044 = vmatprep.mubr.bf16.mxu1 %v1110_v21 }
  0x3a   :  { %1013 = vmatmul.mubr.bf16.gmra.mrb[12].mxu0 %v1095_v22  ;;  %1045 = vmatmul.mubr.bf16.gmra.mrb[12].mxu1 %v1111_v23 }
  0x3b   :  { %1016 = vmatprep.mubr.bf16.mxu0 %v1096_v24  ;;  %1048 = vmatprep.mubr.bf16.mxu1 %v1112_v25 }
  0x42   :  { %1017 = vmatmul.mubr.bf16.gmra.mrb[16].mxu0 %v1097_v26  ;;  %1049 = vmatmul.mubr.bf16.gmra.mrb[16].mxu1 %v1113_v27 }
  0x43   :  { %1020 = vmatprep.mubr.bf16.mxu0 %v1098_v28  ;;  %1052 = vmatprep.mubr.bf16.mxu1 %v1114_v29 }
  0x4a   :  { %1021 = vmatmul.mubr.bf16.gmra.mrb[20].mxu0 %v1099_v30  ;;  %1053 = vmatmul.mubr.bf16.gmra.mrb[20].mxu1 %v1115_v31 }
  0x4b   :  { %1024 = vmatprep.mubr.bf16.mxu0 %v1100_v32  ;;  %1056 = vmatprep.mubr.bf16.mxu1 %v1116_v33 }
  0x52   :  { %1025 = vmatmul.mubr.bf16.gmra.mrb[24].mxu0 %v1101_v34  ;;  %1057 = vmatmul.mubr.bf16.gmra.mrb[24].mxu1 %v1117_v35 }
  0x53   :  { %1028 = vmatprep.mubr.bf16.mxu0 %v1102_v36  ;;  %1060 = vmatprep.mubr.bf16.mxu1 %v1118_v37 }
  0x5a   :  { %1029 = vmatmul.mubr.bf16.gmra.mrb[28].mxu0 %v1103_v38  ;;  %1061 = vmatmul.mubr.bf16.gmra.mrb[28].mxu1 %v1119_v39 }
  0xf5   :  { %v1002_v40 = vpop.f32.mrb[0].mxu0  ;;  %v1265_v41 = vpop.f32.mrb[0].mxu1 }
  0xf6   :  { %626 = vst [vmem:[%s1657_s2 + $0x10] sm:$0xff] %v1002_v40  ;;  %v369_v42 = vpop.f32.mrb[1].mxu0  ;;  %658 = vst [vmem:[%s1657_s2 + $0x110] sm:$0xff] %v1265_v41  ;;  %v1274_v43 = vpop.f32.mrb[1].mxu1  ;;  %v760_v51 = vmul.f32 %v1002_v40, %v1002_v40 }
  0xf7   :  { %624 = vst [vmem:[%s1657_s2] sm:$0xff] %v369_v42  ;;  %v1003_v44 = vpop.f32.mrb[2].mxu0  ;;  %656 = vst [vmem:[%s1657_s2 + $0x100] sm:$0xff] %v1274_v43  ;;  %v1283_v45 = vpop.f32.mrb[2].mxu1  ;;  %v758_v48 = vmul.f32 %v369_v42, %v369_v42 }
  0xf8   :  { %627 = vst [vmem:[%s1657_s2 + $0x18] sm:$0xff] %v1003_v44  ;;  %v372_v46 = vpop.f32.mrb[3].mxu0  ;;  %659 = vst [vmem:[%s1657_s2 + $0x118] sm:$0xff] %v1283_v45  ;;  %v1292_v47 = vpop.f32.mrb[3].mxu1  ;;  %v761_v54 = vmul.f32 %v1003_v44, %v1003_v44 }
  0xf9   :  { %625 = vst [vmem:[%s1657_s2 + $0x8] sm:$0xff] %v372_v46  ;;  %v688_v49 = vadd.f32 %v372_v46, %v369_v42  ;;  %v759_v50 = vmul.f32 %v372_v46, %v372_v46  ;;  %657 = vst [vmem:[%s1657_s2 + $0x108] sm:$0xff] %v1292_v47 }
  0xfb   :  { %v689_v52 = vadd.f32 %v1002_v40, %v688_v49  ;;  %v822_v53 = vadd.f32 %v759_v50, %v758_v48 }
  0xfd   :  { %v823_v55 = vadd.f32 %v822_v53, %v760_v51  ;;  %v1006_v56 = vpop.f32.mrb[4].mxu0  ;;  %v690_v57 = vadd.f32 %v1003_v44, %v689_v52  ;;  %v1301_v58 = vpop.f32.mrb[4].mxu1 }
  0xfe   :  { %630 = vst [vmem:[%s1657_s2 + $0x30] sm:$0xff] %v1006_v56  ;;  %v385_v59 = vpop.f32.mrb[5].mxu0  ;;  %662 = vst [vmem:[%s1657_s2 + $0x130] sm:$0xff] %v1301_v58  ;;  %v1310_v60 = vpop.f32.mrb[5].mxu1  ;;  %v764_v7 = vmul.f32 %v1006_v56, %v1006_v56 }
  0xff   :  { %628 = vst [vmem:[%s1657_s2 + $0x20] sm:$0xff] %v385_v59  ;;  %v691_v61 = vadd.f32 %v690_v57, %v385_v59  ;;  %v762_v62 = vmul.f32 %v385_v59, %v385_v59  ;;  %v824_v63 = vadd.f32 %v823_v55, %v761_v54  ;;  %v1007_v0 = vpop.f32.mrb[6].mxu0  ;;  %660 = vst [vmem:[%s1657_s2 + $0x120] sm:$0xff] %v1310_v60  ;;  %v1319_v1 = vpop.f32.mrb[6].mxu1 }
 0x100   :  { %631 = vst [vmem:[%s1657_s2 + $0x38] sm:$0xff] %v1007_v0  ;;  %v388_v2 = vpop.f32.mrb[7].mxu0  ;;  %663 = vst [vmem:[%s1657_s2 + $0x138] sm:$0xff] %v1319_v1  ;;  %v1328_v3 = vpop.f32.mrb[7].mxu1  ;;  %v765_v10 = vmul.f32 %v1007_v0, %v1007_v0 }
 0x101   :  { %v825_v4 = vadd.f32 %v824_v63, %v762_v62  ;;  %629 = vst [vmem:[%s1657_s2 + $0x28] sm:$0xff] %v388_v2  ;;  %v692_v5 = vadd.f32 %v691_v61, %v388_v2  ;;  %v763_v6 = vmul.f32 %v388_v2, %v388_v2  ;;  %661 = vst [vmem:[%s1657_s2 + $0x128] sm:$0xff] %v1328_v3 }
 0x103   :  { %v693_v8 = vadd.f32 %v1006_v56, %v692_v5  ;;  %v826_v9 = vadd.f32 %v825_v4, %v763_v6 }
 0x105   :  { %v827_v11 = vadd.f32 %v826_v9, %v764_v7  ;;  %v1010_v12 = vpop.f32.mrb[8].mxu0  ;;  %v694_v13 = vadd.f32 %v1007_v0, %v693_v8  ;;  %v1337_v14 = vpop.f32.mrb[8].mxu1 }
 0x106   :  { %634 = vst [vmem:[%s1657_s2 + $0x50] sm:$0xff] %v1010_v12  ;;  %v401_v15 = vpop.f32.mrb[9].mxu0  ;;  %666 = vst [vmem:[%s1657_s2 + $0x150] sm:$0xff] %v1337_v14  ;;  %v1346_v16 = vpop.f32.mrb[9].mxu1  ;;  %v768_v27 = vmul.f32 %v1010_v12, %v1010_v12 }
 0x107   :  { %632 = vst [vmem:[%s1657_s2 + $0x40] sm:$0xff] %v401_v15  ;;  %v695_v17 = vadd.f32 %v694_v13, %v401_v15  ;;  %v766_v18 = vmul.f32 %v401_v15, %v401_v15  ;;  %v828_v19 = vadd.f32 %v827_v11, %v765_v10  ;;  %v1011_v20 = vpop.f32.mrb[10].mxu0  ;;  %664 = vst [vmem:[%s1657_s2 + $0x140] sm:$0xff] %v1346_v16  ;;  %v1355_v21 = vpop.f32.mrb[10].mxu1 }
 0x108   :  { %635 = vst [vmem:[%s1657_s2 + $0x58] sm:$0xff] %v1011_v20  ;;  %v404_v22 = vpop.f32.mrb[11].mxu0  ;;  %667 = vst [vmem:[%s1657_s2 + $0x158] sm:$0xff] %v1355_v21  ;;  %v1364_v23 = vpop.f32.mrb[11].mxu1  ;;  %v769_v30 = vmul.f32 %v1011_v20, %v1011_v20 }
 0x109   :  { %v829_v24 = vadd.f32 %v828_v19, %v766_v18  ;;  %633 = vst [vmem:[%s1657_s2 + $0x48] sm:$0xff] %v404_v22  ;;  %v696_v25 = vadd.f32 %v695_v17, %v404_v22  ;;  %v767_v26 = vmul.f32 %v404_v22, %v404_v22  ;;  %665 = vst [vmem:[%s1657_s2 + $0x148] sm:$0xff] %v1364_v23 }
 0x10b   :  { %v697_v28 = vadd.f32 %v1010_v12, %v696_v25  ;;  %v830_v29 = vadd.f32 %v829_v24, %v767_v26 }
 0x10d   :  { %v831_v31 = vadd.f32 %v830_v29, %v768_v27  ;;  %v1014_v32 = vpop.f32.mrb[12].mxu0  ;;  %v698_v33 = vadd.f32 %v1011_v20, %v697_v28  ;;  %v1373_v34 = vpop.f32.mrb[12].mxu1 }
 0x10e   :  { %638 = vst [vmem:[%s1657_s2 + $0x70] sm:$0xff] %v1014_v32  ;;  %v417_v35 = vpop.f32.mrb[13].mxu0  ;;  %670 = vst [vmem:[%s1657_s2 + $0x170] sm:$0xff] %v1373_v34  ;;  %v1382_v36 = vpop.f32.mrb[13].mxu1  ;;  %v772_v51 = vmul.f32 %v1014_v32, %v1014_v32 }
 0x10f   :  { %636 = vst [vmem:[%s1657_s2 + $0x60] sm:$0xff] %v417_v35  ;;  %v699_v37 = vadd.f32 %v698_v33, %v417_v35  ;;  %v770_v38 = vmul.f32 %v417_v35, %v417_v35  ;;  %v832_v39 = vadd.f32 %v831_v31, %v769_v30  ;;  %v1015_v40 = vpop.f32.mrb[14].mxu0  ;;  %668 = vst [vmem:[%s1657_s2 + $0x160] sm:$0xff] %v1382_v36  ;;  %v1391_v42 = vpop.f32.mrb[14].mxu1 }
 0x110   :  { %639 = vst [vmem:[%s1657_s2 + $0x78] sm:$0xff] %v1015_v40  ;;  %v420_v44 = vpop.f32.mrb[15].mxu0  ;;  %671 = vst [vmem:[%s1657_s2 + $0x178] sm:$0xff] %v1391_v42  ;;  %v1400_v46 = vpop.f32.mrb[15].mxu1  ;;  %v773_v54 = vmul.f32 %v1015_v40, %v1015_v40 }
 0x111   :  { %v833_v48 = vadd.f32 %v832_v39, %v770_v38  ;;  %637 = vst [vmem:[%s1657_s2 + $0x68] sm:$0xff] %v420_v44  ;;  %v700_v49 = vadd.f32 %v699_v37, %v420_v44  ;;  %v771_v50 = vmul.f32 %v420_v44, %v420_v44  ;;  %669 = vst [vmem:[%s1657_s2 + $0x168] sm:$0xff] %v1400_v46 }
 0x113   :  { %v701_v52 = vadd.f32 %v1014_v32, %v700_v49  ;;  %v834_v53 = vadd.f32 %v833_v48, %v771_v50 }
 0x115   :  { %v835_v55 = vadd.f32 %v834_v53, %v772_v51  ;;  %v1018_v56 = vpop.f32.mrb[16].mxu0  ;;  %v702_v57 = vadd.f32 %v1015_v40, %v701_v52  ;;  %v1409_v59 = vpop.f32.mrb[16].mxu1 }
 0x116   :  { %642 = vst [vmem:[%s1657_s2 + $0x90] sm:$0xff] %v1018_v56  ;;  %v433_v61 = vpop.f32.mrb[17].mxu0  ;;  %674 = vst [vmem:[%s1657_s2 + $0x190] sm:$0xff] %v1409_v59  ;;  %v1418_v62 = vpop.f32.mrb[17].mxu1  ;;  %v776_v11 = vmul.f32 %v1018_v56, %v1018_v56 }
 0x117   :  { %640 = vst [vmem:[%s1657_s2 + $0x80] sm:$0xff] %v433_v61  ;;  %v703_v63 = vadd.f32 %v702_v57, %v433_v61  ;;  %v774_v0 = vmul.f32 %v433_v61, %v433_v61  ;;  %v836_v2 = vadd.f32 %v835_v55, %v773_v54  ;;  %v1019_v4 = vpop.f32.mrb[18].mxu0  ;;  %672 = vst [vmem:[%s1657_s2 + $0x180] sm:$0xff] %v1418_v62  ;;  %v1427_v5 = vpop.f32.mrb[18].mxu1 }
 0x118   :  { %643 = vst [vmem:[%s1657_s2 + $0x98] sm:$0xff] %v1019_v4  ;;  %v436_v6 = vpop.f32.mrb[19].mxu0  ;;  %675 = vst [vmem:[%s1657_s2 + $0x198] sm:$0xff] %v1427_v5  ;;  %v1436_v7 = vpop.f32.mrb[19].mxu1  ;;  %v777_v15 = vmul.f32 %v1019_v4, %v1019_v4 }
 0x119   :  { %v837_v8 = vadd.f32 %v836_v2, %v774_v0  ;;  %641 = vst [vmem:[%s1657_s2 + $0x88] sm:$0xff] %v436_v6  ;;  %v704_v9 = vadd.f32 %v703_v63, %v436_v6  ;;  %v775_v10 = vmul.f32 %v436_v6, %v436_v6  ;;  %673 = vst [vmem:[%s1657_s2 + $0x188] sm:$0xff] %v1436_v7 }
 0x11b   :  { %v705_v12 = vadd.f32 %v1018_v56, %v704_v9  ;;  %v838_v13 = vadd.f32 %v837_v8, %v775_v10 }
 0x11d   :  { %v839_v17 = vadd.f32 %v838_v13, %v776_v11  ;;  %v1022_v18 = vpop.f32.mrb[20].mxu0  ;;  %v706_v19 = vadd.f32 %v1019_v4, %v705_v12  ;;  %v1445_v20 = vpop.f32.mrb[20].mxu1 }
 0x11e   :  { %646 = vst [vmem:[%s1657_s2 + $0xb0] sm:$0xff] %v1022_v18  ;;  %v449_v22 = vpop.f32.mrb[21].mxu0  ;;  %678 = vst [vmem:[%s1657_s2 + $0x1b0] sm:$0xff] %v1445_v20  ;;  %v1454_v24 = vpop.f32.mrb[21].mxu1  ;;  %v780_v37 = vmul.f32 %v1022_v18, %v1022_v18 }
 0x11f   :  { %644 = vst [vmem:[%s1657_s2 + $0xa0] sm:$0xff] %v449_v22  ;;  %v707_v25 = vadd.f32 %v706_v19, %v449_v22  ;;  %v778_v26 = vmul.f32 %v449_v22, %v449_v22  ;;  %v840_v27 = vadd.f32 %v839_v17, %v777_v15  ;;  %v1023_v28 = vpop.f32.mrb[22].mxu0  ;;  %676 = vst [vmem:[%s1657_s2 + $0x1a0] sm:$0xff] %v1454_v24  ;;  %v1463_v29 = vpop.f32.mrb[22].mxu1 }
 0x120   :  { %647 = vst [vmem:[%s1657_s2 + $0xb8] sm:$0xff] %v1023_v28  ;;  %v452_v30 = vpop.f32.mrb[23].mxu0  ;;  %679 = vst [vmem:[%s1657_s2 + $0x1b8] sm:$0xff] %v1463_v29  ;;  %v1472_v31 = vpop.f32.mrb[23].mxu1  ;;  %v781_v40 = vmul.f32 %v1023_v28, %v1023_v28 }
 0x121   :  { %v841_v32 = vadd.f32 %v840_v27, %v778_v26  ;;  %645 = vst [vmem:[%s1657_s2 + $0xa8] sm:$0xff] %v452_v30  ;;  %v708_v33 = vadd.f32 %v707_v25, %v452_v30  ;;  %v779_v35 = vmul.f32 %v452_v30, %v452_v30  ;;  %677 = vst [vmem:[%s1657_s2 + $0x1a8] sm:$0xff] %v1472_v31 }
 0x123   :  { %v709_v38 = vadd.f32 %v1022_v18, %v708_v33  ;;  %v842_v39 = vadd.f32 %v841_v32, %v779_v35 }
 0x125   :  { %v843_v44 = vadd.f32 %v842_v39, %v780_v37  ;;  %v1026_v48 = vpop.f32.mrb[24].mxu0  ;;  %v710_v49 = vadd.f32 %v1023_v28, %v709_v38  ;;  %v1481_v50 = vpop.f32.mrb[24].mxu1 }
 0x126   :  { %650 = vst [vmem:[%s1657_s2 + $0xd0] sm:$0xff] %v1026_v48  ;;  %v465_v51 = vpop.f32.mrb[25].mxu0  ;;  %682 = vst [vmem:[%s1657_s2 + $0x1d0] sm:$0xff] %v1481_v50  ;;  %v1490_v52 = vpop.f32.mrb[25].mxu1  ;;  %v784_v6 = vmul.f32 %v1026_v48, %v1026_v48 }
 0x127   :  { %648 = vst [vmem:[%s1657_s2 + $0xc0] sm:$0xff] %v465_v51  ;;  %v711_v53 = vadd.f32 %v710_v49, %v465_v51  ;;  %v782_v54 = vmul.f32 %v465_v51, %v465_v51  ;;  %v844_v55 = vadd.f32 %v843_v44, %v781_v40  ;;  %v1027_v56 = vpop.f32.mrb[26].mxu0  ;;  %680 = vst [vmem:[%s1657_s2 + $0x1c0] sm:$0xff] %v1490_v52  ;;  %v1499_v57 = vpop.f32.mrb[26].mxu1 }
 0x128   :  { %651 = vst [vmem:[%s1657_s2 + $0xd8] sm:$0xff] %v1027_v56  ;;  %v468_v61 = vpop.f32.mrb[27].mxu0  ;;  %683 = vst [vmem:[%s1657_s2 + $0x1d8] sm:$0xff] %v1499_v57  ;;  %v1508_v63 = vpop.f32.mrb[27].mxu1  ;;  %v785_v10 = vmul.f32 %v1027_v56, %v1027_v56  ;;  %v790_v49 = vmul.f32 %v1274_v43, %v1274_v43 }
 0x129   :  { %v845_v0 = vadd.f32 %v844_v55, %v782_v54  ;;  %649 = vst [vmem:[%s1657_s2 + $0xc8] sm:$0xff] %v468_v61  ;;  %v712_v2 = vadd.f32 %v711_v53, %v468_v61  ;;  %v783_v4 = vmul.f32 %v468_v61, %v468_v61  ;;  %681 = vst [vmem:[%s1657_s2 + $0x1c8] sm:$0xff] %v1508_v63 }
 0x12a   :  { %v792_v61 = vmul.f32 %v1265_v41, %v1265_v41 }
 0x12b   :  { %v713_v8 = vadd.f32 %v1026_v48, %v712_v2  ;;  %v846_v9 = vadd.f32 %v845_v0, %v783_v4  ;;  %v793_v4 = vmul.f32 %v1283_v45, %v1283_v45 }
 0x12d   :  { %v847_v11 = vadd.f32 %v846_v9, %v784_v6  ;;  %v1030_v12 = vpop.f32.mrb[28].mxu0  ;;  %v714_v13 = vadd.f32 %v1027_v56, %v713_v8  ;;  %v1517_v15 = vpop.f32.mrb[28].mxu1  ;;  %v791_v56 = vmul.f32 %v1292_v47, %v1292_v47 }
 0x12e   :  { %654 = vst [vmem:[%s1657_s2 + $0xf0] sm:$0xff] %v1030_v12  ;;  %v481_v17 = vpop.f32.mrb[29].mxu0  ;;  %686 = vst [vmem:[%s1657_s2 + $0x1f0] sm:$0xff] %v1517_v15  ;;  %v1526_v18 = vpop.f32.mrb[29].mxu1  ;;  %v788_v37 = vmul.f32 %v1030_v12, %v1030_v12 }
 0x12f   :  { %652 = vst [vmem:[%s1657_s2 + $0xe0] sm:$0xff] %v481_v17  ;;  %v715_v19 = vadd.f32 %v714_v13, %v481_v17  ;;  %v786_v22 = vmul.f32 %v481_v17, %v481_v17  ;;  %v848_v25 = vadd.f32 %v847_v11, %v785_v10  ;;  %v1031_v26 = vpop.f32.mrb[30].mxu0  ;;  %684 = vst [vmem:[%s1657_s2 + $0x1e0] sm:$0xff] %v1526_v18  ;;  %v1535_v27 = vpop.f32.mrb[30].mxu1 }
 0x130   :  { %655 = vst [vmem:[%s1657_s2 + $0xf8] sm:$0xff] %v1031_v26  ;;  %v484_v28 = vpop.f32.mrb[31].mxu0  ;;  %687 = vst [vmem:[%s1657_s2 + $0x1f8] sm:$0xff] %v1535_v27  ;;  %v1544_v30 = vpop.f32.mrb[31].mxu1  ;;  %v789_v40 = vmul.f32 %v1031_v26, %v1031_v26 }
 0x131   :  { %v849_v32 = vadd.f32 %v848_v25, %v786_v22  ;;  %653 = vst [vmem:[%s1657_s2 + $0xe8] sm:$0xff] %v484_v28  ;;  %v716_v33 = vadd.f32 %v715_v19, %v484_v28  ;;  %v787_v35 = vmul.f32 %v484_v28, %v484_v28  ;;  %685 = vst [vmem:[%s1657_s2 + $0x1e8] sm:$0xff] %v1544_v30 }
 0x133   :  { %v717_v38 = vadd.f32 %v1030_v12, %v716_v33  ;;  %v850_v39 = vadd.f32 %v849_v32, %v787_v35  ;;  %v795_v12 = vmul.f32 %v1328_v3, %v1328_v3  ;;  %v799_v32 = vmul.f32 %v1364_v23, %v1364_v23 }
 0x135   :  { %v851_v44 = vadd.f32 %v850_v39, %v788_v37  ;;  %v718_v48 = vadd.f32 %v1031_v26, %v717_v38 }
 0x137   :  { %v719_v51 = vadd.f32 %v718_v48, %v1274_v43  ;;  %v852_v53 = vadd.f32 %v851_v44, %v789_v40  ;;  %v794_v43 = vmul.f32 %v1310_v60, %v1310_v60  ;;  %v803_v48 = vmul.f32 %v1400_v46, %v1400_v46 }
 0x139   :  { %v853_v54 = vadd.f32 %v852_v53, %v790_v49  ;;  %v720_v55 = vadd.f32 %v719_v51, %v1292_v47 }
 0x13b   :  { %v721_v0 = vadd.f32 %v1265_v41, %v720_v55  ;;  %v854_v2 = vadd.f32 %v853_v54, %v791_v56  ;;  %v796_v41 = vmul.f32 %v1301_v58, %v1301_v58 }
 0x13d   :  { %v855_v6 = vadd.f32 %v854_v2, %v792_v61  ;;  %v722_v8 = vadd.f32 %v1283_v45, %v721_v0  ;;  %v797_v45 = vmul.f32 %v1319_v1, %v1319_v1  ;;  %v807_v0 = vmul.f32 %v1436_v7, %v1436_v7 }
 0x13f   :  { %v723_v9 = vadd.f32 %v722_v8, %v1310_v60  ;;  %v856_v10 = vadd.f32 %v855_v6, %v793_v4  ;;  %v798_v60 = vmul.f32 %v1346_v16, %v1346_v16 }
 0x141   :  { %v857_v11 = vadd.f32 %v856_v10, %v794_v43  ;;  %v724_v47 = vadd.f32 %v723_v9, %v1328_v3 }
 0x143   :  { %v725_v13 = vadd.f32 %v1301_v58, %v724_v47  ;;  %v858_v17 = vadd.f32 %v857_v11, %v795_v12  ;;  %v800_v58 = vmul.f32 %v1337_v14, %v1337_v14  ;;  %v811_v11 = vmul.f32 %v1472_v31, %v1472_v31 }
 0x145   :  { %v859_v19 = vadd.f32 %v858_v17, %v796_v41  ;;  %v726_v22 = vadd.f32 %v1319_v1, %v725_v13  ;;  %v801_v1 = vmul.f32 %v1355_v21, %v1355_v21 }
 0x147   :  { %v727_v25 = vadd.f32 %v726_v22, %v1346_v16  ;;  %v860_v26 = vadd.f32 %v859_v19, %v797_v45  ;;  %v802_v16 = vmul.f32 %v1382_v36, %v1382_v36  ;;  %v815_v22 = vmul.f32 %v1508_v63, %v1508_v63 }
 0x149   :  { %v861_v28 = vadd.f32 %v860_v26, %v798_v60  ;;  %v728_v3 = vadd.f32 %v727_v25, %v1364_v23 }
 0x14b   :  { %v729_v33 = vadd.f32 %v1337_v14, %v728_v3  ;;  %v862_v35 = vadd.f32 %v861_v28, %v799_v32  ;;  %v804_v14 = vmul.f32 %v1373_v34, %v1373_v34 }
 0x14d   :  { %v863_v37 = vadd.f32 %v862_v35, %v800_v58  ;;  %v730_v38 = vadd.f32 %v1355_v21, %v729_v33  ;;  %v805_v21 = vmul.f32 %v1391_v42, %v1391_v42  ;;  %v819_v33 = vmul.f32 %v1544_v30, %v1544_v30 }
 0x14f   :  { %v731_v39 = vadd.f32 %v730_v38, %v1382_v36  ;;  %v864_v40 = vadd.f32 %v863_v37, %v801_v1  ;;  %v806_v36 = vmul.f32 %v1418_v62, %v1418_v62 }
 0x151   :  { %v865_v44 = vadd.f32 %v864_v40, %v802_v16  ;;  %v732_v23 = vadd.f32 %v731_v39, %v1400_v46 }
 0x153   :  { %v733_v49 = vadd.f32 %v1373_v34, %v732_v23  ;;  %v866_v51 = vadd.f32 %v865_v44, %v803_v48  ;;  %v808_v34 = vmul.f32 %v1409_v59, %v1409_v59 }
 0x155   :  { %v867_v53 = vadd.f32 %v866_v51, %v804_v14  ;;  %v734_v54 = vadd.f32 %v1391_v42, %v733_v49  ;;  %v809_v42 = vmul.f32 %v1427_v5, %v1427_v5 }
 0x157   :  { %v735_v55 = vadd.f32 %v734_v54, %v1418_v62  ;;  %v868_v56 = vadd.f32 %v867_v53, %v805_v21  ;;  %v810_v62 = vmul.f32 %v1454_v24, %v1454_v24 }
 0x159   :  { %v869_v61 = vadd.f32 %v868_v56, %v806_v36  ;;  %v736_v46 = vadd.f32 %v735_v55, %v1436_v7 }
 0x15b   :  { %v737_v2 = vadd.f32 %v1409_v59, %v736_v46  ;;  %v870_v4 = vadd.f32 %v869_v61, %v807_v0  ;;  %v812_v59 = vmul.f32 %v1445_v20, %v1445_v20 }
 0x15d   :  { %v871_v6 = vadd.f32 %v870_v4, %v808_v34  ;;  %v738_v8 = vadd.f32 %v1427_v5, %v737_v2  ;;  %v813_v5 = vmul.f32 %v1463_v29, %v1463_v29 }
 0x15f   :  { %v739_v43 = vadd.f32 %v738_v8, %v1454_v24  ;;  %v872_v9 = vadd.f32 %v871_v6, %v809_v42  ;;  %v814_v24 = vmul.f32 %v1490_v52, %v1490_v52 }
 0x161   :  { %v873_v10 = vadd.f32 %v872_v9, %v810_v62  ;;  %v740_v7 = vadd.f32 %v739_v43, %v1472_v31 }
 0x163   :  { %v741_v47 = vadd.f32 %v1445_v20, %v740_v7  ;;  %v874_v12 = vadd.f32 %v873_v10, %v811_v11  ;;  %v816_v20 = vmul.f32 %v1481_v50, %v1481_v50 }
 0x165   :  { %v875_v41 = vadd.f32 %v874_v12, %v812_v59  ;;  %v742_v13 = vadd.f32 %v1463_v29, %v741_v47  ;;  %v817_v29 = vmul.f32 %v1499_v57, %v1499_v57 }
 0x167   :  { %v743_v17 = vadd.f32 %v742_v13, %v1490_v52  ;;  %v876_v45 = vadd.f32 %v875_v41, %v813_v5  ;;  %v818_v52 = vmul.f32 %v1526_v18, %v1526_v18 }
 0x169   :  { %v877_v19 = vadd.f32 %v876_v45, %v814_v24  ;;  %v744_v31 = vadd.f32 %v743_v17, %v1508_v63 }
 0x16b   :  { %v745_v60 = vadd.f32 %v1481_v50, %v744_v31  ;;  %v878_v25 = vadd.f32 %v877_v19, %v815_v22  ;;  %v820_v50 = vmul.f32 %v1517_v15, %v1517_v15 }
 0x16d   :  { %v879_v26 = vadd.f32 %v878_v25, %v816_v20  ;;  %v746_v28 = vadd.f32 %v1499_v57, %v745_v60  ;;  %v821_v57 = vmul.f32 %v1535_v27, %v1535_v27 }
 0x16f   :  { %v747_v3 = vadd.f32 %v746_v28, %v1526_v18  ;;  %v880_v32 = vadd.f32 %v879_v26, %v817_v29 }
 0x171   :  { %v881_v58 = vadd.f32 %v880_v32, %v818_v52  ;;  %v748_v63 = vadd.f32 %v747_v3, %v1544_v30 }
 0x173   :  { %v749_v35 = vadd.f32 %v1517_v15, %v748_v63  ;;  %v882_v1 = vadd.f32 %v881_v58, %v819_v33 }
 0x175   :  { %v750_v37 = vadd.f32 %v1535_v27, %v749_v35  ;;  %v883_v38 = vadd.f32 %v882_v1, %v820_v50 }
 0x177   :  { %v751_v18 = vrot.slane %v750_v37, 4  ;;  %v884_v16 = vadd.f32 %v883_v38, %v821_v57 }
 0x179   :  { %v752_v39 = vadd.f32 %v751_v18, %v750_v37  ;;  %v885_v40 = vrot.slane %v884_v16, 4 }
 0x17b   :  { %v753_v44 = vrot.slane %v752_v39, 2  ;;  %v886_v23 = vadd.f32 %v885_v40, %v884_v16 }
 0x17d   :  { %v754_v48 = vadd.f32 %v753_v44, %v752_v39  ;;  %v887_v30 = vrot.slane %v886_v23, 2 }
 0x17f   :  { %v755_v14 = vrot.slane %v754_v48, 1  ;;  %v888_v49 = vadd.f32 %v887_v30, %v886_v23 }
 0x181   :  { %v756_v51 = vadd.f32 %v755_v14, %v754_v48  ;;  %v889_v21 = vrot.slane %v888_v49, 1 }
 0x183   :  { %757 = vst [vmem:[%s1658_s3] sm:$0x1] %v756_v51  ;;  %v890_v15 = vadd.f32 %v889_v21, %v888_v49 }
 0x185   :  { %891 = vst [vmem:[%s1659_s4] sm:$0x1] %v890_v15 }

// kernel: split_forward.20
= control target key start
LH: loop header
LB: loop body
LE: loop exit
PB: predicated region body
PF: predicated region fallthrough
CT: control target
= control target key end

     0   :  { %s3063_s1 = inlined_call_operand.vmem [shape: bf16[128,128], index: 1, kind: input, shape index: {}]   ;;  %s3064_s0 = inlined_call_operand.vmem [shape: bf16[1024,128], index: 0, kind: input, shape index: {}]   ;;  %s3065_s2 = inlined_call_operand.vmem [shape: f32[1024,128], index: 2, kind: output, shape index: {0}]   ;;  %s3066_s3 = inlined_call_operand.vmem [shape: f32[1,1,128], index: 3, kind: output, shape index: {1}]   ;;  %s3067_s4 = inlined_call_operand.vmem [shape: f32[1,1,128], index: 4, kind: output, shape index: {2}]  }
   0x1   :  { %v1976_v0 = vld [vmem:[%s3063_s1] sm:$0xff]   ;;  %v1977_v1 = vld [vmem:[%s3063_s1 + $0x8] sm:$0xff]   ;;  %v1978_v2 = vld [vmem:[%s3063_s1 + $0x10] sm:$0xff]  }
   0x2   :  { %1816 = vmatprep.subr.bf16.mxu0 %v1976_v0  ;;  %1960 = vmatprep.subr.bf16.mxu1 %v1976_v0  ;;  %v1979_v3 = vld [vmem:[%s3063_s1 + $0x18] sm:$0xff]   ;;  %v1984_v4 = vld [vmem:[%s3064_s0] sm:$0xff]   ;;  %v1981_v6 = vld [vmem:[%s3063_s1 + $0x28] sm:$0xff]  }
   0x3   :  { %1817 = vmatpush3.bf16.msra.mxu0 %v1976_v0  ;;  %1968 = vmatpush3.bf16.msra.mxu1 %v1976_v0  ;;  %v1980_v5 = vld [vmem:[%s3063_s1 + $0x20] sm:$0xff]   ;;  %v1982_v7 = vld [vmem:[%s3063_s1 + $0x30] sm:$0xff]   ;;  %v1983_v8 = vld [vmem:[%s3063_s1 + $0x38] sm:$0xff]  }
   0x4   :  { %1818 = vmatprep.subr.bf16.mxu0 %v1977_v1  ;;  %1961 = vmatprep.subr.bf16.mxu1 %v1977_v1  ;;  %v1985_v9 = vld [vmem:[%s3064_s0 + $0x8] sm:$0xff]   ;;  %v1986_v10 = vld [vmem:[%s3064_s0 + $0x10] sm:$0xff]   ;;  %v1987_v11 = vld [vmem:[%s3064_s0 + $0x18] sm:$0xff]  }
   0x5   :  { %1832 = vmatprep.mubr.bf16.mxu0 %v1984_v4  ;;  %v1988_v12 = vld [vmem:[%s3064_s0 + $0x20] sm:$0xff]   ;;  %v2017_v14 = vld [vmem:[%s3064_s0 + $0x108] sm:$0xff]   ;;  %v2018_v15 = vld [vmem:[%s3064_s0 + $0x110] sm:$0xff]  }
   0x6   :  { %v2016_v13 = vld [vmem:[%s3064_s0 + $0x100] sm:$0xff]   ;;  %v1989_v16 = vld [vmem:[%s3064_s0 + $0x28] sm:$0xff]   ;;  %v1990_v17 = vld [vmem:[%s3064_s0 + $0x30] sm:$0xff]  }
   0x7   :  { %1819 = vmatpush3.bf16.msra.mxu0 %v1977_v1  ;;  %1969 = vmatpush3.bf16.msra.mxu1 %v1977_v1  ;;  %v2019_v18 = vld [vmem:[%s3064_s0 + $0x118] sm:$0xff]   ;;  %v2020_v19 = vld [vmem:[%s3064_s0 + $0x120] sm:$0xff]   ;;  %v2021_v22 = vld [vmem:[%s3064_s0 + $0x128] sm:$0xff]  }
   0x8   :  { %1820 = vmatprep.subr.bf16.mxu0 %v1978_v2  ;;  %1962 = vmatprep.subr.bf16.mxu1 %v1978_v2  ;;  %v1991_v20 = vld [vmem:[%s3064_s0 + $0x38] sm:$0xff]   ;;  %v1992_v21 = vld [vmem:[%s3064_s0 + $0x40] sm:$0xff]   ;;  %v2022_v23 = vld [vmem:[%s3064_s0 + $0x130] sm:$0xff]  }
   0x9   :  { %1896 = vmatprep.mubr.bf16.mxu1 %v2016_v13  ;;  %v1993_v24 = vld [vmem:[%s3064_s0 + $0x48] sm:$0xff]   ;;  %v1994_v25 = vld [vmem:[%s3064_s0 + $0x50] sm:$0xff]   ;;  %v2023_v26 = vld [vmem:[%s3064_s0 + $0x138] sm:$0xff]  }
   0xa   :  { %v2024_v27 = vld [vmem:[%s3064_s0 + $0x140] sm:$0xff]   ;;  %v1995_v28 = vld [vmem:[%s3064_s0 + $0x58] sm:$0xff]   ;;  %v2025_v30 = vld [vmem:[%s3064_s0 + $0x148] sm:$0xff]  }
   0xb   :  { %1821 = vmatpush3.bf16.msra.mxu0 %v1978_v2  ;;  %1970 = vmatpush3.bf16.msra.mxu1 %v1978_v2  ;;  %v1996_v29 = vld [vmem:[%s3064_s0 + $0x60] sm:$0xff]   ;;  %v2026_v31 = vld [vmem:[%s3064_s0 + $0x150] sm:$0xff]   ;;  %v1997_v32 = vld [vmem:[%s3064_s0 + $0x68] sm:$0xff]  }
   0xc   :  { %1822 = vmatprep.subr.bf16.mxu0 %v1979_v3  ;;  %1963 = vmatprep.subr.bf16.mxu1 %v1979_v3  ;;  %v1998_v33 = vld [vmem:[%s3064_s0 + $0x70] sm:$0xff]   ;;  %v2027_v34 = vld [vmem:[%s3064_s0 + $0x158] sm:$0xff]   ;;  %v2028_v35 = vld [vmem:[%s3064_s0 + $0x160] sm:$0xff]  }
   0xd   :  { %v1999_v36 = vld [vmem:[%s3064_s0 + $0x78] sm:$0xff]   ;;  %v2000_v37 = vld [vmem:[%s3064_s0 + $0x80] sm:$0xff]   ;;  %v2029_v38 = vld [vmem:[%s3064_s0 + $0x168] sm:$0xff]  }
   0xe   :  { %v2030_v39 = vld [vmem:[%s3064_s0 + $0x170] sm:$0xff]   ;;  %v2001_v40 = vld [vmem:[%s3064_s0 + $0x88] sm:$0xff]   ;;  %v2031_v42 = vld [vmem:[%s3064_s0 + $0x178] sm:$0xff]  }
   0xf   :  { %1823 = vmatpush3.bf16.msra.mxu0 %v1979_v3  ;;  %1971 = vmatpush3.bf16.msra.mxu1 %v1979_v3  ;;  %v2002_v41 = vld [vmem:[%s3064_s0 + $0x90] sm:$0xff]   ;;  %v2032_v43 = vld [vmem:[%s3064_s0 + $0x180] sm:$0xff]   ;;  %v2003_v44 = vld [vmem:[%s3064_s0 + $0x98] sm:$0xff]  }
  0x10   :  { %1824 = vmatprep.subr.bf16.mxu0 %v1980_v5  ;;  %1964 = vmatprep.subr.bf16.mxu1 %v1980_v5  ;;  %v2004_v45 = vld [vmem:[%s3064_s0 + $0xa0] sm:$0xff]   ;;  %v2033_v46 = vld [vmem:[%s3064_s0 + $0x188] sm:$0xff]   ;;  %v2034_v47 = vld [vmem:[%s3064_s0 + $0x190] sm:$0xff]  }
  0x11   :  { %v2005_v48 = vld [vmem:[%s3064_s0 + $0xa8] sm:$0xff]   ;;  %v2006_v49 = vld [vmem:[%s3064_s0 + $0xb0] sm:$0xff]   ;;  %v2035_v50 = vld [vmem:[%s3064_s0 + $0x198] sm:$0xff]  }
  0x12   :  { %v2036_v51 = vld [vmem:[%s3064_s0 + $0x1a0] sm:$0xff]   ;;  %v2007_v52 = vld [vmem:[%s3064_s0 + $0xb8] sm:$0xff]   ;;  %v2037_v54 = vld [vmem:[%s3064_s0 + $0x1a8] sm:$0xff]  }
  0x13   :  { %1825 = vmatpush3.bf16.msra.mxu0 %v1980_v5  ;;  %1972 = vmatpush3.bf16.msra.mxu1 %v1980_v5  ;;  %v2008_v53 = vld [vmem:[%s3064_s0 + $0xc0] sm:$0xff]   ;;  %v2038_v55 = vld [vmem:[%s3064_s0 + $0x1b0] sm:$0xff]   ;;  %v2009_v56 = vld [vmem:[%s3064_s0 + $0xc8] sm:$0xff]  }
  0x14   :  { %1826 = vmatprep.subr.bf16.mxu0 %v1981_v6  ;;  %1965 = vmatprep.subr.bf16.mxu1 %v1981_v6  ;;  %v2010_v57 = vld [vmem:[%s3064_s0 + $0xd0] sm:$0xff]   ;;  %v2039_v58 = vld [vmem:[%s3064_s0 + $0x1b8] sm:$0xff]   ;;  %v2040_v59 = vld [vmem:[%s3064_s0 + $0x1c0] sm:$0xff]  }
  0x15   :  { %v2011_v60 = vld [vmem:[%s3064_s0 + $0xd8] sm:$0xff]   ;;  %v2012_v61 = vld [vmem:[%s3064_s0 + $0xe0] sm:$0xff]   ;;  %v2041_v62 = vld [vmem:[%s3064_s0 + $0x1c8] sm:$0xff]  }
  0x16   :  { %v2042_v63 = vld [vmem:[%s3064_s0 + $0x1d0] sm:$0xff]   ;;  %v2013_v0 = vld [vmem:[%s3064_s0 + $0xe8] sm:$0xff]   ;;  %v2043_v2 = vld [vmem:[%s3064_s0 + $0x1d8] sm:$0xff]  }
  0x17   :  { %1827 = vmatpush3.bf16.msra.mxu0 %v1981_v6  ;;  %1973 = vmatpush3.bf16.msra.mxu1 %v1981_v6  ;;  %v2014_v1 = vld [vmem:[%s3064_s0 + $0xf0] sm:$0xff]   ;;  %v2044_v3 = vld [vmem:[%s3064_s0 + $0x1e0] sm:$0xff]   ;;  %v2015_v4 = vld [vmem:[%s3064_s0 + $0xf8] sm:$0xff]  }
  0x18   :  { %1828 = vmatprep.subr.bf16.mxu0 %v1982_v7  ;;  %1966 = vmatprep.subr.bf16.mxu1 %v1982_v7  ;;  %v2045_v5 = vld [vmem:[%s3064_s0 + $0x1e8] sm:$0xff]   ;;  %v2046_v6 = vld [vmem:[%s3064_s0 + $0x1f0] sm:$0xff]  }
  0x1b   :  { %1829 = vmatpush3.bf16.msra.mxu0 %v1982_v7  ;;  %1974 = vmatpush3.bf16.msra.mxu1 %v1982_v7  ;;  %v2047_v7 = vld [vmem:[%s3064_s0 + $0x1f8] sm:$0xff]  }
  0x1c   :  { %1830 = vmatprep.subr.bf16.mxu0 %v1983_v8  ;;  %1967 = vmatprep.subr.bf16.mxu1 %v1983_v8 }
  0x1f   :  { %1831 = vmatpush3.bf16.msra.mxu0 %v1983_v8  ;;  %1975 = vmatpush3.bf16.msra.mxu1 %v1983_v8 }
  0x22   :  { %1833 = vmatmul.mubr.bf16.vlgmr.msra.gmra.mrb[0].mxu0 %v1985_v9  ;;  %1897 = vmatmul.mubr.bf16.vlgmr.msra.gmra.mrb[0].mxu1 %v2017_v14 }
  0x23   :  { %1836 = vmatprep.mubr.bf16.mxu0 %v1986_v10  ;;  %1900 = vmatprep.mubr.bf16.mxu1 %v2018_v15 }
  0x2a   :  { %1837 = vmatmul.mubr.bf16.gmra.mrb[4].mxu0 %v1987_v11  ;;  %1901 = vmatmul.mubr.bf16.gmra.mrb[4].mxu1 %v2019_v18 }
  0x2b   :  { %1840 = vmatprep.mubr.bf16.mxu0 %v1988_v12  ;;  %1904 = vmatprep.mubr.bf16.mxu1 %v2020_v19 }
  0x32   :  { %1841 = vmatmul.mubr.bf16.gmra.mrb[8].mxu0 %v1989_v16  ;;  %1905 = vmatmul.mubr.bf16.gmra.mrb[8].mxu1 %v2021_v22 }
  0x33   :  { %1844 = vmatprep.mubr.bf16.mxu0 %v1990_v17  ;;  %1908 = vmatprep.mubr.bf16.mxu1 %v2022_v23 }
  0x3a   :  { %1845 = vmatmul.mubr.bf16.gmra.mrb[12].mxu0 %v1991_v20  ;;  %1909 = vmatmul.mubr.bf16.gmra.mrb[12].mxu1 %v2023_v26 }
  0x3b   :  { %1848 = vmatprep.mubr.bf16.mxu0 %v1992_v21  ;;  %1912 = vmatprep.mubr.bf16.mxu1 %v2024_v27 }
  0x42   :  { %1849 = vmatmul.mubr.bf16.gmra.mrb[16].mxu0 %v1993_v24  ;;  %1913 = vmatmul.mubr.bf16.gmra.mrb[16].mxu1 %v2025_v30 }
  0x43   :  { %1852 = vmatprep.mubr.bf16.mxu0 %v1994_v25  ;;  %1916 = vmatprep.mubr.bf16.mxu1 %v2026_v31 }
  0x4a   :  { %1853 = vmatmul.mubr.bf16.gmra.mrb[20].mxu0 %v1995_v28  ;;  %1917 = vmatmul.mubr.bf16.gmra.mrb[20].mxu1 %v2027_v34 }
  0x4b   :  { %1856 = vmatprep.mubr.bf16.mxu0 %v1996_v29  ;;  %1920 = vmatprep.mubr.bf16.mxu1 %v2028_v35 }
  0x52   :  { %1857 = vmatmul.mubr.bf16.gmra.mrb[24].mxu0 %v1997_v32  ;;  %1921 = vmatmul.mubr.bf16.gmra.mrb[24].mxu1 %v2029_v38 }
  0x53   :  { %1860 = vmatprep.mubr.bf16.mxu0 %v1998_v33  ;;  %1924 = vmatprep.mubr.bf16.mxu1 %v2030_v39 }
  0x5a   :  { %1861 = vmatmul.mubr.bf16.gmra.mrb[28].mxu0 %v1999_v36  ;;  %1925 = vmatmul.mubr.bf16.gmra.mrb[28].mxu1 %v2031_v42 }
  0x5b   :  { %1864 = vmatprep.mubr.bf16.mxu0 %v2000_v37  ;;  %1928 = vmatprep.mubr.bf16.mxu1 %v2032_v43 }
  0x62   :  { %1865 = vmatmul.mubr.bf16.gmra.mrb[32].mxu0 %v2001_v40  ;;  %1929 = vmatmul.mubr.bf16.gmra.mrb[32].mxu1 %v2033_v46 }
  0x63   :  { %1868 = vmatprep.mubr.bf16.mxu0 %v2002_v41  ;;  %1932 = vmatprep.mubr.bf16.mxu1 %v2034_v47 }
  0x6a   :  { %1869 = vmatmul.mubr.bf16.gmra.mrb[36].mxu0 %v2003_v44  ;;  %1933 = vmatmul.mubr.bf16.gmra.mrb[36].mxu1 %v2035_v50 }
  0x6b   :  { %1872 = vmatprep.mubr.bf16.mxu0 %v2004_v45  ;;  %1936 = vmatprep.mubr.bf16.mxu1 %v2036_v51 }
  0x72   :  { %1873 = vmatmul.mubr.bf16.gmra.mrb[40].mxu0 %v2005_v48  ;;  %1937 = vmatmul.mubr.bf16.gmra.mrb[40].mxu1 %v2037_v54 }
  0x73   :  { %1876 = vmatprep.mubr.bf16.mxu0 %v2006_v49  ;;  %1940 = vmatprep.mubr.bf16.mxu1 %v2038_v55 }
  0x7a   :  { %1877 = vmatmul.mubr.bf16.gmra.mrb[44].mxu0 %v2007_v52  ;;  %1941 = vmatmul.mubr.bf16.gmra.mrb[44].mxu1 %v2039_v58 }
  0x7b   :  { %1880 = vmatprep.mubr.bf16.mxu0 %v2008_v53  ;;  %1944 = vmatprep.mubr.bf16.mxu1 %v2040_v59 }
  0x82   :  { %1881 = vmatmul.mubr.bf16.gmra.mrb[48].mxu0 %v2009_v56  ;;  %1945 = vmatmul.mubr.bf16.gmra.mrb[48].mxu1 %v2041_v62 }
  0x83   :  { %1884 = vmatprep.mubr.bf16.mxu0 %v2010_v57  ;;  %1948 = vmatprep.mubr.bf16.mxu1 %v2042_v63 }
  0x8a   :  { %1885 = vmatmul.mubr.bf16.gmra.mrb[52].mxu0 %v2011_v60  ;;  %1949 = vmatmul.mubr.bf16.gmra.mrb[52].mxu1 %v2043_v2 }
  0x8b   :  { %1888 = vmatprep.mubr.bf16.mxu0 %v2012_v61  ;;  %1952 = vmatprep.mubr.bf16.mxu1 %v2044_v3 }
  0x92   :  { %1889 = vmatmul.mubr.bf16.gmra.mrb[56].mxu0 %v2013_v0  ;;  %1953 = vmatmul.mubr.bf16.gmra.mrb[56].mxu1 %v2045_v5 }
  0x93   :  { %1892 = vmatprep.mubr.bf16.mxu0 %v2014_v1  ;;  %1956 = vmatprep.mubr.bf16.mxu1 %v2046_v6 }
  0x9a   :  { %1893 = vmatmul.mubr.bf16.gmra.mrb[60].mxu0 %v2015_v4  ;;  %1957 = vmatmul.mubr.bf16.gmra.mrb[60].mxu1 %v2047_v7 }
  0xf5   :  { %v1834_v8 = vpop.f32.mrb[0].mxu0  ;;  %v2304_v23 = vpop.f32.mrb[0].mxu1 }
  0xf6   :  { %1138 = vst [vmem:[%s3065_s2 + $0x10] sm:$0xff] %v1834_v8  ;;  %v625_v9 = vpop.f32.mrb[1].mxu0  ;;  %v1400_v15 = vmul.f32 %v1834_v8, %v1834_v8  ;;  %1202 = vst [vmem:[%s3065_s2 + $0x210] sm:$0xff] %v2304_v23  ;;  %v2313_v28 = vpop.f32.mrb[1].mxu1 }
  0xf7   :  { %1136 = vst [vmem:[%s3065_s2] sm:$0xff] %v625_v9  ;;  %v1835_v10 = vpop.f32.mrb[2].mxu0  ;;  %v1398_v12 = vmul.f32 %v625_v9, %v625_v9  ;;  %1200 = vst [vmem:[%s3065_s2 + $0x200] sm:$0xff] %v2313_v28  ;;  %v2322_v30 = vpop.f32.mrb[2].mxu1 }
  0xf8   :  { %1139 = vst [vmem:[%s3065_s2 + $0x18] sm:$0xff] %v1835_v10  ;;  %v628_v11 = vpop.f32.mrb[3].mxu0  ;;  %v1401_v18 = vmul.f32 %v1835_v10, %v1835_v10  ;;  %1203 = vst [vmem:[%s3065_s2 + $0x218] sm:$0xff] %v2322_v30  ;;  %v2331_v34 = vpop.f32.mrb[3].mxu1 }
  0xf9   :  { %1137 = vst [vmem:[%s3065_s2 + $0x8] sm:$0xff] %v628_v11  ;;  %v1264_v13 = vadd.f32 %v628_v11, %v625_v9  ;;  %v1399_v14 = vmul.f32 %v628_v11, %v628_v11  ;;  %1201 = vst [vmem:[%s3065_s2 + $0x208] sm:$0xff] %v2331_v34 }
  0xfb   :  { %v1265_v16 = vadd.f32 %v1834_v8, %v1264_v13  ;;  %v1526_v17 = vadd.f32 %v1399_v14, %v1398_v12 }
  0xfd   :  { %v1527_v19 = vadd.f32 %v1526_v17, %v1400_v15  ;;  %v1838_v20 = vpop.f32.mrb[4].mxu0  ;;  %v1266_v21 = vadd.f32 %v1835_v10, %v1265_v16  ;;  %v2340_v43 = vpop.f32.mrb[4].mxu1 }
  0xfe   :  { %1142 = vst [vmem:[%s3065_s2 + $0x30] sm:$0xff] %v1838_v20  ;;  %v641_v22 = vpop.f32.mrb[5].mxu0  ;;  %v1404_v35 = vmul.f32 %v1838_v20, %v1838_v20  ;;  %1206 = vst [vmem:[%s3065_s2 + $0x230] sm:$0xff] %v2340_v43  ;;  %v2349_v48 = vpop.f32.mrb[5].mxu1 }
  0xff   :  { %1140 = vst [vmem:[%s3065_s2 + $0x20] sm:$0xff] %v641_v22  ;;  %v1267_v24 = vadd.f32 %v1266_v21, %v641_v22  ;;  %v1402_v25 = vmul.f32 %v641_v22, %v641_v22  ;;  %v1528_v26 = vadd.f32 %v1527_v19, %v1401_v18  ;;  %v1839_v27 = vpop.f32.mrb[6].mxu0  ;;  %1204 = vst [vmem:[%s3065_s2 + $0x220] sm:$0xff] %v2349_v48  ;;  %v2358_v50 = vpop.f32.mrb[6].mxu1 }
 0x100   :  { %1143 = vst [vmem:[%s3065_s2 + $0x38] sm:$0xff] %v1839_v27  ;;  %v644_v29 = vpop.f32.mrb[7].mxu0  ;;  %v1405_v38 = vmul.f32 %v1839_v27, %v1839_v27  ;;  %1207 = vst [vmem:[%s3065_s2 + $0x238] sm:$0xff] %v2358_v50  ;;  %v2367_v54 = vpop.f32.mrb[7].mxu1 }
 0x101   :  { %v1529_v31 = vadd.f32 %v1528_v26, %v1402_v25  ;;  %1141 = vst [vmem:[%s3065_s2 + $0x28] sm:$0xff] %v644_v29  ;;  %v1268_v32 = vadd.f32 %v1267_v24, %v644_v29  ;;  %v1403_v33 = vmul.f32 %v644_v29, %v644_v29  ;;  %1205 = vst [vmem:[%s3065_s2 + $0x228] sm:$0xff] %v2367_v54 }
 0x103   :  { %v1269_v36 = vadd.f32 %v1838_v20, %v1268_v32  ;;  %v1530_v37 = vadd.f32 %v1529_v31, %v1403_v33 }
 0x105   :  { %v1531_v39 = vadd.f32 %v1530_v37, %v1404_v35  ;;  %v1842_v40 = vpop.f32.mrb[8].mxu0  ;;  %v1270_v41 = vadd.f32 %v1839_v27, %v1269_v36  ;;  %v2376_v63 = vpop.f32.mrb[8].mxu1 }
 0x106   :  { %1146 = vst [vmem:[%s3065_s2 + $0x50] sm:$0xff] %v1842_v40  ;;  %v657_v42 = vpop.f32.mrb[9].mxu0  ;;  %v1408_v55 = vmul.f32 %v1842_v40, %v1842_v40  ;;  %1210 = vst [vmem:[%s3065_s2 + $0x250] sm:$0xff] %v2376_v63  ;;  %v2385_v4 = vpop.f32.mrb[9].mxu1 }
 0x107   :  { %1144 = vst [vmem:[%s3065_s2 + $0x40] sm:$0xff] %v657_v42  ;;  %v1271_v44 = vadd.f32 %v1270_v41, %v657_v42  ;;  %v1406_v45 = vmul.f32 %v657_v42, %v657_v42  ;;  %v1532_v46 = vadd.f32 %v1531_v39, %v1405_v38  ;;  %v1843_v47 = vpop.f32.mrb[10].mxu0  ;;  %1208 = vst [vmem:[%s3065_s2 + $0x240] sm:$0xff] %v2385_v4  ;;  %v2394_v6 = vpop.f32.mrb[10].mxu1 }
 0x108   :  { %1147 = vst [vmem:[%s3065_s2 + $0x58] sm:$0xff] %v1843_v47  ;;  %v660_v49 = vpop.f32.mrb[11].mxu0  ;;  %v1409_v58 = vmul.f32 %v1843_v47, %v1843_v47  ;;  %1211 = vst [vmem:[%s3065_s2 + $0x258] sm:$0xff] %v2394_v6  ;;  %v2403_v10 = vpop.f32.mrb[11].mxu1 }
 0x109   :  { %v1533_v51 = vadd.f32 %v1532_v46, %v1406_v45  ;;  %1145 = vst [vmem:[%s3065_s2 + $0x48] sm:$0xff] %v660_v49  ;;  %v1272_v52 = vadd.f32 %v1271_v44, %v660_v49  ;;  %v1407_v53 = vmul.f32 %v660_v49, %v660_v49  ;;  %1209 = vst [vmem:[%s3065_s2 + $0x248] sm:$0xff] %v2403_v10 }
 0x10b   :  { %v1273_v56 = vadd.f32 %v1842_v40, %v1272_v52  ;;  %v1534_v57 = vadd.f32 %v1533_v51, %v1407_v53 }
 0x10d   :  { %v1535_v59 = vadd.f32 %v1534_v57, %v1408_v55  ;;  %v1846_v60 = vpop.f32.mrb[12].mxu0  ;;  %v1274_v61 = vadd.f32 %v1843_v47, %v1273_v56  ;;  %v2412_v19 = vpop.f32.mrb[12].mxu1 }
 0x10e   :  { %1150 = vst [vmem:[%s3065_s2 + $0x70] sm:$0xff] %v1846_v60  ;;  %v673_v62 = vpop.f32.mrb[13].mxu0  ;;  %v1412_v11 = vmul.f32 %v1846_v60, %v1846_v60  ;;  %1214 = vst [vmem:[%s3065_s2 + $0x270] sm:$0xff] %v2412_v19  ;;  %v2421_v25 = vpop.f32.mrb[13].mxu1 }
 0x10f   :  { %1148 = vst [vmem:[%s3065_s2 + $0x60] sm:$0xff] %v673_v62  ;;  %v1275_v0 = vadd.f32 %v1274_v61, %v673_v62  ;;  %v1410_v1 = vmul.f32 %v673_v62, %v673_v62  ;;  %v1536_v2 = vadd.f32 %v1535_v59, %v1409_v58  ;;  %v1847_v3 = vpop.f32.mrb[14].mxu0  ;;  %1212 = vst [vmem:[%s3065_s2 + $0x260] sm:$0xff] %v2421_v25  ;;  %v2430_v27 = vpop.f32.mrb[14].mxu1 }
 0x110   :  { %1151 = vst [vmem:[%s3065_s2 + $0x78] sm:$0xff] %v1847_v3  ;;  %v676_v5 = vpop.f32.mrb[15].mxu0  ;;  %v1413_v14 = vmul.f32 %v1847_v3, %v1847_v3  ;;  %1215 = vst [vmem:[%s3065_s2 + $0x278] sm:$0xff] %v2430_v27  ;;  %v2439_v33 = vpop.f32.mrb[15].mxu1 }
 0x111   :  { %v1537_v7 = vadd.f32 %v1536_v2, %v1410_v1  ;;  %1149 = vst [vmem:[%s3065_s2 + $0x68] sm:$0xff] %v676_v5  ;;  %v1276_v8 = vadd.f32 %v1275_v0, %v676_v5  ;;  %v1411_v9 = vmul.f32 %v676_v5, %v676_v5  ;;  %1213 = vst [vmem:[%s3065_s2 + $0x268] sm:$0xff] %v2439_v33 }
 0x113   :  { %v1277_v12 = vadd.f32 %v1846_v60, %v1276_v8  ;;  %v1538_v13 = vadd.f32 %v1537_v7, %v1411_v9 }
 0x115   :  { %v1539_v15 = vadd.f32 %v1538_v13, %v1412_v11  ;;  %v1850_v16 = vpop.f32.mrb[16].mxu0  ;;  %v1278_v17 = vadd.f32 %v1847_v3, %v1277_v12  ;;  %v2448_v44 = vpop.f32.mrb[16].mxu1 }
 0x116   :  { %1154 = vst [vmem:[%s3065_s2 + $0x90] sm:$0xff] %v1850_v16  ;;  %v689_v18 = vpop.f32.mrb[17].mxu0  ;;  %v1416_v35 = vmul.f32 %v1850_v16, %v1850_v16  ;;  %1218 = vst [vmem:[%s3065_s2 + $0x290] sm:$0xff] %v2448_v44  ;;  %v2457_v51 = vpop.f32.mrb[17].mxu1 }
 0x117   :  { %1152 = vst [vmem:[%s3065_s2 + $0x80] sm:$0xff] %v689_v18  ;;  %v1279_v20 = vadd.f32 %v1278_v17, %v689_v18  ;;  %v1414_v21 = vmul.f32 %v689_v18, %v689_v18  ;;  %v1540_v22 = vadd.f32 %v1539_v15, %v1413_v14  ;;  %v1851_v24 = vpop.f32.mrb[18].mxu0  ;;  %1216 = vst [vmem:[%s3065_s2 + $0x280] sm:$0xff] %v2457_v51  ;;  %v2466_v53 = vpop.f32.mrb[18].mxu1 }
 0x118   :  { %1155 = vst [vmem:[%s3065_s2 + $0x98] sm:$0xff] %v1851_v24  ;;  %v692_v26 = vpop.f32.mrb[19].mxu0  ;;  %v1417_v38 = vmul.f32 %v1851_v24, %v1851_v24  ;;  %1219 = vst [vmem:[%s3065_s2 + $0x298] sm:$0xff] %v2466_v53  ;;  %v2475_v58 = vpop.f32.mrb[19].mxu1 }
 0x119   :  { %v1541_v29 = vadd.f32 %v1540_v22, %v1414_v21  ;;  %1153 = vst [vmem:[%s3065_s2 + $0x88] sm:$0xff] %v692_v26  ;;  %v1280_v31 = vadd.f32 %v1279_v20, %v692_v26  ;;  %v1415_v32 = vmul.f32 %v692_v26, %v692_v26  ;;  %1217 = vst [vmem:[%s3065_s2 + $0x288] sm:$0xff] %v2475_v58 }
 0x11b   :  { %v1281_v36 = vadd.f32 %v1850_v16, %v1280_v31  ;;  %v1542_v37 = vadd.f32 %v1541_v29, %v1415_v32 }
 0x11d   :  { %v1543_v39 = vadd.f32 %v1542_v37, %v1416_v35  ;;  %v1854_v40 = vpop.f32.mrb[20].mxu0  ;;  %v1282_v41 = vadd.f32 %v1851_v24, %v1281_v36  ;;  %v2484_v5 = vpop.f32.mrb[20].mxu1 }
 0x11e   :  { %1158 = vst [vmem:[%s3065_s2 + $0xb0] sm:$0xff] %v1854_v40  ;;  %v705_v42 = vpop.f32.mrb[21].mxu0  ;;  %v1420_v59 = vmul.f32 %v1854_v40, %v1854_v40  ;;  %1222 = vst [vmem:[%s3065_s2 + $0x2b0] sm:$0xff] %v2484_v5  ;;  %v2493_v12 = vpop.f32.mrb[21].mxu1 }
 0x11f   :  { %1156 = vst [vmem:[%s3065_s2 + $0xa0] sm:$0xff] %v705_v42  ;;  %v1283_v45 = vadd.f32 %v1282_v41, %v705_v42  ;;  %v1418_v46 = vmul.f32 %v705_v42, %v705_v42  ;;  %v1544_v47 = vadd.f32 %v1543_v39, %v1417_v38  ;;  %v1855_v49 = vpop.f32.mrb[22].mxu0  ;;  %1220 = vst [vmem:[%s3065_s2 + $0x2a0] sm:$0xff] %v2493_v12  ;;  %v2502_v14 = vpop.f32.mrb[22].mxu1 }
 0x120   :  { %1159 = vst [vmem:[%s3065_s2 + $0xb8] sm:$0xff] %v1855_v49  ;;  %v708_v52 = vpop.f32.mrb[23].mxu0  ;;  %v1421_v62 = vmul.f32 %v1855_v49, %v1855_v49  ;;  %1223 = vst [vmem:[%s3065_s2 + $0x2b8] sm:$0xff] %v2502_v14  ;;  %v2511_v18 = vpop.f32.mrb[23].mxu1 }
 0x121   :  { %v1545_v55 = vadd.f32 %v1544_v47, %v1418_v46  ;;  %1157 = vst [vmem:[%s3065_s2 + $0xa8] sm:$0xff] %v708_v52  ;;  %v1284_v56 = vadd.f32 %v1283_v45, %v708_v52  ;;  %v1419_v57 = vmul.f32 %v708_v52, %v708_v52  ;;  %1221 = vst [vmem:[%s3065_s2 + $0x2a8] sm:$0xff] %v2511_v18 }
 0x123   :  { %v1285_v60 = vadd.f32 %v1854_v40, %v1284_v56  ;;  %v1546_v61 = vadd.f32 %v1545_v55, %v1419_v57 }
 0x125   :  { %v1547_v0 = vadd.f32 %v1546_v61, %v1420_v59  ;;  %v1858_v1 = vpop.f32.mrb[24].mxu0  ;;  %v1286_v2 = vadd.f32 %v1855_v49, %v1285_v60  ;;  %v2520_v35 = vpop.f32.mrb[24].mxu1 }
 0x126   :  { %1162 = vst [vmem:[%s3065_s2 + $0xd0] sm:$0xff] %v1858_v1  ;;  %v721_v3 = vpop.f32.mrb[25].mxu0  ;;  %v1424_v20 = vmul.f32 %v1858_v1, %v1858_v1  ;;  %1226 = vst [vmem:[%s3065_s2 + $0x2d0] sm:$0xff] %v2520_v35  ;;  %v2529_v40 = vpop.f32.mrb[25].mxu1 }
 0x127   :  { %1160 = vst [vmem:[%s3065_s2 + $0xc0] sm:$0xff] %v721_v3  ;;  %v1287_v7 = vadd.f32 %v1286_v2, %v721_v3  ;;  %v1422_v8 = vmul.f32 %v721_v3, %v721_v3  ;;  %v1548_v9 = vadd.f32 %v1547_v0, %v1421_v62  ;;  %v1859_v11 = vpop.f32.mrb[26].mxu0  ;;  %1224 = vst [vmem:[%s3065_s2 + $0x2c0] sm:$0xff] %v2529_v40  ;;  %v2538_v42 = vpop.f32.mrb[26].mxu1 }
 0x128   :  { %1163 = vst [vmem:[%s3065_s2 + $0xd8] sm:$0xff] %v1859_v11  ;;  %v724_v13 = vpop.f32.mrb[27].mxu0  ;;  %v1425_v24 = vmul.f32 %v1859_v11, %v1859_v11  ;;  %1227 = vst [vmem:[%s3065_s2 + $0x2d8] sm:$0xff] %v2538_v42  ;;  %v2547_v49 = vpop.f32.mrb[27].mxu1 }
 0x129   :  { %v1549_v15 = vadd.f32 %v1548_v9, %v1422_v8  ;;  %1161 = vst [vmem:[%s3065_s2 + $0xc8] sm:$0xff] %v724_v13  ;;  %v1288_v16 = vadd.f32 %v1287_v7, %v724_v13  ;;  %v1423_v17 = vmul.f32 %v724_v13, %v724_v13  ;;  %1225 = vst [vmem:[%s3065_s2 + $0x2c8] sm:$0xff] %v2547_v49 }
 0x12b   :  { %v1289_v21 = vadd.f32 %v1858_v1, %v1288_v16  ;;  %v1550_v22 = vadd.f32 %v1549_v15, %v1423_v17 }
 0x12d   :  { %v1551_v26 = vadd.f32 %v1550_v22, %v1424_v20  ;;  %v1862_v29 = vpop.f32.mrb[28].mxu0  ;;  %v1290_v31 = vadd.f32 %v1859_v11, %v1289_v21  ;;  %v2556_v0 = vpop.f32.mrb[28].mxu1 }
 0x12e   :  { %1166 = vst [vmem:[%s3065_s2 + $0xf0] sm:$0xff] %v1862_v29  ;;  %v737_v32 = vpop.f32.mrb[29].mxu0  ;;  %v1428_v52 = vmul.f32 %v1862_v29, %v1862_v29  ;;  %1230 = vst [vmem:[%s3065_s2 + $0x2f0] sm:$0xff] %v2556_v0  ;;  %v2565_v8 = vpop.f32.mrb[29].mxu1 }
 0x12f   :  { %1164 = vst [vmem:[%s3065_s2 + $0xe0] sm:$0xff] %v737_v32  ;;  %v1291_v36 = vadd.f32 %v1290_v31, %v737_v32  ;;  %v1426_v37 = vmul.f32 %v737_v32, %v737_v32  ;;  %v1552_v38 = vadd.f32 %v1551_v26, %v1425_v24  ;;  %v1863_v39 = vpop.f32.mrb[30].mxu0  ;;  %1228 = vst [vmem:[%s3065_s2 + $0x2e0] sm:$0xff] %v2565_v8  ;;  %v2574_v11 = vpop.f32.mrb[30].mxu1 }
 0x130   :  { %1167 = vst [vmem:[%s3065_s2 + $0xf8] sm:$0xff] %v1863_v39  ;;  %v740_v41 = vpop.f32.mrb[31].mxu0  ;;  %v1429_v57 = vmul.f32 %v1863_v39, %v1863_v39  ;;  %1231 = vst [vmem:[%s3065_s2 + $0x2f8] sm:$0xff] %v2574_v11  ;;  %v2583_v17 = vpop.f32.mrb[31].mxu1 }
 0x131   :  { %v1553_v45 = vadd.f32 %v1552_v38, %v1426_v37  ;;  %1165 = vst [vmem:[%s3065_s2 + $0xe8] sm:$0xff] %v740_v41  ;;  %v1292_v46 = vadd.f32 %v1291_v36, %v740_v41  ;;  %v1427_v47 = vmul.f32 %v740_v41, %v740_v41  ;;  %1229 = vst [vmem:[%s3065_s2 + $0x2e8] sm:$0xff] %v2583_v17 }
 0x133   :  { %v1293_v55 = vadd.f32 %v1862_v29, %v1292_v46  ;;  %v1554_v56 = vadd.f32 %v1553_v45, %v1427_v47 }
 0x135   :  { %v1555_v59 = vadd.f32 %v1554_v56, %v1428_v52  ;;  %v1866_v60 = vpop.f32.mrb[32].mxu0  ;;  %v1294_v61 = vadd.f32 %v1863_v39, %v1293_v55  ;;  %v2592_v36 = vpop.f32.mrb[32].mxu1 }
 0x136   :  { %1170 = vst [vmem:[%s3065_s2 + $0x110] sm:$0xff] %v1866_v60  ;;  %v753_v62 = vpop.f32.mrb[33].mxu0  ;;  %v1432_v20 = vmul.f32 %v1866_v60, %v1866_v60  ;;  %1234 = vst [vmem:[%s3065_s2 + $0x310] sm:$0xff] %v2592_v36  ;;  %v2601_v45 = vpop.f32.mrb[33].mxu1 }
 0x137   :  { %1168 = vst [vmem:[%s3065_s2 + $0x100] sm:$0xff] %v753_v62  ;;  %v1295_v1 = vadd.f32 %v1294_v61, %v753_v62  ;;  %v1430_v2 = vmul.f32 %v753_v62, %v753_v62  ;;  %v1556_v3 = vadd.f32 %v1555_v59, %v1429_v57  ;;  %v1867_v7 = vpop.f32.mrb[34].mxu0  ;;  %1232 = vst [vmem:[%s3065_s2 + $0x300] sm:$0xff] %v2601_v45  ;;  %v2610_v47 = vpop.f32.mrb[34].mxu1 }
 0x138   :  { %1171 = vst [vmem:[%s3065_s2 + $0x118] sm:$0xff] %v1867_v7  ;;  %v756_v9 = vpop.f32.mrb[35].mxu0  ;;  %v1433_v24 = vmul.f32 %v1867_v7, %v1867_v7  ;;  %1235 = vst [vmem:[%s3065_s2 + $0x318] sm:$0xff] %v2610_v47  ;;  %v2619_v57 = vpop.f32.mrb[35].mxu1 }
 0x139   :  { %v1557_v13 = vadd.f32 %v1556_v3, %v1430_v2  ;;  %1169 = vst [vmem:[%s3065_s2 + $0x108] sm:$0xff] %v756_v9  ;;  %v1296_v15 = vadd.f32 %v1295_v1, %v756_v9  ;;  %v1431_v16 = vmul.f32 %v756_v9, %v756_v9  ;;  %1233 = vst [vmem:[%s3065_s2 + $0x308] sm:$0xff] %v2619_v57 }
 0x13b   :  { %v1297_v21 = vadd.f32 %v1866_v60, %v1296_v15  ;;  %v1558_v22 = vadd.f32 %v1557_v13, %v1431_v16 }
 0x13d   :  { %v1559_v26 = vadd.f32 %v1558_v22, %v1432_v20  ;;  %v1870_v29 = vpop.f32.mrb[36].mxu0  ;;  %v1298_v31 = vadd.f32 %v1867_v7, %v1297_v21  ;;  %v2628_v9 = vpop.f32.mrb[36].mxu1 }
 0x13e   :  { %1174 = vst [vmem:[%s3065_s2 + $0x130] sm:$0xff] %v1870_v29  ;;  %v769_v32 = vpop.f32.mrb[37].mxu0  ;;  %v1436_v59 = vmul.f32 %v1870_v29, %v1870_v29  ;;  %1238 = vst [vmem:[%s3065_s2 + $0x330] sm:$0xff] %v2628_v9  ;;  %v2637_v21 = vpop.f32.mrb[37].mxu1 }
 0x13f   :  { %1172 = vst [vmem:[%s3065_s2 + $0x120] sm:$0xff] %v769_v32  ;;  %v1299_v37 = vadd.f32 %v1298_v31, %v769_v32  ;;  %v1434_v38 = vmul.f32 %v769_v32, %v769_v32  ;;  %v1560_v39 = vadd.f32 %v1559_v26, %v1433_v24  ;;  %v1871_v41 = vpop.f32.mrb[38].mxu0  ;;  %1236 = vst [vmem:[%s3065_s2 + $0x320] sm:$0xff] %v2637_v21  ;;  %v2646_v24 = vpop.f32.mrb[38].mxu1 }
 0x140   :  { %1175 = vst [vmem:[%s3065_s2 + $0x138] sm:$0xff] %v1871_v41  ;;  %v772_v46 = vpop.f32.mrb[39].mxu0  ;;  %v1437_v62 = vmul.f32 %v1871_v41, %v1871_v41  ;;  %1239 = vst [vmem:[%s3065_s2 + $0x338] sm:$0xff] %v2646_v24  ;;  %v2655_v32 = vpop.f32.mrb[39].mxu1 }
 0x141   :  { %v1561_v52 = vadd.f32 %v1560_v39, %v1434_v38  ;;  %1173 = vst [vmem:[%s3065_s2 + $0x128] sm:$0xff] %v772_v46  ;;  %v1300_v55 = vadd.f32 %v1299_v37, %v772_v46  ;;  %v1435_v56 = vmul.f32 %v772_v46, %v772_v46  ;;  %1237 = vst [vmem:[%s3065_s2 + $0x328] sm:$0xff] %v2655_v32 }
 0x143   :  { %v1301_v60 = vadd.f32 %v1870_v29, %v1300_v55  ;;  %v1562_v61 = vadd.f32 %v1561_v52, %v1435_v56 }
 0x145   :  { %v1563_v1 = vadd.f32 %v1562_v61, %v1436_v59  ;;  %v1874_v2 = vpop.f32.mrb[40].mxu0  ;;  %v1302_v3 = vadd.f32 %v1871_v41, %v1301_v60  ;;  %v2664_v59 = vpop.f32.mrb[40].mxu1 }
 0x146   :  { %1178 = vst [vmem:[%s3065_s2 + $0x150] sm:$0xff] %v1874_v2  ;;  %v785_v7 = vpop.f32.mrb[41].mxu0  ;;  %v1440_v37 = vmul.f32 %v1874_v2, %v1874_v2  ;;  %1242 = vst [vmem:[%s3065_s2 + $0x350] sm:$0xff] %v2664_v59 }
 0x147   :  { %1176 = vst [vmem:[%s3065_s2 + $0x140] sm:$0xff] %v785_v7  ;;  %v1303_v13 = vadd.f32 %v1302_v3, %v785_v7  ;;  %v1438_v15 = vmul.f32 %v785_v7, %v785_v7  ;;  %v1564_v16 = vadd.f32 %v1563_v1, %v1437_v62  ;;  %v1875_v20 = vpop.f32.mrb[42].mxu0 }
 0x148   :  { %1179 = vst [vmem:[%s3065_s2 + $0x158] sm:$0xff] %v1875_v20  ;;  %v788_v22 = vpop.f32.mrb[43].mxu0  ;;  %v1441_v41 = vmul.f32 %v1875_v20, %v1875_v20 }
 0x149   :  { %v1565_v26 = vadd.f32 %v1564_v16, %v1438_v15  ;;  %1177 = vst [vmem:[%s3065_s2 + $0x148] sm:$0xff] %v788_v22  ;;  %v1304_v29 = vadd.f32 %v1303_v13, %v788_v22  ;;  %v1439_v31 = vmul.f32 %v788_v22, %v788_v22 }
 0x14b   :  { %v1305_v38 = vadd.f32 %v1874_v2, %v1304_v29  ;;  %v1566_v39 = vadd.f32 %v1565_v26, %v1439_v31  ;;  %v2673_v2 = vpop.f32.mrb[41].mxu1 }
 0x14c   :  { %1240 = vst [vmem:[%s3065_s2 + $0x340] sm:$0xff] %v2673_v2  ;;  %v2682_v7 = vpop.f32.mrb[42].mxu1 }
 0x14d   :  { %v1567_v46 = vadd.f32 %v1566_v39, %v1440_v37  ;;  %v1878_v52 = vpop.f32.mrb[44].mxu0  ;;  %v1306_v55 = vadd.f32 %v1875_v20, %v1305_v38  ;;  %1243 = vst [vmem:[%s3065_s2 + $0x358] sm:$0xff] %v2682_v7  ;;  %v2691_v20 = vpop.f32.mrb[43].mxu1 }
 0x14e   :  { %1182 = vst [vmem:[%s3065_s2 + $0x170] sm:$0xff] %v1878_v52  ;;  %v801_v56 = vpop.f32.mrb[45].mxu0  ;;  %1241 = vst [vmem:[%s3065_s2 + $0x348] sm:$0xff] %v2691_v20  ;;  %v1444_v22 = vmul.f32 %v1878_v52, %v1878_v52 }
 0x14f   :  { %1180 = vst [vmem:[%s3065_s2 + $0x160] sm:$0xff] %v801_v56  ;;  %v1307_v60 = vadd.f32 %v1306_v55, %v801_v56  ;;  %v1442_v61 = vmul.f32 %v801_v56, %v801_v56  ;;  %v1568_v62 = vadd.f32 %v1567_v46, %v1441_v41  ;;  %v1879_v1 = vpop.f32.mrb[46].mxu0  ;;  %v2700_v46 = vpop.f32.mrb[44].mxu1 }
 0x150   :  { %1183 = vst [vmem:[%s3065_s2 + $0x178] sm:$0xff] %v1879_v1  ;;  %v804_v3 = vpop.f32.mrb[47].mxu0  ;;  %v1445_v31 = vmul.f32 %v1879_v1, %v1879_v1  ;;  %1246 = vst [vmem:[%s3065_s2 + $0x370] sm:$0xff] %v2700_v46 }
 0x151   :  { %v1569_v13 = vadd.f32 %v1568_v62, %v1442_v61  ;;  %1181 = vst [vmem:[%s3065_s2 + $0x168] sm:$0xff] %v804_v3  ;;  %v1308_v15 = vadd.f32 %v1307_v60, %v804_v3  ;;  %v1443_v16 = vmul.f32 %v804_v3, %v804_v3  ;;  %v2709_v61 = vpop.f32.mrb[45].mxu1 }
 0x152   :  { %1244 = vst [vmem:[%s3065_s2 + $0x360] sm:$0xff] %v2709_v61 }
 0x153   :  { %v1309_v26 = vadd.f32 %v1878_v52, %v1308_v15  ;;  %v1570_v29 = vadd.f32 %v1569_v13, %v1443_v16 }
 0x155   :  { %v1571_v37 = vadd.f32 %v1570_v29, %v1444_v22  ;;  %v1882_v38 = vpop.f32.mrb[48].mxu0  ;;  %v1310_v39 = vadd.f32 %v1879_v1, %v1309_v26  ;;  %v2718_v1 = vpop.f32.mrb[46].mxu1 }
 0x156   :  { %1186 = vst [vmem:[%s3065_s2 + $0x190] sm:$0xff] %v1882_v38  ;;  %v817_v41 = vpop.f32.mrb[49].mxu0  ;;  %3094 = vst [vmem:[#allocation2_spill] sm:$0xff] %v2718_v1  ;;  %v2727_v16 = vpop.f32.mrb[47].mxu1  ;;  %v1448_v22 = vmul.f32 %v1882_v38, %v1882_v38 }
 0x157   :  { %1184 = vst [vmem:[%s3065_s2 + $0x180] sm:$0xff] %v817_v41  ;;  %v1311_v55 = vadd.f32 %v1310_v39, %v817_v41  ;;  %v1446_v56 = vmul.f32 %v817_v41, %v817_v41  ;;  %v1572_v60 = vadd.f32 %v1571_v37, %v1445_v31  ;;  %v1883_v52 = vpop.f32.mrb[50].mxu0  ;;  %1247 = vst [vmem:[%s3065_s2 + $0x378] sm:$0xff] %v2718_v1 }
 0x158   :  { %1187 = vst [vmem:[%s3065_s2 + $0x198] sm:$0xff] %v1883_v52  ;;  %v820_v62 = vpop.f32.mrb[51].mxu0  ;;  %1245 = vst [vmem:[%s3065_s2 + $0x368] sm:$0xff] %v2727_v16  ;;  %v1449_v31 = vmul.f32 %v1883_v52, %v1883_v52 }
 0x159   :  { %v1573_v3 = vadd.f32 %v1572_v60, %v1446_v56  ;;  %1185 = vst [vmem:[%s3065_s2 + $0x188] sm:$0xff] %v820_v62  ;;  %v1312_v13 = vadd.f32 %v1311_v55, %v820_v62  ;;  %v1447_v15 = vmul.f32 %v820_v62, %v820_v62  ;;  %v2736_v56 = vpop.f32.mrb[48].mxu1 }
 0x15a   :  { %3095 = vst [vmem:[#allocation3_spill] sm:$0xff] %v2736_v56  ;;  %1250 = vst [vmem:[%s3065_s2 + $0x390] sm:$0xff] %v2736_v56 }
 0x15b   :  { %v1313_v26 = vadd.f32 %v1882_v38, %v1312_v13  ;;  %v1574_v29 = vadd.f32 %v1573_v3, %v1447_v15 }
 0x15d   :  { %v1575_v37 = vadd.f32 %v1574_v29, %v1448_v22  ;;  %v1886_v39 = vpop.f32.mrb[52].mxu0  ;;  %v1314_v41 = vadd.f32 %v1883_v52, %v1313_v26  ;;  %v2745_v52 = vpop.f32.mrb[49].mxu1 }
 0x15e   :  { %1190 = vst [vmem:[%s3065_s2 + $0x1b0] sm:$0xff] %v1886_v39  ;;  %v833_v55 = vpop.f32.mrb[53].mxu0  ;;  %3096 = vst [vmem:[#allocation4_spill] sm:$0xff] %v2745_v52  ;;  %v2754_v13 = vpop.f32.mrb[50].mxu1 }
 0x15f   :  { %1188 = vst [vmem:[%s3065_s2 + $0x1a0] sm:$0xff] %v833_v55  ;;  %v1315_v60 = vadd.f32 %v1314_v41, %v833_v55  ;;  %v1450_v62 = vmul.f32 %v833_v55, %v833_v55  ;;  %v1576_v1 = vadd.f32 %v1575_v37, %v1449_v31  ;;  %v1887_v38 = vpop.f32.mrb[54].mxu0  ;;  %1248 = vst [vmem:[%s3065_s2 + $0x380] sm:$0xff] %v2745_v52  ;;  %v2763_v29 = vpop.f32.mrb[51].mxu1 }
 0x160   :  { %1191 = vst [vmem:[%s3065_s2 + $0x1b8] sm:$0xff] %v1887_v38  ;;  %v836_v3 = vpop.f32.mrb[55].mxu0  ;;  %3097 = vst [vmem:[#allocation5_spill] sm:$0xff] %v2754_v13  ;;  %v1452_v31 = vmul.f32 %v1886_v39, %v1886_v39  ;;  %v1453_v41 = vmul.f32 %v1887_v38, %v1887_v38 }
 0x161   :  { %v1577_v15 = vadd.f32 %v1576_v1, %v1450_v62  ;;  %1189 = vst [vmem:[%s3065_s2 + $0x1a8] sm:$0xff] %v836_v3  ;;  %v1316_v22 = vadd.f32 %v1315_v60, %v836_v3  ;;  %v1451_v26 = vmul.f32 %v836_v3, %v836_v3  ;;  %1251 = vst [vmem:[%s3065_s2 + $0x398] sm:$0xff] %v2754_v13  ;;  %v2772_v13 = vpop.f32.mrb[52].mxu1 }
 0x162   :  { %3098 = vst [vmem:[#allocation6_spill] sm:$0xff] %v2763_v29  ;;  %1249 = vst [vmem:[%s3065_s2 + $0x388] sm:$0xff] %v2763_v29 }
 0x163   :  { %v1317_v1 = vadd.f32 %v1886_v39, %v1316_v22  ;;  %v1578_v37 = vadd.f32 %v1577_v15, %v1451_v26  ;;  %3099 = vst [vmem:[#allocation7_spill] sm:$0xff] %v2772_v13  ;;  %1254 = vst [vmem:[%s3065_s2 + $0x3b0] sm:$0xff] %v2772_v13 }
 0x165   :  { %v1579_v55 = vadd.f32 %v1578_v37, %v1452_v31  ;;  %v1890_v62 = vpop.f32.mrb[56].mxu0  ;;  %v1318_v60 = vadd.f32 %v1887_v38, %v1317_v1  ;;  %v2781_v38 = vpop.f32.mrb[53].mxu1 }
 0x166   :  { %1194 = vst [vmem:[%s3065_s2 + $0x1d0] sm:$0xff] %v1890_v62  ;;  %v849_v3 = vpop.f32.mrb[57].mxu0  ;;  %3100 = vst [vmem:[#allocation8_spill] sm:$0xff] %v2781_v38  ;;  %v2790_v22 = vpop.f32.mrb[54].mxu1 }
 0x167   :  { %1192 = vst [vmem:[%s3065_s2 + $0x1c0] sm:$0xff] %v849_v3  ;;  %v1319_v56 = vadd.f32 %v1318_v60, %v849_v3  ;;  %v1454_v29 = vmul.f32 %v849_v3, %v849_v3  ;;  %v1580_v52 = vadd.f32 %v1579_v55, %v1453_v41  ;;  %v1891_v39 = vpop.f32.mrb[58].mxu0  ;;  %1252 = vst [vmem:[%s3065_s2 + $0x3a0] sm:$0xff] %v2781_v38  ;;  %v2799_v37 = vpop.f32.mrb[55].mxu1 }
 0x168   :  { %1195 = vst [vmem:[%s3065_s2 + $0x1d8] sm:$0xff] %v1891_v39  ;;  %v852_v15 = vpop.f32.mrb[59].mxu0  ;;  %3101 = vst [vmem:[#allocation9_spill] sm:$0xff] %v2790_v22  ;;  %v1456_v41 = vmul.f32 %v1890_v62, %v1890_v62  ;;  %v1457_v55 = vmul.f32 %v1891_v39, %v1891_v39 }
 0x169   :  { %v1581_v26 = vadd.f32 %v1580_v52, %v1454_v29  ;;  %1193 = vst [vmem:[%s3065_s2 + $0x1c8] sm:$0xff] %v852_v15  ;;  %v1320_v31 = vadd.f32 %v1319_v56, %v852_v15  ;;  %v1455_v1 = vmul.f32 %v852_v15, %v852_v15  ;;  %1255 = vst [vmem:[%s3065_s2 + $0x3b8] sm:$0xff] %v2790_v22  ;;  %v2808_v22 = vpop.f32.mrb[56].mxu1 }
 0x16a   :  { %3102 = vst [vmem:[#allocation10_spill] sm:$0xff] %v2799_v37  ;;  %1253 = vst [vmem:[%s3065_s2 + $0x3a8] sm:$0xff] %v2799_v37 }
 0x16b   :  { %v1321_v52 = vadd.f32 %v1890_v62, %v1320_v31  ;;  %v1582_v29 = vadd.f32 %v1581_v26, %v1455_v1  ;;  %3103 = vst [vmem:[#allocation11_spill] sm:$0xff] %v2808_v22  ;;  %1258 = vst [vmem:[%s3065_s2 + $0x3d0] sm:$0xff] %v2808_v22 }
 0x16d   :  { %v1583_v60 = vadd.f32 %v1582_v29, %v1456_v41  ;;  %v1894_v3 = vpop.f32.mrb[60].mxu0  ;;  %v1322_v56 = vadd.f32 %v1891_v39, %v1321_v52  ;;  %v2817_v39 = vpop.f32.mrb[57].mxu1 }
 0x16e   :  { %1198 = vst [vmem:[%s3065_s2 + $0x1f0] sm:$0xff] %v1894_v3  ;;  %v865_v15 = vpop.f32.mrb[61].mxu0  ;;  %1256 = vst [vmem:[%s3065_s2 + $0x3c0] sm:$0xff] %v2817_v39  ;;  %v2826_v31 = vpop.f32.mrb[58].mxu1 }
 0x16f   :  { %1196 = vst [vmem:[%s3065_s2 + $0x1e0] sm:$0xff] %v865_v15  ;;  %v1323_v13 = vadd.f32 %v1322_v56, %v865_v15  ;;  %v1458_v37 = vmul.f32 %v865_v15, %v865_v15  ;;  %v1584_v38 = vadd.f32 %v1583_v60, %v1457_v55  ;;  %v1895_v62 = vpop.f32.mrb[62].mxu0  ;;  %3104 = vst [vmem:[#allocation12_spill] sm:$0xff] %v2826_v31  ;;  %v2835_v29 = vpop.f32.mrb[59].mxu1 }
 0x170   :  { %1199 = vst [vmem:[%s3065_s2 + $0x1f8] sm:$0xff] %v1895_v62  ;;  %v868_v26 = vpop.f32.mrb[63].mxu0  ;;  %1259 = vst [vmem:[%s3065_s2 + $0x3d8] sm:$0xff] %v2826_v31  ;;  %v1460_v55 = vmul.f32 %v1894_v3, %v1894_v3  ;;  %v1461_v60 = vmul.f32 %v1895_v62, %v1895_v62 }
 0x171   :  { %v1585_v1 = vadd.f32 %v1584_v38, %v1458_v37  ;;  %1197 = vst [vmem:[%s3065_s2 + $0x1e8] sm:$0xff] %v868_v26  ;;  %v1324_v41 = vadd.f32 %v1323_v13, %v868_v26  ;;  %v1459_v52 = vmul.f32 %v868_v26, %v868_v26  ;;  %3105 = vst [vmem:[#allocation13_spill] sm:$0xff] %v2835_v29  ;;  %v2843_v26 = vpop.f32.mrb[60].mxu1 }
 0x172   :  { %1257 = vst [vmem:[%s3065_s2 + $0x3c8] sm:$0xff] %v2835_v29  ;;  %v1462_v13 = vmul.f32 %v2313_v28, %v2313_v28  ;;  %1262 = vst [vmem:[%s3065_s2 + $0x3f0] sm:$0xff] %v2843_v26  ;;  %v2850_v29 = vpop.f32.mrb[61].mxu1 }
 0x173   :  { %v1325_v38 = vadd.f32 %v1894_v3, %v1324_v41  ;;  %v1586_v37 = vadd.f32 %v1585_v1, %v1459_v52  ;;  %1260 = vst [vmem:[%s3065_s2 + $0x3e0] sm:$0xff] %v2850_v29  ;;  %v2856_v3 = vpop.f32.mrb[62].mxu1 }
 0x174   :  { %3106 = vst [vmem:[#allocation14_spill] sm:$0xff] %v2856_v3  ;;  %1263 = vst [vmem:[%s3065_s2 + $0x3f8] sm:$0xff] %v2856_v3  ;;  %v2865_v41 = vpop.f32.mrb[63].mxu1  ;;  %v1467_v3 = vmul.f32 %v2367_v54, %v2367_v54 }
 0x175   :  { %v1326_v56 = vadd.f32 %v1895_v62, %v1325_v38  ;;  %v1587_v15 = vadd.f32 %v1586_v37, %v1460_v55  ;;  %1261 = vst [vmem:[%s3065_s2 + $0x3e8] sm:$0xff] %v2865_v41  ;;  %v1466_v37 = vmul.f32 %v2349_v48, %v2349_v48 }
 0x177   :  { %v1588_v22 = vadd.f32 %v1587_v15, %v1461_v60  ;;  %v1327_v31 = vadd.f32 %v1326_v56, %v2313_v28  ;;  %v1463_v28 = vmul.f32 %v2331_v34, %v2331_v34 }
 0x179   :  { %v1589_v62 = vadd.f32 %v1588_v22, %v1462_v13  ;;  %v1328_v1 = vadd.f32 %v1327_v31, %v2331_v34  ;;  %v1464_v22 = vmul.f32 %v2304_v23, %v2304_v23  ;;  %v1465_v34 = vmul.f32 %v2322_v30, %v2322_v30 }
 0x17b   :  { %v1329_v31 = vadd.f32 %v2304_v23, %v1328_v1  ;;  %v1590_v52 = vadd.f32 %v1589_v62, %v1463_v28  ;;  %v1468_v23 = vmul.f32 %v2340_v43, %v2340_v43 }
 0x17d   :  { %v1591_v55 = vadd.f32 %v1590_v52, %v1464_v22  ;;  %v1330_v38 = vadd.f32 %v2322_v30, %v1329_v31  ;;  %v1469_v30 = vmul.f32 %v2358_v50, %v2358_v50 }
 0x17f   :  { %v1331_v60 = vadd.f32 %v1330_v38, %v2349_v48  ;;  %v1592_v56 = vadd.f32 %v1591_v55, %v1465_v34  ;;  %v1470_v48 = vmul.f32 %v2385_v4, %v2385_v4  ;;  %v1471_v55 = vmul.f32 %v2403_v10, %v2403_v10 }
 0x181   :  { %v1593_v15 = vadd.f32 %v1592_v56, %v1466_v37  ;;  %v1332_v13 = vadd.f32 %v1331_v60, %v2367_v54 }
 0x183   :  { %v1333_v62 = vadd.f32 %v2340_v43, %v1332_v13  ;;  %v1594_v1 = vadd.f32 %v1593_v15, %v1467_v3  ;;  %v1472_v43 = vmul.f32 %v2376_v63, %v2376_v63 }
 0x185   :  { %v1595_v28 = vadd.f32 %v1594_v1, %v1468_v23  ;;  %v1334_v22 = vadd.f32 %v2358_v50, %v1333_v62  ;;  %v1473_v50 = vmul.f32 %v2394_v6, %v2394_v6  ;;  %v1475_v23 = vmul.f32 %v2439_v33, %v2439_v33 }
 0x187   :  { %v1335_v31 = vadd.f32 %v1334_v22, %v2385_v4  ;;  %v1596_v52 = vadd.f32 %v1595_v28, %v1469_v30  ;;  %v1474_v4 = vmul.f32 %v2421_v25, %v2421_v25 }
 0x189   :  { %v1597_v34 = vadd.f32 %v1596_v52, %v1470_v48  ;;  %v1336_v54 = vadd.f32 %v1335_v31, %v2403_v10  ;;  %v1479_v52 = vmul.f32 %v2475_v58, %v2475_v58 }
 0x18b   :  { %v1337_v3 = vadd.f32 %v2376_v63, %v1336_v54  ;;  %v1598_v38 = vadd.f32 %v1597_v34, %v1471_v55  ;;  %v1476_v63 = vmul.f32 %v2412_v19, %v2412_v19 }
 0x18d   :  { %v1599_v37 = vadd.f32 %v1598_v38, %v1472_v43  ;;  %v1338_v60 = vadd.f32 %v2394_v6, %v1337_v3  ;;  %v1477_v6 = vmul.f32 %v2430_v27, %v2430_v27 }
 0x18f   :  { %v1339_v56 = vadd.f32 %v1338_v60, %v2421_v25  ;;  %v1600_v15 = vadd.f32 %v1599_v37, %v1473_v50  ;;  %v1478_v25 = vmul.f32 %v2457_v51, %v2457_v51  ;;  %v1483_v37 = vmul.f32 %v2511_v18, %v2511_v18 }
 0x191   :  { %v1601_v13 = vadd.f32 %v1600_v15, %v1474_v4  ;;  %v1340_v10 = vadd.f32 %v1339_v56, %v2439_v33 }
 0x193   :  { %v1341_v62 = vadd.f32 %v2412_v19, %v1340_v10  ;;  %v1602_v1 = vadd.f32 %v1601_v13, %v1475_v23  ;;  %v1480_v19 = vmul.f32 %v2448_v44, %v2448_v44 }
 0x195   :  { %v1603_v30 = vadd.f32 %v1602_v1, %v1476_v63  ;;  %v1342_v28 = vadd.f32 %v2430_v27, %v1341_v62  ;;  %v1481_v27 = vmul.f32 %v2466_v53, %v2466_v53  ;;  %v1487_v63 = vmul.f32 %v2547_v49, %v2547_v49 }
 0x197   :  { %v1343_v22 = vadd.f32 %v1342_v28, %v2457_v51  ;;  %v1604_v48 = vadd.f32 %v1603_v30, %v1477_v6  ;;  %v1482_v51 = vmul.f32 %v2493_v12, %v2493_v12 }
 0x199   :  { %v1605_v31 = vadd.f32 %v1604_v48, %v1478_v25  ;;  %v1344_v33 = vadd.f32 %v1343_v22, %v2475_v58  ;;  %v1491_v48 = vmul.f32 %v2583_v17, %v2583_v17 }
 0x19b   :  { %v1345_v34 = vadd.f32 %v2448_v44, %v1344_v33  ;;  %v1606_v54 = vadd.f32 %v1605_v31, %v1479_v52  ;;  %v1484_v44 = vmul.f32 %v2484_v5, %v2484_v5 }
 0x19d   :  { %v1607_v55 = vadd.f32 %v1606_v54, %v1480_v19  ;;  %v1346_v43 = vadd.f32 %v2466_v53, %v1345_v34  ;;  %v1485_v53 = vmul.f32 %v2502_v14, %v2502_v14 }
 0x19f   :  { %v1347_v3 = vadd.f32 %v1346_v43, %v2493_v12  ;;  %v1608_v38 = vadd.f32 %v1607_v55, %v1481_v27  ;;  %v1486_v12 = vmul.f32 %v2529_v40, %v2529_v40  ;;  %v1495_v55 = vmul.f32 %v2619_v57, %v2619_v57 }
 0x1a1   :  { %v1609_v50 = vadd.f32 %v1608_v38, %v1482_v51  ;;  %v1348_v58 = vadd.f32 %v1347_v3, %v2511_v18 }
 0x1a3   :  { %v1349_v60 = vadd.f32 %v2484_v5, %v1348_v58  ;;  %v1610_v4 = vadd.f32 %v1609_v50, %v1483_v37  ;;  %v1488_v5 = vmul.f32 %v2520_v35, %v2520_v35 }
 0x1a5   :  { %v1611_v56 = vadd.f32 %v1610_v4, %v1484_v44  ;;  %v1350_v15 = vadd.f32 %v2502_v14, %v1349_v60  ;;  %v1489_v14 = vmul.f32 %v2538_v42, %v2538_v42  ;;  %v1499_v44 = vmul.f32 %v2655_v32, %v2655_v32 }
 0x1a7   :  { %v1351_v13 = vadd.f32 %v1350_v15, %v2529_v40  ;;  %v1612_v10 = vadd.f32 %v1611_v56, %v1485_v53  ;;  %v1490_v40 = vmul.f32 %v2565_v8, %v2565_v8 }
 0x1a9   :  { %v1613_v23 = vadd.f32 %v1612_v10, %v1486_v12  ;;  %v1352_v18 = vadd.f32 %v1351_v13, %v2547_v49  ;;  %v1503_v10 = vmul.f32 %v2691_v20, %v2691_v20 }
 0x1ab   :  { %v1353_v62 = vadd.f32 %v2520_v35, %v1352_v18  ;;  %v1614_v1 = vadd.f32 %v1613_v23, %v1487_v63  ;;  %v1492_v35 = vmul.f32 %v2556_v0, %v2556_v0 }
 0x1ad   :  { %v1615_v6 = vadd.f32 %v1614_v1, %v1488_v5  ;;  %v1354_v30 = vadd.f32 %v2538_v42, %v1353_v62  ;;  %v1493_v42 = vmul.f32 %v2574_v11, %v2574_v11 }
 0x1af   :  { %v1355_v28 = vadd.f32 %v1354_v30, %v2565_v8  ;;  %v1616_v25 = vadd.f32 %v1615_v6, %v1489_v14  ;;  %v1494_v8 = vmul.f32 %v2601_v45, %v2601_v45  ;;  %v1507_v6 = vmul.f32 %v2727_v16, %v2727_v16 }
 0x1b1   :  { %v1617_v22 = vadd.f32 %v1616_v25, %v1490_v40  ;;  %v1356_v49 = vadd.f32 %v1355_v28, %v2583_v17  ;;  %v3107_v28 = vld [vmem:[#allocation2_spill] sm:$0xff] }
 0x1b3   :  { %v1357_v31 = vadd.f32 %v2556_v0, %v1356_v49  ;;  %v1618_v33 = vadd.f32 %v1617_v22, %v1491_v48  ;;  %v1496_v0 = vmul.f32 %v2592_v36, %v2592_v36 }
 0x1b5   :  { %v1619_v52 = vadd.f32 %v1618_v33, %v1492_v35  ;;  %v1358_v19 = vadd.f32 %v2574_v11, %v1357_v31  ;;  %v1497_v11 = vmul.f32 %v2610_v47, %v2610_v47 }
 0x1b7   :  { %v1359_v34 = vadd.f32 %v1358_v19, %v2601_v45  ;;  %v1620_v54 = vadd.f32 %v1619_v52, %v1493_v42  ;;  %v1498_v45 = vmul.f32 %v2637_v21, %v2637_v21 }
 0x1b9   :  { %v1621_v27 = vadd.f32 %v1620_v54, %v1494_v8  ;;  %v1360_v17 = vadd.f32 %v1359_v34, %v2619_v57  ;;  %v3111_v34 = vld [vmem:[#allocation5_spill] sm:$0xff] }
 0x1ba   :  { %v1513_v54 = vmul.f32 %v3111_v34, %v3111_v34 }
 0x1bb   :  { %v1361_v43 = vadd.f32 %v2592_v36, %v1360_v17  ;;  %v1622_v51 = vadd.f32 %v1621_v27, %v1495_v55  ;;  %v1500_v36 = vmul.f32 %v2628_v9, %v2628_v9  ;;  %v3112_v55 = vld [vmem:[#allocation8_spill] sm:$0xff] }
 0x1bd   :  { %v1623_v3 = vadd.f32 %v1622_v51, %v1496_v0  ;;  %v1362_v38 = vadd.f32 %v2610_v47, %v1361_v43  ;;  %v1501_v47 = vmul.f32 %v2646_v24, %v2646_v24  ;;  %v1514_v0 = vmul.f32 %v3112_v55, %v3112_v55 }
 0x1bf   :  { %v1363_v50 = vadd.f32 %v1362_v38, %v2637_v21  ;;  %v1624_v58 = vadd.f32 %v1623_v3, %v1497_v11  ;;  %v1502_v21 = vmul.f32 %v2673_v2, %v2673_v2  ;;  %v3113_v3 = vld [vmem:[#allocation10_spill] sm:$0xff] }
 0x1c1   :  { %v1625_v37 = vadd.f32 %v1624_v58, %v1498_v45  ;;  %v1364_v57 = vadd.f32 %v1363_v50, %v2655_v32  ;;  %v1515_v45 = vmul.f32 %v3113_v3, %v3113_v3  ;;  %v3114_v50 = vld [vmem:[#allocation7_spill] sm:$0xff] }
 0x1c2   :  { %v1516_v58 = vmul.f32 %v3114_v50, %v3114_v50 }
 0x1c3   :  { %v1365_v60 = vadd.f32 %v2628_v9, %v1364_v57  ;;  %v1626_v4 = vadd.f32 %v1625_v37, %v1499_v44  ;;  %v1504_v9 = vmul.f32 %v2664_v59, %v2664_v59  ;;  %v3115_v44 = vld [vmem:[#allocation9_spill] sm:$0xff] }
 0x1c5   :  { %v1627_v53 = vadd.f32 %v1626_v4, %v1500_v36  ;;  %v1366_v56 = vadd.f32 %v2646_v24, %v1365_v60  ;;  %v1505_v24 = vmul.f32 %v2682_v7, %v2682_v7  ;;  %v1517_v36 = vmul.f32 %v3115_v44, %v3115_v44 }
 0x1c7   :  { %v1367_v15 = vadd.f32 %v1366_v56, %v2673_v2  ;;  %v1628_v12 = vadd.f32 %v1627_v53, %v1501_v47  ;;  %v1506_v2 = vmul.f32 %v2709_v61, %v2709_v61  ;;  %v1518_v47 = vmul.f32 %v2817_v39, %v2817_v39 }
 0x1c9   :  { %v1629_v13 = vadd.f32 %v1628_v12, %v1502_v21  ;;  %v1368_v32 = vadd.f32 %v1367_v15, %v2691_v20  ;;  %v3116_v15 = vld [vmem:[#allocation13_spill] sm:$0xff] }
 0x1cb   :  { %v1369_v23 = vadd.f32 %v2664_v59, %v1368_v32  ;;  %v1630_v18 = vadd.f32 %v1629_v13, %v1503_v10  ;;  %v1508_v59 = vmul.f32 %v2700_v46, %v2700_v46  ;;  %v1519_v13 = vmul.f32 %v3116_v15, %v3116_v15  ;;  %v3117_v32 = vld [vmem:[#allocation11_spill] sm:$0xff] }
 0x1cc   :  { %v1520_v10 = vmul.f32 %v3117_v32, %v3117_v32 }
 0x1cd   :  { %v1631_v63 = vadd.f32 %v1630_v18, %v1504_v9  ;;  %v1370_v5 = vadd.f32 %v2682_v7, %v1369_v23  ;;  %v1509_v7 = vmul.f32 %v3107_v28, %v3107_v28  ;;  %v3118_v18 = vld [vmem:[#allocation12_spill] sm:$0xff] }
 0x1cf   :  { %v1371_v62 = vadd.f32 %v1370_v5, %v2709_v61  ;;  %v1632_v1 = vadd.f32 %v1631_v63, %v1505_v24  ;;  %v3108_v61 = vld [vmem:[#allocation4_spill] sm:$0xff]  ;;  %v1521_v24 = vmul.f32 %v3118_v18, %v3118_v18 }
 0x1d0   :  { %v1510_v49 = vmul.f32 %v3108_v61, %v3108_v61 }
 0x1d1   :  { %v1633_v14 = vadd.f32 %v1632_v1, %v1506_v2  ;;  %v1372_v20 = vadd.f32 %v1371_v62, %v2727_v16  ;;  %v3109_v16 = vld [vmem:[#allocation6_spill] sm:$0xff] }
 0x1d2   :  { %v1511_v42 = vmul.f32 %v3109_v16, %v3109_v16 }
 0x1d3   :  { %v1373_v30 = vadd.f32 %v2700_v46, %v1372_v20  ;;  %v1634_v40 = vadd.f32 %v1633_v14, %v1507_v6  ;;  %v3110_v46 = vld [vmem:[#allocation3_spill] sm:$0xff]  ;;  %v1523_v20 = vmul.f32 %v2865_v41, %v2865_v41  ;;  %v1524_v6 = vmul.f32 %v2843_v26, %v2843_v26 }
 0x1d4   :  { %v1512_v52 = vmul.f32 %v3110_v46, %v3110_v46 }
 0x1d5   :  { %v1635_v25 = vadd.f32 %v1634_v40, %v1508_v59  ;;  %v1374_v22 = vadd.f32 %v3107_v28, %v1373_v30  ;;  %v3119_v40 = vld [vmem:[#allocation14_spill] sm:$0xff] }
 0x1d6   :  { %v1525_v28 = vmul.f32 %v3119_v40, %v3119_v40 }
 0x1d7   :  { %v1375_v48 = vadd.f32 %v1374_v22, %v3108_v61  ;;  %v1636_v35 = vadd.f32 %v1635_v25, %v1509_v7 }
 0x1d9   :  { %v1637_v31 = vadd.f32 %v1636_v35, %v1510_v49  ;;  %v1376_v33 = vadd.f32 %v1375_v48, %v3109_v16 }
 0x1db   :  { %v1377_v19 = vadd.f32 %v3110_v46, %v1376_v33  ;;  %v1638_v8 = vadd.f32 %v1637_v31, %v1511_v42 }
 0x1dd   :  { %v1639_v27 = vadd.f32 %v1638_v8, %v1512_v52  ;;  %v1378_v17 = vadd.f32 %v3111_v34, %v1377_v19 }
 0x1df   :  { %v1379_v43 = vadd.f32 %v1378_v17, %v3112_v55  ;;  %v1640_v51 = vadd.f32 %v1639_v27, %v1513_v54 }
 0x1e1   :  { %v1641_v11 = vadd.f32 %v1640_v51, %v1514_v0  ;;  %v1380_v38 = vadd.f32 %v1379_v43, %v3113_v3 }
 0x1e3   :  { %v1381_v37 = vadd.f32 %v3114_v50, %v1380_v38  ;;  %v1642_v57 = vadd.f32 %v1641_v11, %v1515_v45 }
 0x1e5   :  { %v1643_v60 = vadd.f32 %v1642_v57, %v1516_v58  ;;  %v1382_v4 = vadd.f32 %v3115_v44, %v1381_v37 }
 0x1e7   :  { %v1383_v53 = vadd.f32 %v1382_v4, %v2817_v39  ;;  %v1644_v56 = vadd.f32 %v1643_v60, %v1517_v36  ;;  %v1522_v39 = vmul.f32 %v2850_v29, %v2850_v29 }
 0x1e9   :  { %v1645_v21 = vadd.f32 %v1644_v56, %v1518_v47  ;;  %v1384_v12 = vadd.f32 %v1383_v53, %v3116_v15 }
 0x1eb   :  { %v1385_v9 = vadd.f32 %v3117_v32, %v1384_v12  ;;  %v1646_v23 = vadd.f32 %v1645_v21, %v1519_v13 }
 0x1ed   :  { %v1647_v63 = vadd.f32 %v1646_v23, %v1520_v10  ;;  %v1386_v5 = vadd.f32 %v3118_v18, %v1385_v9 }
 0x1ef   :  { %v1387_v2 = vadd.f32 %v1386_v5, %v2850_v29  ;;  %v1648_v62 = vadd.f32 %v1647_v63, %v1521_v24 }
 0x1f1   :  { %v1649_v1 = vadd.f32 %v1648_v62, %v1522_v39  ;;  %v1388_v14 = vadd.f32 %v1387_v2, %v2865_v41 }
 0x1f3   :  { %v1389_v59 = vadd.f32 %v2843_v26, %v1388_v14  ;;  %v1650_v30 = vadd.f32 %v1649_v1, %v1523_v20 }
 0x1f5   :  { %v1390_v7 = vadd.f32 %v3119_v40, %v1389_v59  ;;  %v1651_v25 = vadd.f32 %v1650_v30, %v1524_v6 }
 0x1f7   :  { %v1391_v29 = vrot.slane %v1390_v7, 4  ;;  %v1652_v22 = vadd.f32 %v1651_v25, %v1525_v28 }
 0x1f9   :  { %v1392_v61 = vadd.f32 %v1391_v29, %v1390_v7  ;;  %v1653_v49 = vrot.slane %v1652_v22, 4 }
 0x1fb   :  { %v1393_v48 = vrot.slane %v1392_v61, 2  ;;  %v1654_v35 = vadd.f32 %v1653_v49, %v1652_v22 }
 0x1fd   :  { %v1394_v31 = vadd.f32 %v1393_v48, %v1392_v61  ;;  %v1655_v41 = vrot.slane %v1654_v35, 2 }
 0x1ff   :  { %v1395_v16 = vrot.slane %v1394_v31, 1  ;;  %v1656_v33 = vadd.f32 %v1655_v41, %v1654_v35 }
 0x201   :  { %v1396_v42 = vadd.f32 %v1395_v16, %v1394_v31  ;;  %v1657_v46 = vrot.slane %v1656_v33, 1 }
 0x203   :  { %1397 = vst [vmem:[%s3066_s3] sm:$0x1] %v1396_v42  ;;  %v1658_v26 = vadd.f32 %v1657_v46, %v1656_v33 }
 0x205   :  { %1659 = vst [vmem:[%s3067_s4] sm:$0x1] %v1658_v26 }

// kernel: split_forward.21
= control target key start
LH: loop header
LB: loop body
LE: loop exit
PB: predicated region body
PF: predicated region fallthrough
CT: control target
= control target key end

     0   :  { %s2699_s0 = inlined_call_operand.vmem [shape: f32[1024,128], index: 0, kind: input, shape index: {}]   ;;  %s2700_s1 = inlined_call_operand.vmem [shape: f32[1,128], index: 1, kind: input, shape index: {}]   ;;  %s2701_s2 = inlined_call_operand.vmem [shape: f32[1,128], index: 2, kind: input, shape index: {}]   ;;  %s2702_s3 = inlined_call_operand.vmem [shape: bf16[1024,128], index: 3, kind: output, shape index: {}]  }
   0x1   :  { %v14_v0 = vld [vmem:[%s2699_s0] sm:$0xff]  ;;  %v15_v1 = vld [vmem:[%s2699_s0 + $0x8] sm:$0xff]  ;;  %v16_v6 = vld [vmem:[%s2699_s0 + $0x10] sm:$0xff] }
   0x2   :  { %v1856_v2 = vld [vmem:[%s2700_s1] ss:$0 sm:$0xff]  ;;  %v17_v7 = vld [vmem:[%s2699_s0 + $0x18] sm:$0xff]  ;;  %v19_v11 = vld [vmem:[%s2699_s0 + $0x28] sm:$0xff] }
   0x3   :  { %v149_v3 = vmul.f32 %v1856_v2, %v14_v0  ;;  %v150_v4 = vmul.f32 %v1856_v2, %v15_v1  ;;  %v1863_v5 = vld [vmem:[%s2701_s2] ss:$0 sm:$0xff]  ;;  %v151_v8 = vmul.f32 %v1856_v2, %v16_v6  ;;  %v152_v9 = vmul.f32 %v1856_v2, %v17_v7  ;;  %v20_v12 = vld [vmem:[%s2699_s0 + $0x30] sm:$0xff]  ;;  %v21_v17 = vld [vmem:[%s2699_s0 + $0x38] sm:$0xff] }
   0x4   :  { %v18_v10 = vld [vmem:[%s2699_s0 + $0x20] sm:$0xff]  ;;  %v154_v16 = vmul.f32 %v1856_v2, %v19_v11  ;;  %v155_v20 = vmul.f32 %v1856_v2, %v20_v12  ;;  %v156_v21 = vmul.f32 %v1856_v2, %v21_v17  ;;  %v23_v27 = vld [vmem:[%s2699_s0 + $0x48] sm:$0xff]  ;;  %v24_v32 = vld [vmem:[%s2699_s0 + $0x50] sm:$0xff] }
   0x5   :  { %v284_v13 = vadd.f32 %v1863_v5, %v149_v3  ;;  %v285_v14 = vadd.f32 %v1863_v5, %v150_v4  ;;  %v153_v15 = vmul.f32 %v1856_v2, %v18_v10  ;;  %v286_v18 = vadd.f32 %v1863_v5, %v151_v8  ;;  %v22_v22 = vld [vmem:[%s2699_s0 + $0x40] sm:$0xff]  ;;  %v25_v33 = vld [vmem:[%s2699_s0 + $0x58] sm:$0xff]  ;;  %v27_v39 = vld [vmem:[%s2699_s0 + $0x68] sm:$0xff] }
   0x6   :  { %v287_v19 = vadd.f32 %v1863_v5, %v152_v9  ;;  %v289_v26 = vadd.f32 %v1863_v5, %v154_v16  ;;  %v290_v30 = vadd.f32 %v1863_v5, %v155_v20  ;;  %v291_v31 = vadd.f32 %v1863_v5, %v156_v21  ;;  %v26_v38 = vld [vmem:[%s2699_s0 + $0x60] sm:$0xff]  ;;  %v28_v44 = vld [vmem:[%s2699_s0 + $0x70] sm:$0xff]  ;;  %v29_v49 = vld [vmem:[%s2699_s0 + $0x78] sm:$0xff] }
   0x7   :  { %v412_v23 = vmax.f32 %v284_v13, 0.0  ;;  %v413_v24 = vmax.f32 %v285_v14, 0.0  ;;  %v288_v25 = vadd.f32 %v1863_v5, %v153_v15  ;;  %v414_v28 = vmax.f32 %v286_v18, 0.0  ;;  %v30_v54 = vld [vmem:[%s2699_s0 + $0x80] sm:$0xff]  ;;  %v31_v63 = vld [vmem:[%s2699_s0 + $0x88] sm:$0xff]  ;;  %v32_v6 = vld [vmem:[%s2699_s0 + $0x90] sm:$0xff] }
   0x8   :  { %v415_v29 = vmax.f32 %v287_v19, 0.0  ;;  %v417_v36 = vmax.f32 %v289_v26, 0.0  ;;  %v157_v37 = vmul.f32 %v1856_v2, %v22_v22  ;;  %v418_v41 = vmax.f32 %v290_v30, 0.0  ;;  %v33_v7 = vld [vmem:[%s2699_s0 + $0x98] sm:$0xff]  ;;  %v34_v12 = vld [vmem:[%s2699_s0 + $0xa0] sm:$0xff]  ;;  %v35_v13 = vld [vmem:[%s2699_s0 + $0xa8] sm:$0xff] }
   0x9   :  { %v1445_v34 = vpack.c.bf16 %v413_v24, %v412_v23  ;;  %v416_v35 = vmax.f32 %v288_v25, 0.0  ;;  %v419_v42 = vmax.f32 %v291_v31, 0.0  ;;  %v158_v43 = vmul.f32 %v1856_v2, %v23_v27  ;;  %v36_v18 = vld [vmem:[%s2699_s0 + $0xb0] sm:$0xff]  ;;  %v37_v23 = vld [vmem:[%s2699_s0 + $0xb8] sm:$0xff] }
   0xa   :  { %v1450_v40 = vpack.c.bf16 %v415_v29, %v414_v28  ;;  %v292_v46 = vadd.f32 %v1863_v5, %v157_v37  ;;  %v159_v47 = vmul.f32 %v1856_v2, %v24_v32  ;;  %v160_v48 = vmul.f32 %v1856_v2, %v25_v33  ;;  %v38_v28 = vld [vmem:[%s2699_s0 + $0xc0] sm:$0xff]  ;;  %v39_v37 = vld [vmem:[%s2699_s0 + $0xc8] sm:$0xff] }
   0xb   :  { %1446 = vst [vmem:[%s2702_s3] sm:$0xff] %v1445_v34   ;;  %v1455_v45 = vpack.c.bf16 %v417_v36, %v416_v35  ;;  %v1460_v50 = vpack.c.bf16 %v419_v42, %v418_v41  ;;  %v293_v51 = vadd.f32 %v1863_v5, %v158_v43  ;;  %v161_v52 = vmul.f32 %v1856_v2, %v26_v38  ;;  %v40_v42 = vld [vmem:[%s2699_s0 + $0xd0] sm:$0xff]  ;;  %v41_v43 = vld [vmem:[%s2699_s0 + $0xd8] sm:$0xff] }
   0xc   :  { %1762 = vst [vmem:[%s2702_s3 + $0x8] sm:$0xff] %v1450_v40   ;;  %v162_v53 = vmul.f32 %v1856_v2, %v27_v39  ;;  %v420_v55 = vmax.f32 %v292_v46, 0.0  ;;  %v294_v56 = vadd.f32 %v1863_v5, %v159_v47  ;;  %v295_v57 = vadd.f32 %v1863_v5, %v160_v48  ;;  %v42_v48 = vld [vmem:[%s2699_s0 + $0xe0] sm:$0xff] }
   0xd   :  { %1763 = vst [vmem:[%s2702_s3 + $0x10] sm:$0xff] %v1455_v45   ;;  %v163_v58 = vmul.f32 %v1856_v2, %v28_v44  ;;  %1764 = vst [vmem:[%s2702_s3 + $0x18] sm:$0xff] %v1460_v50   ;;  %v421_v59 = vmax.f32 %v293_v51, 0.0  ;;  %v296_v60 = vadd.f32 %v1863_v5, %v161_v52  ;;  %v164_v62 = vmul.f32 %v1856_v2, %v29_v49  ;;  %v43_v49 = vld [vmem:[%s2699_s0 + $0xe8] sm:$0xff] }
   0xe   :  { %v297_v61 = vadd.f32 %v1863_v5, %v162_v53  ;;  %v422_v0 = vmax.f32 %v294_v56, 0.0  ;;  %v423_v1 = vmax.f32 %v295_v57, 0.0  ;;  %v165_v4 = vmul.f32 %v1856_v2, %v30_v54  ;;  %v44_v54 = vld [vmem:[%s2699_s0 + $0xf0] sm:$0xff] }
   0xf   :  { %v298_v3 = vadd.f32 %v1863_v5, %v163_v58  ;;  %v1465_v8 = vpack.c.bf16 %v421_v59, %v420_v55  ;;  %v424_v9 = vmax.f32 %v296_v60, 0.0  ;;  %v299_v11 = vadd.f32 %v1863_v5, %v164_v62  ;;  %v45_v59 = vld [vmem:[%s2699_s0 + $0xf8] sm:$0xff] }
  0x10   :  { %v425_v10 = vmax.f32 %v297_v61, 0.0  ;;  %v1470_v14 = vpack.c.bf16 %v423_v1, %v422_v0  ;;  %v166_v16 = vmul.f32 %v1856_v2, %v31_v63  ;;  %v300_v17 = vadd.f32 %v1863_v5, %v165_v4  ;;  %v46_v0 = vld [vmem:[%s2699_s0 + $0x100] sm:$0xff] }
  0x11   :  { %v426_v15 = vmax.f32 %v298_v3, 0.0  ;;  %1765 = vst [vmem:[%s2702_s3 + $0x20] sm:$0xff] %v1465_v8   ;;  %v427_v20 = vmax.f32 %v299_v11, 0.0  ;;  %v167_v21 = vmul.f32 %v1856_v2, %v32_v6  ;;  %v168_v22 = vmul.f32 %v1856_v2, %v33_v7  ;;  %v47_v11 = vld [vmem:[%s2699_s0 + $0x108] sm:$0xff] }
  0x12   :  { %v1475_v19 = vpack.c.bf16 %v425_v10, %v424_v9  ;;  %1766 = vst [vmem:[%s2702_s3 + $0x28] sm:$0xff] %v1470_v14   ;;  %v301_v24 = vadd.f32 %v1863_v5, %v166_v16  ;;  %v428_v25 = vmax.f32 %v300_v17, 0.0  ;;  %v169_v26 = vmul.f32 %v1856_v2, %v34_v12  ;;  %v48_v16 = vld [vmem:[%s2699_s0 + $0x110] sm:$0xff]  ;;  %v49_v17 = vld [vmem:[%s2699_s0 + $0x118] sm:$0xff] }
  0x13   :  { %v170_v27 = vmul.f32 %v1856_v2, %v35_v13  ;;  %v1480_v29 = vpack.c.bf16 %v427_v20, %v426_v15  ;;  %v302_v30 = vadd.f32 %v1863_v5, %v167_v21  ;;  %v303_v31 = vadd.f32 %v1863_v5, %v168_v22  ;;  %v50_v22 = vld [vmem:[%s2699_s0 + $0x120] sm:$0xff] }
  0x14   :  { %1767 = vst [vmem:[%s2702_s3 + $0x30] sm:$0xff] %v1475_v19   ;;  %v171_v32 = vmul.f32 %v1856_v2, %v36_v18  ;;  %v429_v33 = vmax.f32 %v301_v24, 0.0  ;;  %v304_v34 = vadd.f32 %v1863_v5, %v169_v26  ;;  %v172_v36 = vmul.f32 %v1856_v2, %v37_v23  ;;  %v51_v23 = vld [vmem:[%s2699_s0 + $0x128] sm:$0xff] }
  0x15   :  { %v305_v35 = vadd.f32 %v1863_v5, %v170_v27  ;;  %1768 = vst [vmem:[%s2702_s3 + $0x38] sm:$0xff] %v1480_v29   ;;  %v430_v38 = vmax.f32 %v302_v30, 0.0  ;;  %v431_v39 = vmax.f32 %v303_v31, 0.0  ;;  %v173_v41 = vmul.f32 %v1856_v2, %v38_v28  ;;  %v52_v28 = vld [vmem:[%s2699_s0 + $0x130] sm:$0xff] }
  0x16   :  { %v306_v40 = vadd.f32 %v1863_v5, %v171_v32  ;;  %v1485_v44 = vpack.c.bf16 %v429_v33, %v428_v25  ;;  %v432_v45 = vmax.f32 %v304_v34, 0.0  ;;  %v307_v47 = vadd.f32 %v1863_v5, %v172_v36  ;;  %v53_v33 = vld [vmem:[%s2699_s0 + $0x138] sm:$0xff] }
  0x17   :  { %v433_v46 = vmax.f32 %v305_v35, 0.0  ;;  %v1490_v50 = vpack.c.bf16 %v431_v39, %v430_v38  ;;  %v174_v52 = vmul.f32 %v1856_v2, %v39_v37  ;;  %v308_v53 = vadd.f32 %v1863_v5, %v173_v41  ;;  %v54_v38 = vld [vmem:[%s2699_s0 + $0x140] sm:$0xff] }
  0x18   :  { %v434_v51 = vmax.f32 %v306_v40, 0.0  ;;  %1769 = vst [vmem:[%s2702_s3 + $0x40] sm:$0xff] %v1485_v44   ;;  %v435_v56 = vmax.f32 %v307_v47, 0.0  ;;  %v175_v57 = vmul.f32 %v1856_v2, %v40_v42  ;;  %v176_v58 = vmul.f32 %v1856_v2, %v41_v43  ;;  %v55_v47 = vld [vmem:[%s2699_s0 + $0x148] sm:$0xff] }
  0x19   :  { %v1495_v55 = vpack.c.bf16 %v433_v46, %v432_v45  ;;  %1770 = vst [vmem:[%s2702_s3 + $0x48] sm:$0xff] %v1490_v50   ;;  %v309_v60 = vadd.f32 %v1863_v5, %v174_v52  ;;  %v436_v61 = vmax.f32 %v308_v53, 0.0  ;;  %v177_v62 = vmul.f32 %v1856_v2, %v42_v48  ;;  %v56_v52 = vld [vmem:[%s2699_s0 + $0x150] sm:$0xff]  ;;  %v57_v53 = vld [vmem:[%s2699_s0 + $0x158] sm:$0xff] }
  0x1a   :  { %v178_v63 = vmul.f32 %v1856_v2, %v43_v49  ;;  %v1500_v1 = vpack.c.bf16 %v435_v56, %v434_v51  ;;  %v310_v3 = vadd.f32 %v1863_v5, %v175_v57  ;;  %v311_v4 = vadd.f32 %v1863_v5, %v176_v58  ;;  %v58_v58 = vld [vmem:[%s2699_s0 + $0x160] sm:$0xff] }
  0x1b   :  { %1771 = vst [vmem:[%s2702_s3 + $0x50] sm:$0xff] %v1495_v55   ;;  %v179_v6 = vmul.f32 %v1856_v2, %v44_v54  ;;  %v437_v7 = vmax.f32 %v309_v60, 0.0  ;;  %v312_v8 = vadd.f32 %v1863_v5, %v177_v62  ;;  %v180_v10 = vmul.f32 %v1856_v2, %v45_v59  ;;  %v59_v59 = vld [vmem:[%s2699_s0 + $0x168] sm:$0xff] }
  0x1c   :  { %v313_v9 = vadd.f32 %v1863_v5, %v178_v63  ;;  %1772 = vst [vmem:[%s2702_s3 + $0x58] sm:$0xff] %v1500_v1   ;;  %v438_v12 = vmax.f32 %v310_v3, 0.0  ;;  %v439_v13 = vmax.f32 %v311_v4, 0.0  ;;  %v181_v15 = vmul.f32 %v1856_v2, %v46_v0  ;;  %v60_v0 = vld [vmem:[%s2699_s0 + $0x170] sm:$0xff] }
  0x1d   :  { %v314_v14 = vadd.f32 %v1863_v5, %v179_v6  ;;  %v1505_v18 = vpack.c.bf16 %v437_v7, %v436_v61  ;;  %v440_v19 = vmax.f32 %v312_v8, 0.0  ;;  %v315_v21 = vadd.f32 %v1863_v5, %v180_v10  ;;  %v61_v7 = vld [vmem:[%s2699_s0 + $0x178] sm:$0xff] }
  0x1e   :  { %v441_v20 = vmax.f32 %v313_v9, 0.0  ;;  %v1510_v24 = vpack.c.bf16 %v439_v13, %v438_v12  ;;  %v182_v26 = vmul.f32 %v1856_v2, %v47_v11  ;;  %v316_v27 = vadd.f32 %v1863_v5, %v181_v15  ;;  %v62_v12 = vld [vmem:[%s2699_s0 + $0x180] sm:$0xff] }
  0x1f   :  { %v442_v25 = vmax.f32 %v314_v14, 0.0  ;;  %1773 = vst [vmem:[%s2702_s3 + $0x60] sm:$0xff] %v1505_v18   ;;  %v443_v30 = vmax.f32 %v315_v21, 0.0  ;;  %v183_v31 = vmul.f32 %v1856_v2, %v48_v16  ;;  %v184_v32 = vmul.f32 %v1856_v2, %v49_v17  ;;  %v63_v21 = vld [vmem:[%s2699_s0 + $0x188] sm:$0xff] }
  0x20   :  { %v1515_v29 = vpack.c.bf16 %v441_v20, %v440_v19  ;;  %1774 = vst [vmem:[%s2702_s3 + $0x68] sm:$0xff] %v1510_v24   ;;  %v317_v34 = vadd.f32 %v1863_v5, %v182_v26  ;;  %v444_v35 = vmax.f32 %v316_v27, 0.0  ;;  %v185_v36 = vmul.f32 %v1856_v2, %v50_v22  ;;  %v64_v26 = vld [vmem:[%s2699_s0 + $0x190] sm:$0xff]  ;;  %v65_v27 = vld [vmem:[%s2699_s0 + $0x198] sm:$0xff] }
  0x21   :  { %v186_v37 = vmul.f32 %v1856_v2, %v51_v23  ;;  %v1520_v39 = vpack.c.bf16 %v443_v30, %v442_v25  ;;  %v318_v40 = vadd.f32 %v1863_v5, %v183_v31  ;;  %v319_v41 = vadd.f32 %v1863_v5, %v184_v32  ;;  %v66_v32 = vld [vmem:[%s2699_s0 + $0x1a0] sm:$0xff] }
  0x22   :  { %1775 = vst [vmem:[%s2702_s3 + $0x70] sm:$0xff] %v1515_v29   ;;  %v187_v42 = vmul.f32 %v1856_v2, %v52_v28  ;;  %v445_v43 = vmax.f32 %v317_v34, 0.0  ;;  %v320_v44 = vadd.f32 %v1863_v5, %v185_v36  ;;  %v188_v46 = vmul.f32 %v1856_v2, %v53_v33  ;;  %v67_v33 = vld [vmem:[%s2699_s0 + $0x1a8] sm:$0xff] }
  0x23   :  { %v321_v45 = vadd.f32 %v1863_v5, %v186_v37  ;;  %1776 = vst [vmem:[%s2702_s3 + $0x78] sm:$0xff] %v1520_v39   ;;  %v446_v48 = vmax.f32 %v318_v40, 0.0  ;;  %v447_v49 = vmax.f32 %v319_v41, 0.0  ;;  %v189_v51 = vmul.f32 %v1856_v2, %v54_v38  ;;  %v68_v38 = vld [vmem:[%s2699_s0 + $0x1b0] sm:$0xff] }
  0x24   :  { %v322_v50 = vadd.f32 %v1863_v5, %v187_v42  ;;  %v1525_v54 = vpack.c.bf16 %v445_v43, %v444_v35  ;;  %v448_v55 = vmax.f32 %v320_v44, 0.0  ;;  %v323_v57 = vadd.f32 %v1863_v5, %v188_v46  ;;  %v69_v43 = vld [vmem:[%s2699_s0 + $0x1b8] sm:$0xff] }
  0x25   :  { %v449_v56 = vmax.f32 %v321_v45, 0.0  ;;  %v1530_v60 = vpack.c.bf16 %v447_v49, %v446_v48  ;;  %v190_v62 = vmul.f32 %v1856_v2, %v55_v47  ;;  %v324_v63 = vadd.f32 %v1863_v5, %v189_v51  ;;  %v70_v48 = vld [vmem:[%s2699_s0 + $0x1c0] sm:$0xff] }
  0x26   :  { %v450_v61 = vmax.f32 %v322_v50, 0.0  ;;  %1777 = vst [vmem:[%s2702_s3 + $0x80] sm:$0xff] %v1525_v54   ;;  %v451_v3 = vmax.f32 %v323_v57, 0.0  ;;  %v191_v4 = vmul.f32 %v1856_v2, %v56_v52  ;;  %v192_v6 = vmul.f32 %v1856_v2, %v57_v53  ;;  %v71_v57 = vld [vmem:[%s2699_s0 + $0x1c8] sm:$0xff] }
  0x27   :  { %v1535_v1 = vpack.c.bf16 %v449_v56, %v448_v55  ;;  %1778 = vst [vmem:[%s2702_s3 + $0x88] sm:$0xff] %v1530_v60   ;;  %v325_v8 = vadd.f32 %v1863_v5, %v190_v62  ;;  %v452_v9 = vmax.f32 %v324_v63, 0.0  ;;  %v193_v10 = vmul.f32 %v1856_v2, %v58_v58  ;;  %v72_v62 = vld [vmem:[%s2699_s0 + $0x1d0] sm:$0xff]  ;;  %v73_v63 = vld [vmem:[%s2699_s0 + $0x1d8] sm:$0xff] }
  0x28   :  { %v194_v11 = vmul.f32 %v1856_v2, %v59_v59  ;;  %v1540_v13 = vpack.c.bf16 %v451_v3, %v450_v61  ;;  %v326_v14 = vadd.f32 %v1863_v5, %v191_v4  ;;  %v327_v15 = vadd.f32 %v1863_v5, %v192_v6  ;;  %v74_v6 = vld [vmem:[%s2699_s0 + $0x1e0] sm:$0xff] }
  0x29   :  { %1779 = vst [vmem:[%s2702_s3 + $0x90] sm:$0xff] %v1535_v1   ;;  %v195_v16 = vmul.f32 %v1856_v2, %v60_v0  ;;  %v453_v17 = vmax.f32 %v325_v8, 0.0  ;;  %v328_v18 = vadd.f32 %v1863_v5, %v193_v10  ;;  %v196_v20 = vmul.f32 %v1856_v2, %v61_v7  ;;  %v75_v7 = vld [vmem:[%s2699_s0 + $0x1e8] sm:$0xff] }
  0x2a   :  { %v329_v19 = vadd.f32 %v1863_v5, %v194_v11  ;;  %1780 = vst [vmem:[%s2702_s3 + $0x98] sm:$0xff] %v1540_v13   ;;  %v454_v22 = vmax.f32 %v326_v14, 0.0  ;;  %v455_v23 = vmax.f32 %v327_v15, 0.0  ;;  %v197_v25 = vmul.f32 %v1856_v2, %v62_v12  ;;  %v76_v12 = vld [vmem:[%s2699_s0 + $0x1f0] sm:$0xff] }
  0x2b   :  { %v330_v24 = vadd.f32 %v1863_v5, %v195_v16  ;;  %v1545_v28 = vpack.c.bf16 %v453_v17, %v452_v9  ;;  %v456_v29 = vmax.f32 %v328_v18, 0.0  ;;  %v331_v31 = vadd.f32 %v1863_v5, %v196_v20  ;;  %v77_v17 = vld [vmem:[%s2699_s0 + $0x1f8] sm:$0xff] }
  0x2c   :  { %v457_v30 = vmax.f32 %v329_v19, 0.0  ;;  %v1550_v34 = vpack.c.bf16 %v455_v23, %v454_v22  ;;  %v198_v36 = vmul.f32 %v1856_v2, %v63_v21  ;;  %v332_v37 = vadd.f32 %v1863_v5, %v197_v25  ;;  %v78_v22 = vld [vmem:[%s2699_s0 + $0x200] sm:$0xff] }
  0x2d   :  { %v458_v35 = vmax.f32 %v330_v24, 0.0  ;;  %1781 = vst [vmem:[%s2702_s3 + $0xa0] sm:$0xff] %v1545_v28   ;;  %v459_v40 = vmax.f32 %v331_v31, 0.0  ;;  %v199_v41 = vmul.f32 %v1856_v2, %v64_v26  ;;  %v200_v42 = vmul.f32 %v1856_v2, %v65_v27  ;;  %v79_v31 = vld [vmem:[%s2699_s0 + $0x208] sm:$0xff] }
  0x2e   :  { %v1555_v39 = vpack.c.bf16 %v457_v30, %v456_v29  ;;  %1782 = vst [vmem:[%s2702_s3 + $0xa8] sm:$0xff] %v1550_v34   ;;  %v333_v44 = vadd.f32 %v1863_v5, %v198_v36  ;;  %v460_v45 = vmax.f32 %v332_v37, 0.0  ;;  %v201_v46 = vmul.f32 %v1856_v2, %v66_v32  ;;  %v80_v36 = vld [vmem:[%s2699_s0 + $0x210] sm:$0xff]  ;;  %v81_v37 = vld [vmem:[%s2699_s0 + $0x218] sm:$0xff] }
  0x2f   :  { %v202_v47 = vmul.f32 %v1856_v2, %v67_v33  ;;  %v1560_v49 = vpack.c.bf16 %v459_v40, %v458_v35  ;;  %v334_v50 = vadd.f32 %v1863_v5, %v199_v41  ;;  %v335_v51 = vadd.f32 %v1863_v5, %v200_v42  ;;  %v82_v42 = vld [vmem:[%s2699_s0 + $0x220] sm:$0xff] }
  0x30   :  { %1783 = vst [vmem:[%s2702_s3 + $0xb0] sm:$0xff] %v1555_v39   ;;  %v203_v52 = vmul.f32 %v1856_v2, %v68_v38  ;;  %v461_v53 = vmax.f32 %v333_v44, 0.0  ;;  %v336_v54 = vadd.f32 %v1863_v5, %v201_v46  ;;  %v204_v56 = vmul.f32 %v1856_v2, %v69_v43  ;;  %v83_v43 = vld [vmem:[%s2699_s0 + $0x228] sm:$0xff] }
  0x31   :  { %v337_v55 = vadd.f32 %v1863_v5, %v202_v47  ;;  %1784 = vst [vmem:[%s2702_s3 + $0xb8] sm:$0xff] %v1560_v49   ;;  %v462_v58 = vmax.f32 %v334_v50, 0.0  ;;  %v463_v59 = vmax.f32 %v335_v51, 0.0  ;;  %v205_v61 = vmul.f32 %v1856_v2, %v70_v48  ;;  %v84_v48 = vld [vmem:[%s2699_s0 + $0x230] sm:$0xff] }
  0x32   :  { %v338_v60 = vadd.f32 %v1863_v5, %v203_v52  ;;  %v1565_v0 = vpack.c.bf16 %v461_v53, %v460_v45  ;;  %v464_v1 = vmax.f32 %v336_v54, 0.0  ;;  %v339_v4 = vadd.f32 %v1863_v5, %v204_v56  ;;  %v85_v53 = vld [vmem:[%s2699_s0 + $0x238] sm:$0xff] }
  0x33   :  { %v465_v3 = vmax.f32 %v337_v55, 0.0  ;;  %v1570_v8 = vpack.c.bf16 %v463_v59, %v462_v58  ;;  %v206_v10 = vmul.f32 %v1856_v2, %v71_v57  ;;  %v340_v11 = vadd.f32 %v1863_v5, %v205_v61  ;;  %v86_v58 = vld [vmem:[%s2699_s0 + $0x240] sm:$0xff] }
  0x34   :  { %v466_v9 = vmax.f32 %v338_v60, 0.0  ;;  %1785 = vst [vmem:[%s2702_s3 + $0xc0] sm:$0xff] %v1565_v0   ;;  %v467_v14 = vmax.f32 %v339_v4, 0.0  ;;  %v207_v15 = vmul.f32 %v1856_v2, %v72_v62  ;;  %v208_v16 = vmul.f32 %v1856_v2, %v73_v63  ;;  %v87_v4 = vld [vmem:[%s2699_s0 + $0x248] sm:$0xff] }
  0x35   :  { %v1575_v13 = vpack.c.bf16 %v465_v3, %v464_v1  ;;  %1786 = vst [vmem:[%s2702_s3 + $0xc8] sm:$0xff] %v1570_v8   ;;  %v341_v18 = vadd.f32 %v1863_v5, %v206_v10  ;;  %v468_v19 = vmax.f32 %v340_v11, 0.0  ;;  %v209_v20 = vmul.f32 %v1856_v2, %v74_v6  ;;  %v88_v10 = vld [vmem:[%s2699_s0 + $0x250] sm:$0xff]  ;;  %v89_v11 = vld [vmem:[%s2699_s0 + $0x258] sm:$0xff] }
  0x36   :  { %v210_v21 = vmul.f32 %v1856_v2, %v75_v7  ;;  %v1580_v23 = vpack.c.bf16 %v467_v14, %v466_v9  ;;  %v342_v24 = vadd.f32 %v1863_v5, %v207_v15  ;;  %v343_v25 = vadd.f32 %v1863_v5, %v208_v16  ;;  %v90_v16 = vld [vmem:[%s2699_s0 + $0x260] sm:$0xff] }
  0x37   :  { %1787 = vst [vmem:[%s2702_s3 + $0xd0] sm:$0xff] %v1575_v13   ;;  %v211_v26 = vmul.f32 %v1856_v2, %v76_v12  ;;  %v469_v27 = vmax.f32 %v341_v18, 0.0  ;;  %v344_v28 = vadd.f32 %v1863_v5, %v209_v20  ;;  %v212_v30 = vmul.f32 %v1856_v2, %v77_v17  ;;  %v91_v17 = vld [vmem:[%s2699_s0 + $0x268] sm:$0xff] }
  0x38   :  { %v345_v29 = vadd.f32 %v1863_v5, %v210_v21  ;;  %1788 = vst [vmem:[%s2702_s3 + $0xd8] sm:$0xff] %v1580_v23   ;;  %v470_v32 = vmax.f32 %v342_v24, 0.0  ;;  %v471_v33 = vmax.f32 %v343_v25, 0.0  ;;  %v213_v35 = vmul.f32 %v1856_v2, %v78_v22  ;;  %v92_v22 = vld [vmem:[%s2699_s0 + $0x270] sm:$0xff] }
  0x39   :  { %v346_v34 = vadd.f32 %v1863_v5, %v211_v26  ;;  %v1585_v38 = vpack.c.bf16 %v469_v27, %v468_v19  ;;  %v472_v39 = vmax.f32 %v344_v28, 0.0  ;;  %v347_v41 = vadd.f32 %v1863_v5, %v212_v30  ;;  %v93_v27 = vld [vmem:[%s2699_s0 + $0x278] sm:$0xff] }
  0x3a   :  { %v473_v40 = vmax.f32 %v345_v29, 0.0  ;;  %v1590_v44 = vpack.c.bf16 %v471_v33, %v470_v32  ;;  %v214_v46 = vmul.f32 %v1856_v2, %v79_v31  ;;  %v348_v47 = vadd.f32 %v1863_v5, %v213_v35  ;;  %v94_v32 = vld [vmem:[%s2699_s0 + $0x280] sm:$0xff] }
  0x3b   :  { %v474_v45 = vmax.f32 %v346_v34, 0.0  ;;  %1789 = vst [vmem:[%s2702_s3 + $0xe0] sm:$0xff] %v1585_v38   ;;  %v475_v50 = vmax.f32 %v347_v41, 0.0  ;;  %v215_v51 = vmul.f32 %v1856_v2, %v80_v36  ;;  %v216_v52 = vmul.f32 %v1856_v2, %v81_v37  ;;  %v95_v41 = vld [vmem:[%s2699_s0 + $0x288] sm:$0xff] }
  0x3c   :  { %v1595_v49 = vpack.c.bf16 %v473_v40, %v472_v39  ;;  %1790 = vst [vmem:[%s2702_s3 + $0xe8] sm:$0xff] %v1590_v44   ;;  %v349_v54 = vadd.f32 %v1863_v5, %v214_v46  ;;  %v476_v55 = vmax.f32 %v348_v47, 0.0  ;;  %v217_v56 = vmul.f32 %v1856_v2, %v82_v42  ;;  %v96_v46 = vld [vmem:[%s2699_s0 + $0x290] sm:$0xff]  ;;  %v97_v47 = vld [vmem:[%s2699_s0 + $0x298] sm:$0xff] }
  0x3d   :  { %v218_v57 = vmul.f32 %v1856_v2, %v83_v43  ;;  %v1600_v59 = vpack.c.bf16 %v475_v50, %v474_v45  ;;  %v350_v60 = vadd.f32 %v1863_v5, %v215_v51  ;;  %v351_v61 = vadd.f32 %v1863_v5, %v216_v52  ;;  %v98_v52 = vld [vmem:[%s2699_s0 + $0x2a0] sm:$0xff] }
  0x3e   :  { %1791 = vst [vmem:[%s2702_s3 + $0xf0] sm:$0xff] %v1595_v49   ;;  %v219_v62 = vmul.f32 %v1856_v2, %v84_v48  ;;  %v477_v63 = vmax.f32 %v349_v54, 0.0  ;;  %v352_v0 = vadd.f32 %v1863_v5, %v217_v56  ;;  %v220_v3 = vmul.f32 %v1856_v2, %v85_v53  ;;  %v99_v53 = vld [vmem:[%s2699_s0 + $0x2a8] sm:$0xff] }
  0x3f   :  { %v353_v1 = vadd.f32 %v1863_v5, %v218_v57  ;;  %1792 = vst [vmem:[%s2702_s3 + $0xf8] sm:$0xff] %v1600_v59   ;;  %v478_v6 = vmax.f32 %v350_v60, 0.0  ;;  %v479_v7 = vmax.f32 %v351_v61, 0.0  ;;  %v221_v9 = vmul.f32 %v1856_v2, %v86_v58  ;;  %v100_v58 = vld [vmem:[%s2699_s0 + $0x2b0] sm:$0xff] }
  0x40   :  { %v354_v8 = vadd.f32 %v1863_v5, %v219_v62  ;;  %v1605_v12 = vpack.c.bf16 %v477_v63, %v476_v55  ;;  %v480_v13 = vmax.f32 %v352_v0, 0.0  ;;  %v355_v15 = vadd.f32 %v1863_v5, %v220_v3  ;;  %v101_v63 = vld [vmem:[%s2699_s0 + $0x2b8] sm:$0xff] }
  0x41   :  { %v481_v14 = vmax.f32 %v353_v1, 0.0  ;;  %v1610_v18 = vpack.c.bf16 %v479_v7, %v478_v6  ;;  %v222_v20 = vmul.f32 %v1856_v2, %v87_v4  ;;  %v356_v21 = vadd.f32 %v1863_v5, %v221_v9  ;;  %v102_v6 = vld [vmem:[%s2699_s0 + $0x2c0] sm:$0xff] }
  0x42   :  { %v482_v19 = vmax.f32 %v354_v8, 0.0  ;;  %1793 = vst [vmem:[%s2702_s3 + $0x100] sm:$0xff] %v1605_v12   ;;  %v483_v24 = vmax.f32 %v355_v15, 0.0  ;;  %v223_v25 = vmul.f32 %v1856_v2, %v88_v10  ;;  %v224_v26 = vmul.f32 %v1856_v2, %v89_v11  ;;  %v103_v15 = vld [vmem:[%s2699_s0 + $0x2c8] sm:$0xff] }
  0x43   :  { %v1615_v23 = vpack.c.bf16 %v481_v14, %v480_v13  ;;  %1794 = vst [vmem:[%s2702_s3 + $0x108] sm:$0xff] %v1610_v18   ;;  %v357_v28 = vadd.f32 %v1863_v5, %v222_v20  ;;  %v484_v29 = vmax.f32 %v356_v21, 0.0  ;;  %v225_v30 = vmul.f32 %v1856_v2, %v90_v16  ;;  %v104_v20 = vld [vmem:[%s2699_s0 + $0x2d0] sm:$0xff]  ;;  %v105_v21 = vld [vmem:[%s2699_s0 + $0x2d8] sm:$0xff] }
  0x44   :  { %v226_v31 = vmul.f32 %v1856_v2, %v91_v17  ;;  %v1620_v33 = vpack.c.bf16 %v483_v24, %v482_v19  ;;  %v358_v34 = vadd.f32 %v1863_v5, %v223_v25  ;;  %v359_v35 = vadd.f32 %v1863_v5, %v224_v26  ;;  %v106_v26 = vld [vmem:[%s2699_s0 + $0x2e0] sm:$0xff] }
  0x45   :  { %1795 = vst [vmem:[%s2702_s3 + $0x110] sm:$0xff] %v1615_v23   ;;  %v227_v36 = vmul.f32 %v1856_v2, %v92_v22  ;;  %v485_v37 = vmax.f32 %v357_v28, 0.0  ;;  %v360_v38 = vadd.f32 %v1863_v5, %v225_v30  ;;  %v228_v40 = vmul.f32 %v1856_v2, %v93_v27  ;;  %v107_v27 = vld [vmem:[%s2699_s0 + $0x2e8] sm:$0xff] }
  0x46   :  { %v361_v39 = vadd.f32 %v1863_v5, %v226_v31  ;;  %1796 = vst [vmem:[%s2702_s3 + $0x118] sm:$0xff] %v1620_v33   ;;  %v486_v42 = vmax.f32 %v358_v34, 0.0  ;;  %v487_v43 = vmax.f32 %v359_v35, 0.0  ;;  %v229_v45 = vmul.f32 %v1856_v2, %v94_v32  ;;  %v108_v32 = vld [vmem:[%s2699_s0 + $0x2f0] sm:$0xff] }
  0x47   :  { %v362_v44 = vadd.f32 %v1863_v5, %v227_v36  ;;  %v1625_v48 = vpack.c.bf16 %v485_v37, %v484_v29  ;;  %v488_v49 = vmax.f32 %v360_v38, 0.0  ;;  %v363_v51 = vadd.f32 %v1863_v5, %v228_v40  ;;  %v109_v37 = vld [vmem:[%s2699_s0 + $0x2f8] sm:$0xff] }
  0x48   :  { %v489_v50 = vmax.f32 %v361_v39, 0.0  ;;  %v1630_v54 = vpack.c.bf16 %v487_v43, %v486_v42  ;;  %v230_v56 = vmul.f32 %v1856_v2, %v95_v41  ;;  %v364_v57 = vadd.f32 %v1863_v5, %v229_v45  ;;  %v110_v42 = vld [vmem:[%s2699_s0 + $0x300] sm:$0xff] }
  0x49   :  { %v490_v55 = vmax.f32 %v362_v44, 0.0  ;;  %1797 = vst [vmem:[%s2702_s3 + $0x120] sm:$0xff] %v1625_v48   ;;  %v491_v60 = vmax.f32 %v363_v51, 0.0  ;;  %v231_v61 = vmul.f32 %v1856_v2, %v96_v46  ;;  %v232_v62 = vmul.f32 %v1856_v2, %v97_v47  ;;  %v111_v51 = vld [vmem:[%s2699_s0 + $0x308] sm:$0xff] }
  0x4a   :  { %v1635_v59 = vpack.c.bf16 %v489_v50, %v488_v49  ;;  %1798 = vst [vmem:[%s2702_s3 + $0x128] sm:$0xff] %v1630_v54   ;;  %v365_v0 = vadd.f32 %v1863_v5, %v230_v56  ;;  %v492_v1 = vmax.f32 %v364_v57, 0.0  ;;  %v233_v3 = vmul.f32 %v1856_v2, %v98_v52  ;;  %v112_v56 = vld [vmem:[%s2699_s0 + $0x310] sm:$0xff]  ;;  %v113_v57 = vld [vmem:[%s2699_s0 + $0x318] sm:$0xff] }
  0x4b   :  { %v234_v4 = vmul.f32 %v1856_v2, %v99_v53  ;;  %v1640_v7 = vpack.c.bf16 %v491_v60, %v490_v55  ;;  %v366_v8 = vadd.f32 %v1863_v5, %v231_v61  ;;  %v367_v9 = vadd.f32 %v1863_v5, %v232_v62  ;;  %v114_v62 = vld [vmem:[%s2699_s0 + $0x320] sm:$0xff] }
  0x4c   :  { %1799 = vst [vmem:[%s2702_s3 + $0x130] sm:$0xff] %v1635_v59   ;;  %v235_v10 = vmul.f32 %v1856_v2, %v100_v58  ;;  %v493_v11 = vmax.f32 %v365_v0, 0.0  ;;  %v368_v12 = vadd.f32 %v1863_v5, %v233_v3  ;;  %v236_v14 = vmul.f32 %v1856_v2, %v101_v63  ;;  %v115_v63 = vld [vmem:[%s2699_s0 + $0x328] sm:$0xff] }
  0x4d   :  { %v369_v13 = vadd.f32 %v1863_v5, %v234_v4  ;;  %1800 = vst [vmem:[%s2702_s3 + $0x138] sm:$0xff] %v1640_v7   ;;  %v494_v16 = vmax.f32 %v366_v8, 0.0  ;;  %v495_v17 = vmax.f32 %v367_v9, 0.0  ;;  %v237_v19 = vmul.f32 %v1856_v2, %v102_v6  ;;  %v116_v6 = vld [vmem:[%s2699_s0 + $0x330] sm:$0xff] }
  0x4e   :  { %v370_v18 = vadd.f32 %v1863_v5, %v235_v10  ;;  %v1645_v22 = vpack.c.bf16 %v493_v11, %v492_v1  ;;  %v496_v23 = vmax.f32 %v368_v12, 0.0  ;;  %v371_v25 = vadd.f32 %v1863_v5, %v236_v14  ;;  %v117_v11 = vld [vmem:[%s2699_s0 + $0x338] sm:$0xff] }
  0x4f   :  { %v497_v24 = vmax.f32 %v369_v13, 0.0  ;;  %v1650_v28 = vpack.c.bf16 %v495_v17, %v494_v16  ;;  %v238_v30 = vmul.f32 %v1856_v2, %v103_v15  ;;  %v372_v31 = vadd.f32 %v1863_v5, %v237_v19  ;;  %v118_v16 = vld [vmem:[%s2699_s0 + $0x340] sm:$0xff] }
  0x50   :  { %v498_v29 = vmax.f32 %v370_v18, 0.0  ;;  %1801 = vst [vmem:[%s2702_s3 + $0x140] sm:$0xff] %v1645_v22   ;;  %v499_v34 = vmax.f32 %v371_v25, 0.0  ;;  %v239_v35 = vmul.f32 %v1856_v2, %v104_v20  ;;  %v240_v36 = vmul.f32 %v1856_v2, %v105_v21  ;;  %v119_v25 = vld [vmem:[%s2699_s0 + $0x348] sm:$0xff] }
  0x51   :  { %v1655_v33 = vpack.c.bf16 %v497_v24, %v496_v23  ;;  %1802 = vst [vmem:[%s2702_s3 + $0x148] sm:$0xff] %v1650_v28   ;;  %v373_v38 = vadd.f32 %v1863_v5, %v238_v30  ;;  %v500_v39 = vmax.f32 %v372_v31, 0.0  ;;  %v241_v40 = vmul.f32 %v1856_v2, %v106_v26  ;;  %v120_v30 = vld [vmem:[%s2699_s0 + $0x350] sm:$0xff]  ;;  %v121_v31 = vld [vmem:[%s2699_s0 + $0x358] sm:$0xff] }
  0x52   :  { %v242_v41 = vmul.f32 %v1856_v2, %v107_v27  ;;  %v1660_v43 = vpack.c.bf16 %v499_v34, %v498_v29  ;;  %v374_v44 = vadd.f32 %v1863_v5, %v239_v35  ;;  %v375_v45 = vadd.f32 %v1863_v5, %v240_v36  ;;  %v2536_v35 = vld [vmem:[%s2701_s2] ss:$0 sm:$0xff]  ;;  %v123_v36 = vld [vmem:[%s2699_s0 + $0x368] sm:$0xff] }
  0x53   :  { %1803 = vst [vmem:[%s2702_s3 + $0x150] sm:$0xff] %v1655_v33   ;;  %v243_v46 = vmul.f32 %v1856_v2, %v108_v32  ;;  %v501_v47 = vmax.f32 %v373_v38, 0.0  ;;  %v376_v48 = vadd.f32 %v1863_v5, %v241_v40  ;;  %v244_v50 = vmul.f32 %v1856_v2, %v109_v37 }
  0x54   :  { %v377_v49 = vadd.f32 %v1863_v5, %v242_v41  ;;  %1804 = vst [vmem:[%s2702_s3 + $0x158] sm:$0xff] %v1660_v43   ;;  %v502_v52 = vmax.f32 %v374_v44, 0.0  ;;  %v503_v53 = vmax.f32 %v375_v45, 0.0  ;;  %v245_v55 = vmul.f32 %v1856_v2, %v110_v42  ;;  %v124_v42 = vld [vmem:[%s2699_s0 + $0x370] sm:$0xff] }
  0x55   :  { %v378_v54 = vadd.f32 %v1863_v5, %v243_v46  ;;  %v1665_v58 = vpack.c.bf16 %v501_v47, %v500_v39  ;;  %v504_v59 = vmax.f32 %v376_v48, 0.0  ;;  %v379_v61 = vadd.f32 %v1863_v5, %v244_v50  ;;  %v2548_v39 = vld [vmem:[%s2700_s1] ss:$0 sm:$0xff]  ;;  %v125_v47 = vld [vmem:[%s2699_s0 + $0x378] sm:$0xff] }
  0x56   :  { %v505_v60 = vmax.f32 %v377_v49, 0.0  ;;  %v1670_v0 = vpack.c.bf16 %v503_v53, %v502_v52  ;;  %v246_v3 = vmul.f32 %v1856_v2, %v111_v51  ;;  %v380_v4 = vadd.f32 %v1863_v5, %v245_v55  ;;  %v126_v52 = vld [vmem:[%s2699_s0 + $0x380] sm:$0xff] }
  0x57   :  { %v506_v1 = vmax.f32 %v378_v54, 0.0  ;;  %1805 = vst [vmem:[%s2702_s3 + $0x160] sm:$0xff] %v1665_v58   ;;  %v507_v8 = vmax.f32 %v379_v61, 0.0  ;;  %v247_v9 = vmul.f32 %v1856_v2, %v112_v56  ;;  %v248_v10 = vmul.f32 %v1856_v2, %v113_v57  ;;  %v127_v61 = vld [vmem:[%s2699_s0 + $0x388] sm:$0xff] }
  0x58   :  { %v1675_v7 = vpack.c.bf16 %v505_v60, %v504_v59  ;;  %1806 = vst [vmem:[%s2702_s3 + $0x168] sm:$0xff] %v1670_v0   ;;  %v381_v12 = vadd.f32 %v1863_v5, %v246_v3  ;;  %v508_v13 = vmax.f32 %v380_v4, 0.0  ;;  %v249_v14 = vmul.f32 %v1856_v2, %v114_v62  ;;  %v128_v3 = vld [vmem:[%s2699_s0 + $0x390] sm:$0xff]  ;;  %v129_v4 = vld [vmem:[%s2699_s0 + $0x398] sm:$0xff] }
  0x59   :  { %v250_v15 = vmul.f32 %v1856_v2, %v115_v63  ;;  %v1680_v17 = vpack.c.bf16 %v507_v8, %v506_v1  ;;  %v382_v18 = vadd.f32 %v1863_v5, %v247_v9  ;;  %v383_v19 = vadd.f32 %v1863_v5, %v248_v10  ;;  %v130_v10 = vld [vmem:[%s2699_s0 + $0x3a0] sm:$0xff] }
  0x5a   :  { %1807 = vst [vmem:[%s2702_s3 + $0x170] sm:$0xff] %v1675_v7   ;;  %v251_v20 = vmul.f32 %v1856_v2, %v116_v6  ;;  %v509_v21 = vmax.f32 %v381_v12, 0.0  ;;  %v384_v22 = vadd.f32 %v1863_v5, %v249_v14  ;;  %v252_v24 = vmul.f32 %v1856_v2, %v117_v11  ;;  %v131_v11 = vld [vmem:[%s2699_s0 + $0x3a8] sm:$0xff] }
  0x5b   :  { %v385_v23 = vadd.f32 %v1863_v5, %v250_v15  ;;  %1808 = vst [vmem:[%s2702_s3 + $0x178] sm:$0xff] %v1680_v17   ;;  %v510_v26 = vmax.f32 %v382_v18, 0.0  ;;  %v511_v27 = vmax.f32 %v383_v19, 0.0  ;;  %v253_v29 = vmul.f32 %v1856_v2, %v118_v16  ;;  %v122_v2 = vld [vmem:[%s2699_s0 + $0x360] sm:$0xff]  ;;  %v132_v16 = vld [vmem:[%s2699_s0 + $0x3b0] sm:$0xff] }
  0x5c   :  { %v386_v28 = vadd.f32 %v1863_v5, %v251_v20  ;;  %v1685_v32 = vpack.c.bf16 %v509_v21, %v508_v13  ;;  %v512_v33 = vmax.f32 %v384_v22, 0.0  ;;  %v387_v5 = vadd.f32 %v2536_v35, %v252_v24  ;;  %v133_v21 = vld [vmem:[%s2699_s0 + $0x3b8] sm:$0xff] }
  0x5d   :  { %v513_v34 = vmax.f32 %v385_v23, 0.0  ;;  %v1690_v37 = vpack.c.bf16 %v511_v27, %v510_v26  ;;  %v254_v40 = vmul.f32 %v2548_v39, %v119_v25  ;;  %v388_v41 = vadd.f32 %v2536_v35, %v253_v29  ;;  %v134_v26 = vld [vmem:[%s2699_s0 + $0x3c0] sm:$0xff] }
  0x5e   :  { %v514_v38 = vmax.f32 %v386_v28, 0.0  ;;  %1809 = vst [vmem:[%s2702_s3 + $0x180] sm:$0xff] %v1685_v32   ;;  %v515_v44 = vmax.f32 %v387_v5, 0.0  ;;  %v255_v45 = vmul.f32 %v2548_v39, %v120_v30  ;;  %v256_v46 = vmul.f32 %v2548_v39, %v121_v31  ;;  %v135_v5 = vld [vmem:[%s2699_s0 + $0x3c8] sm:$0xff] }
  0x5f   :  { %v1695_v43 = vpack.c.bf16 %v513_v34, %v512_v33  ;;  %1810 = vst [vmem:[%s2702_s3 + $0x188] sm:$0xff] %v1690_v37   ;;  %v389_v48 = vadd.f32 %v2536_v35, %v254_v40  ;;  %v516_v49 = vmax.f32 %v388_v41, 0.0  ;;  %v257_v50 = vmul.f32 %v2548_v39, %v122_v2  ;;  %v136_v40 = vld [vmem:[%s2699_s0 + $0x3d0] sm:$0xff]  ;;  %v137_v41 = vld [vmem:[%s2699_s0 + $0x3d8] sm:$0xff] }
  0x60   :  { %v258_v51 = vmul.f32 %v2548_v39, %v123_v36  ;;  %v1700_v53 = vpack.c.bf16 %v515_v44, %v514_v38  ;;  %v390_v54 = vadd.f32 %v2536_v35, %v255_v45  ;;  %v391_v55 = vadd.f32 %v2536_v35, %v256_v46  ;;  %v138_v46 = vld [vmem:[%s2699_s0 + $0x3e0] sm:$0xff] }
  0x61   :  { %1811 = vst [vmem:[%s2702_s3 + $0x190] sm:$0xff] %v1695_v43   ;;  %v259_v56 = vmul.f32 %v2548_v39, %v124_v42  ;;  %v517_v57 = vmax.f32 %v389_v48, 0.0  ;;  %v392_v58 = vadd.f32 %v2536_v35, %v257_v50  ;;  %v260_v60 = vmul.f32 %v2548_v39, %v125_v47  ;;  %v139_v47 = vld [vmem:[%s2699_s0 + $0x3e8] sm:$0xff] }
  0x62   :  { %v393_v59 = vadd.f32 %v2536_v35, %v258_v51  ;;  %1812 = vst [vmem:[%s2702_s3 + $0x198] sm:$0xff] %v1700_v53   ;;  %v518_v62 = vmax.f32 %v390_v54, 0.0  ;;  %v519_v63 = vmax.f32 %v391_v55, 0.0  ;;  %v261_v1 = vmul.f32 %v2548_v39, %v126_v52  ;;  %v140_v52 = vld [vmem:[%s2699_s0 + $0x3f0] sm:$0xff] }
  0x63   :  { %v394_v0 = vadd.f32 %v2536_v35, %v259_v56  ;;  %v1705_v6 = vpack.c.bf16 %v517_v57, %v516_v49  ;;  %v520_v7 = vmax.f32 %v392_v58, 0.0  ;;  %v395_v9 = vadd.f32 %v2536_v35, %v260_v60  ;;  %v141_v57 = vld [vmem:[%s2699_s0 + $0x3f8] sm:$0xff] }
  0x64   :  { %v521_v8 = vmax.f32 %v393_v59, 0.0  ;;  %v1710_v12 = vpack.c.bf16 %v519_v63, %v518_v62  ;;  %v262_v14 = vmul.f32 %v2548_v39, %v127_v61  ;;  %v396_v15 = vadd.f32 %v2536_v35, %v261_v1 }
  0x65   :  { %v522_v13 = vmax.f32 %v394_v0, 0.0  ;;  %1813 = vst [vmem:[%s2702_s3 + $0x1a0] sm:$0xff] %v1705_v6   ;;  %v523_v18 = vmax.f32 %v395_v9, 0.0  ;;  %v263_v19 = vmul.f32 %v2548_v39, %v128_v3  ;;  %v264_v20 = vmul.f32 %v2548_v39, %v129_v4 }
  0x66   :  { %v1715_v17 = vpack.c.bf16 %v521_v8, %v520_v7  ;;  %1814 = vst [vmem:[%s2702_s3 + $0x1a8] sm:$0xff] %v1710_v12   ;;  %v397_v22 = vadd.f32 %v2536_v35, %v262_v14  ;;  %v524_v23 = vmax.f32 %v396_v15, 0.0  ;;  %v265_v24 = vmul.f32 %v2548_v39, %v130_v10 }
  0x67   :  { %v266_v25 = vmul.f32 %v2548_v39, %v131_v11  ;;  %v1720_v27 = vpack.c.bf16 %v523_v18, %v522_v13  ;;  %v398_v28 = vadd.f32 %v2536_v35, %v263_v19  ;;  %v399_v29 = vadd.f32 %v2536_v35, %v264_v20 }
  0x68   :  { %1815 = vst [vmem:[%s2702_s3 + $0x1b0] sm:$0xff] %v1715_v17   ;;  %v267_v30 = vmul.f32 %v2548_v39, %v132_v16  ;;  %v525_v31 = vmax.f32 %v397_v22, 0.0  ;;  %v400_v32 = vadd.f32 %v2536_v35, %v265_v24  ;;  %v268_v34 = vmul.f32 %v2548_v39, %v133_v21 }
  0x69   :  { %v401_v33 = vadd.f32 %v2536_v35, %v266_v25  ;;  %1816 = vst [vmem:[%s2702_s3 + $0x1b8] sm:$0xff] %v1720_v27   ;;  %v526_v2 = vmax.f32 %v398_v28, 0.0  ;;  %v527_v36 = vmax.f32 %v399_v29, 0.0  ;;  %v269_v38 = vmul.f32 %v2548_v39, %v134_v26 }
  0x6a   :  { %v402_v37 = vadd.f32 %v2536_v35, %v267_v30  ;;  %v1725_v42 = vpack.c.bf16 %v525_v31, %v524_v23  ;;  %v528_v43 = vmax.f32 %v400_v32, 0.0  ;;  %v403_v45 = vadd.f32 %v2536_v35, %v268_v34 }
  0x6b   :  { %v529_v44 = vmax.f32 %v401_v33, 0.0  ;;  %v1730_v48 = vpack.c.bf16 %v527_v36, %v526_v2  ;;  %v270_v50 = vmul.f32 %v2548_v39, %v135_v5  ;;  %v404_v51 = vadd.f32 %v2536_v35, %v269_v38 }
  0x6c   :  { %v530_v49 = vmax.f32 %v402_v37, 0.0  ;;  %1817 = vst [vmem:[%s2702_s3 + $0x1c0] sm:$0xff] %v1725_v42   ;;  %v531_v54 = vmax.f32 %v403_v45, 0.0  ;;  %v271_v55 = vmul.f32 %v2548_v39, %v136_v40  ;;  %v272_v56 = vmul.f32 %v2548_v39, %v137_v41 }
  0x6d   :  { %v1735_v53 = vpack.c.bf16 %v529_v44, %v528_v43  ;;  %1818 = vst [vmem:[%s2702_s3 + $0x1c8] sm:$0xff] %v1730_v48   ;;  %v405_v58 = vadd.f32 %v2536_v35, %v270_v50  ;;  %v532_v59 = vmax.f32 %v404_v51, 0.0  ;;  %v273_v60 = vmul.f32 %v2548_v39, %v138_v46 }
  0x6e   :  { %v274_v61 = vmul.f32 %v2548_v39, %v139_v47  ;;  %v1740_v62 = vpack.c.bf16 %v531_v54, %v530_v49  ;;  %v406_v63 = vadd.f32 %v2536_v35, %v271_v55  ;;  %v407_v0 = vadd.f32 %v2536_v35, %v272_v56 }
  0x6f   :  { %1819 = vst [vmem:[%s2702_s3 + $0x1d0] sm:$0xff] %v1735_v53   ;;  %v275_v1 = vmul.f32 %v2548_v39, %v140_v52  ;;  %v533_v3 = vmax.f32 %v405_v58, 0.0  ;;  %v408_v4 = vadd.f32 %v2536_v35, %v273_v60  ;;  %v276_v7 = vmul.f32 %v2548_v39, %v141_v57 }
  0x70   :  { %v409_v6 = vadd.f32 %v2536_v35, %v274_v61  ;;  %1820 = vst [vmem:[%s2702_s3 + $0x1d8] sm:$0xff] %v1740_v62   ;;  %v534_v8 = vmax.f32 %v406_v63, 0.0  ;;  %v535_v9 = vmax.f32 %v407_v0, 0.0 }
  0x71   :  { %v410_v10 = vadd.f32 %v2536_v35, %v275_v1  ;;  %v1745_v11 = vpack.c.bf16 %v533_v3, %v532_v59  ;;  %v536_v12 = vmax.f32 %v408_v4, 0.0  ;;  %v411_v14 = vadd.f32 %v2536_v35, %v276_v7 }
  0x72   :  { %v537_v13 = vmax.f32 %v409_v6, 0.0  ;;  %v1750_v15 = vpack.c.bf16 %v535_v9, %v534_v8 }
  0x73   :  { %v538_v16 = vmax.f32 %v410_v10, 0.0  ;;  %1821 = vst [vmem:[%s2702_s3 + $0x1e0] sm:$0xff] %v1745_v11   ;;  %v539_v17 = vmax.f32 %v411_v14, 0.0 }
  0x74   :  { %v1755_v39 = vpack.c.bf16 %v537_v13, %v536_v12  ;;  %1822 = vst [vmem:[%s2702_s3 + $0x1e8] sm:$0xff] %v1750_v15  }
  0x75   :  { %v1760_v18 = vpack.c.bf16 %v539_v17, %v538_v16 }
  0x76   :  { %1823 = vst [vmem:[%s2702_s3 + $0x1f0] sm:$0xff] %v1755_v39  }
  0x77   :  { %1824 = vst [vmem:[%s2702_s3 + $0x1f8] sm:$0xff] %v1760_v18  }

// kernel: split_forward.25
= control target key start
LH: loop header
LB: loop body
LE: loop exit
PB: predicated region body
PF: predicated region fallthrough
CT: control target
= control target key end

     0   :  { %s1740_s0 = inlined_call_operand.vmem [shape: f32[1024,128], index: 0, kind: input, shape index: {}, may-alias: {0,3}]   ;;  %s1741_s1 = inlined_call_operand.vmem [shape: f32[1,128], index: 1, kind: input, shape index: {}]   ;;  %s1742_s2 = inlined_call_operand.vmem [shape: f32[1,128], index: 2, kind: input, shape index: {}]   ;;  %s1743_s3 = inlined_call_operand.vmem [shape: f32[1024,128], index: 3, kind: output, shape index: {}, may-alias: {0,3}]  }
   0x1   :  { %v14_v0 = vld [vmem:[%s1740_s0] sm:$0xff]  ;;  %v15_v4 = vld [vmem:[%s1740_s0 + $0x8] sm:$0xff]  ;;  %v16_v5 = vld [vmem:[%s1740_s0 + $0x10] sm:$0xff] }
   0x2   :  { %v702_v1 = vld [vmem:[%s1741_s1] ss:$0 sm:$0xff]  ;;  %v17_v6 = vld [vmem:[%s1740_s0 + $0x18] sm:$0xff]  ;;  %v19_v11 = vld [vmem:[%s1740_s0 + $0x28] sm:$0xff] }
   0x3   :  { %v707_v2 = vld [vmem:[%s1742_s2] ss:$0 sm:$0xff]  ;;  %v149_v3 = vmul.f32 %v702_v1, %v14_v0  ;;  %v150_v7 = vmul.f32 %v702_v1, %v15_v4  ;;  %v151_v8 = vmul.f32 %v702_v1, %v16_v5  ;;  %v152_v9 = vmul.f32 %v702_v1, %v17_v6  ;;  %v20_v12 = vld [vmem:[%s1740_s0 + $0x30] sm:$0xff]  ;;  %v21_v17 = vld [vmem:[%s1740_s0 + $0x38] sm:$0xff] }
   0x4   :  { %v18_v10 = vld [vmem:[%s1740_s0 + $0x20] sm:$0xff]  ;;  %v154_v15 = vmul.f32 %v702_v1, %v19_v11  ;;  %v155_v16 = vmul.f32 %v702_v1, %v20_v12  ;;  %v156_v21 = vmul.f32 %v702_v1, %v21_v17  ;;  %v23_v27 = vld [vmem:[%s1740_s0 + $0x48] sm:$0xff]  ;;  %v24_v28 = vld [vmem:[%s1740_s0 + $0x50] sm:$0xff] }
   0x5   :  { %v284_v13 = vadd.f32 %v707_v2, %v149_v3  ;;  %v153_v14 = vmul.f32 %v702_v1, %v18_v10  ;;  %v285_v18 = vadd.f32 %v707_v2, %v150_v7  ;;  %v286_v19 = vadd.f32 %v707_v2, %v151_v8  ;;  %v22_v22 = vld [vmem:[%s1740_s0 + $0x40] sm:$0xff]  ;;  %v25_v29 = vld [vmem:[%s1740_s0 + $0x58] sm:$0xff]  ;;  %v27_v35 = vld [vmem:[%s1740_s0 + $0x68] sm:$0xff] }
   0x6   :  { %v287_v20 = vadd.f32 %v707_v2, %v152_v9  ;;  %v289_v25 = vadd.f32 %v707_v2, %v154_v15  ;;  %v290_v26 = vadd.f32 %v707_v2, %v155_v16  ;;  %v291_v33 = vadd.f32 %v707_v2, %v156_v21  ;;  %v26_v34 = vld [vmem:[%s1740_s0 + $0x60] sm:$0xff]  ;;  %v28_v36 = vld [vmem:[%s1740_s0 + $0x70] sm:$0xff] }
   0x7   :  { %v412_v23 = vmax.f32 %v284_v13, 0.0  ;;  %v288_v24 = vadd.f32 %v707_v2, %v153_v14  ;;  %v413_v30 = vmax.f32 %v285_v18, 0.0  ;;  %v414_v31 = vmax.f32 %v286_v19, 0.0 }
   0x8   :  { %v415_v32 = vmax.f32 %v287_v20, 0.0  ;;  %v417_v38 = vmax.f32 %v289_v25, 0.0  ;;  %v418_v39 = vmax.f32 %v290_v26, 0.0  ;;  %v157_v40 = vmul.f32 %v702_v1, %v22_v22 }
   0x9   :  { %540 = vst [vmem:[%s1743_s3] sm:$0xff] %v412_v23  ;;  %v416_v37 = vmax.f32 %v288_v24, 0.0  ;;  %v419_v42 = vmax.f32 %v291_v33, 0.0  ;;  %v158_v43 = vmul.f32 %v702_v1, %v23_v27  ;;  %v159_v44 = vmul.f32 %v702_v1, %v24_v28 }
   0xa   :  { %v160_v45 = vmul.f32 %v702_v1, %v25_v29  ;;  %v292_v46 = vadd.f32 %v707_v2, %v157_v40  ;;  %v161_v47 = vmul.f32 %v702_v1, %v26_v34  ;;  %v162_v48 = vmul.f32 %v702_v1, %v27_v35 }
   0xb   :  { %v163_v49 = vmul.f32 %v702_v1, %v28_v36  ;;  %v293_v50 = vadd.f32 %v707_v2, %v158_v43  ;;  %v294_v51 = vadd.f32 %v707_v2, %v159_v44 }
   0xc   :  { %v295_v52 = vadd.f32 %v707_v2, %v160_v45  ;;  %v420_v55 = vmax.f32 %v292_v46, 0.0  ;;  %v296_v56 = vadd.f32 %v707_v2, %v161_v47  ;;  %v297_v57 = vadd.f32 %v707_v2, %v162_v48 }
   0xd   :  { %v298_v58 = vadd.f32 %v707_v2, %v163_v49  ;;  %v421_v62 = vmax.f32 %v293_v50, 0.0  ;;  %v422_v63 = vmax.f32 %v294_v51, 0.0 }
   0xe   :  { %v423_v0 = vmax.f32 %v295_v52, 0.0  ;;  %v424_v7 = vmax.f32 %v296_v56, 0.0  ;;  %v425_v8 = vmax.f32 %v297_v57, 0.0 }
   0xf   :  { %v426_v9 = vmax.f32 %v298_v58, 0.0 }
  0x10   :  { %v29_v41 = vld [vmem:[%s1740_s0 + $0x78] sm:$0xff] }
  0x11   :  { %541 = vst [vmem:[%s1743_s3 + $0x8] sm:$0xff] %v413_v30  ;;  %542 = vst [vmem:[%s1743_s3 + $0x10] sm:$0xff] %v414_v31  ;;  %v164_v53 = vmul.f32 %v702_v1, %v29_v41 }
  0x12   :  { %543 = vst [vmem:[%s1743_s3 + $0x18] sm:$0xff] %v415_v32  ;;  %544 = vst [vmem:[%s1743_s3 + $0x20] sm:$0xff] %v416_v37 }
  0x13   :  { %545 = vst [vmem:[%s1743_s3 + $0x28] sm:$0xff] %v417_v38  ;;  %546 = vst [vmem:[%s1743_s3 + $0x30] sm:$0xff] %v418_v39  ;;  %v299_v3 = vadd.f32 %v707_v2, %v164_v53 }
  0x14   :  { %547 = vst [vmem:[%s1743_s3 + $0x38] sm:$0xff] %v419_v42 }
  0x15   :  { %v427_v12 = vmax.f32 %v299_v3, 0.0 }
  0x1b   :  { %v30_v54 = vld [vmem:[%s1740_s0 + $0x80] sm:$0xff]  ;;  %v31_v59 = vld [vmem:[%s1740_s0 + $0x88] sm:$0xff]  ;;  %v32_v60 = vld [vmem:[%s1740_s0 + $0x90] sm:$0xff] }
  0x1c   :  { %v33_v61 = vld [vmem:[%s1740_s0 + $0x98] sm:$0xff]  ;;  %v34_v4 = vld [vmem:[%s1740_s0 + $0xa0] sm:$0xff]  ;;  %v35_v5 = vld [vmem:[%s1740_s0 + $0xa8] sm:$0xff]  ;;  %v165_v10 = vmul.f32 %v702_v1, %v30_v54  ;;  %v166_v13 = vmul.f32 %v702_v1, %v31_v59  ;;  %v167_v14 = vmul.f32 %v702_v1, %v32_v60 }
  0x1d   :  { %v36_v6 = vld [vmem:[%s1740_s0 + $0xb0] sm:$0xff]  ;;  %v168_v15 = vmul.f32 %v702_v1, %v33_v61  ;;  %v169_v17 = vmul.f32 %v702_v1, %v34_v4  ;;  %v170_v18 = vmul.f32 %v702_v1, %v35_v5 }
  0x1e   :  { %548 = vst [vmem:[%s1743_s3 + $0x40] sm:$0xff] %v420_v55  ;;  %v300_v16 = vadd.f32 %v707_v2, %v165_v10  ;;  %v171_v19 = vmul.f32 %v702_v1, %v36_v6  ;;  %v301_v20 = vadd.f32 %v707_v2, %v166_v13  ;;  %v302_v21 = vadd.f32 %v707_v2, %v167_v14 }
  0x1f   :  { %v303_v22 = vadd.f32 %v707_v2, %v168_v15  ;;  %v304_v26 = vadd.f32 %v707_v2, %v169_v17  ;;  %v305_v27 = vadd.f32 %v707_v2, %v170_v18 }
  0x20   :  { %v428_v25 = vmax.f32 %v300_v16, 0.0  ;;  %v306_v28 = vadd.f32 %v707_v2, %v171_v19  ;;  %v429_v32 = vmax.f32 %v301_v20, 0.0  ;;  %v430_v33 = vmax.f32 %v302_v21, 0.0 }
  0x21   :  { %v431_v34 = vmax.f32 %v303_v22, 0.0  ;;  %v432_v39 = vmax.f32 %v304_v26, 0.0  ;;  %v433_v40 = vmax.f32 %v305_v27, 0.0 }
  0x22   :  { %v434_v41 = vmax.f32 %v306_v28, 0.0 }
  0x25   :  { %v37_v11 = vld [vmem:[%s1740_s0 + $0xb8] sm:$0xff] }
  0x26   :  { %549 = vst [vmem:[%s1743_s3 + $0x48] sm:$0xff] %v421_v62  ;;  %550 = vst [vmem:[%s1743_s3 + $0x50] sm:$0xff] %v422_v63  ;;  %v172_v23 = vmul.f32 %v702_v1, %v37_v11 }
  0x27   :  { %551 = vst [vmem:[%s1743_s3 + $0x58] sm:$0xff] %v423_v0  ;;  %552 = vst [vmem:[%s1743_s3 + $0x60] sm:$0xff] %v424_v7 }
  0x28   :  { %553 = vst [vmem:[%s1743_s3 + $0x68] sm:$0xff] %v425_v8  ;;  %554 = vst [vmem:[%s1743_s3 + $0x70] sm:$0xff] %v426_v9  ;;  %v307_v35 = vadd.f32 %v707_v2, %v172_v23 }
  0x29   :  { %555 = vst [vmem:[%s1743_s3 + $0x78] sm:$0xff] %v427_v12 }
  0x2a   :  { %v435_v44 = vmax.f32 %v307_v35, 0.0 }
  0x30   :  { %v38_v24 = vld [vmem:[%s1740_s0 + $0xc0] sm:$0xff]  ;;  %v39_v29 = vld [vmem:[%s1740_s0 + $0xc8] sm:$0xff]  ;;  %v40_v30 = vld [vmem:[%s1740_s0 + $0xd0] sm:$0xff] }
  0x31   :  { %v41_v31 = vld [vmem:[%s1740_s0 + $0xd8] sm:$0xff]  ;;  %v42_v36 = vld [vmem:[%s1740_s0 + $0xe0] sm:$0xff]  ;;  %v43_v37 = vld [vmem:[%s1740_s0 + $0xe8] sm:$0xff]  ;;  %v173_v42 = vmul.f32 %v702_v1, %v38_v24  ;;  %v174_v45 = vmul.f32 %v702_v1, %v39_v29  ;;  %v175_v46 = vmul.f32 %v702_v1, %v40_v30 }
  0x32   :  { %v44_v38 = vld [vmem:[%s1740_s0 + $0xf0] sm:$0xff]  ;;  %v176_v47 = vmul.f32 %v702_v1, %v41_v31  ;;  %v177_v49 = vmul.f32 %v702_v1, %v42_v36  ;;  %v178_v50 = vmul.f32 %v702_v1, %v43_v37 }
  0x33   :  { %556 = vst [vmem:[%s1743_s3 + $0x80] sm:$0xff] %v428_v25  ;;  %v308_v48 = vadd.f32 %v707_v2, %v173_v42  ;;  %v179_v51 = vmul.f32 %v702_v1, %v44_v38  ;;  %v309_v52 = vadd.f32 %v707_v2, %v174_v45  ;;  %v310_v53 = vadd.f32 %v707_v2, %v175_v46 }
  0x34   :  { %v311_v54 = vadd.f32 %v707_v2, %v176_v47  ;;  %v312_v58 = vadd.f32 %v707_v2, %v177_v49  ;;  %v313_v59 = vadd.f32 %v707_v2, %v178_v50 }
  0x35   :  { %v436_v57 = vmax.f32 %v308_v48, 0.0  ;;  %v314_v60 = vadd.f32 %v707_v2, %v179_v51  ;;  %v437_v0 = vmax.f32 %v309_v52, 0.0  ;;  %v438_v3 = vmax.f32 %v310_v53, 0.0 }
  0x36   :  { %v439_v4 = vmax.f32 %v311_v54, 0.0  ;;  %v440_v9 = vmax.f32 %v312_v58, 0.0  ;;  %v441_v10 = vmax.f32 %v313_v59, 0.0 }
  0x37   :  { %v442_v11 = vmax.f32 %v314_v60, 0.0 }
  0x3a   :  { %v45_v43 = vld [vmem:[%s1740_s0 + $0xf8] sm:$0xff] }
  0x3b   :  { %557 = vst [vmem:[%s1743_s3 + $0x88] sm:$0xff] %v429_v32  ;;  %558 = vst [vmem:[%s1743_s3 + $0x90] sm:$0xff] %v430_v33  ;;  %v180_v55 = vmul.f32 %v702_v1, %v45_v43 }
  0x3c   :  { %559 = vst [vmem:[%s1743_s3 + $0x98] sm:$0xff] %v431_v34  ;;  %560 = vst [vmem:[%s1743_s3 + $0xa0] sm:$0xff] %v432_v39 }
  0x3d   :  { %561 = vst [vmem:[%s1743_s3 + $0xa8] sm:$0xff] %v433_v40  ;;  %562 = vst [vmem:[%s1743_s3 + $0xb0] sm:$0xff] %v434_v41  ;;  %v315_v5 = vadd.f32 %v707_v2, %v180_v55 }
  0x3e   :  { %563 = vst [vmem:[%s1743_s3 + $0xb8] sm:$0xff] %v435_v44 }
  0x3f   :  { %v443_v14 = vmax.f32 %v315_v5, 0.0 }
  0x45   :  { %v46_v56 = vld [vmem:[%s1740_s0 + $0x100] sm:$0xff]  ;;  %v47_v61 = vld [vmem:[%s1740_s0 + $0x108] sm:$0xff]  ;;  %v48_v62 = vld [vmem:[%s1740_s0 + $0x110] sm:$0xff] }
  0x46   :  { %v49_v63 = vld [vmem:[%s1740_s0 + $0x118] sm:$0xff]  ;;  %v50_v6 = vld [vmem:[%s1740_s0 + $0x120] sm:$0xff]  ;;  %v51_v7 = vld [vmem:[%s1740_s0 + $0x128] sm:$0xff]  ;;  %v181_v12 = vmul.f32 %v702_v1, %v46_v56  ;;  %v182_v15 = vmul.f32 %v702_v1, %v47_v61  ;;  %v183_v16 = vmul.f32 %v702_v1, %v48_v62 }
  0x47   :  { %v52_v8 = vld [vmem:[%s1740_s0 + $0x130] sm:$0xff]  ;;  %v184_v17 = vmul.f32 %v702_v1, %v49_v63  ;;  %v185_v19 = vmul.f32 %v702_v1, %v50_v6  ;;  %v186_v20 = vmul.f32 %v702_v1, %v51_v7 }
  0x48   :  { %564 = vst [vmem:[%s1743_s3 + $0xc0] sm:$0xff] %v436_v57  ;;  %v316_v18 = vadd.f32 %v707_v2, %v181_v12  ;;  %v187_v21 = vmul.f32 %v702_v1, %v52_v8  ;;  %v317_v22 = vadd.f32 %v707_v2, %v182_v15  ;;  %v318_v23 = vadd.f32 %v707_v2, %v183_v16 }
  0x49   :  { %v319_v24 = vadd.f32 %v707_v2, %v184_v17  ;;  %v320_v28 = vadd.f32 %v707_v2, %v185_v19  ;;  %v321_v29 = vadd.f32 %v707_v2, %v186_v20 }
  0x4a   :  { %v444_v27 = vmax.f32 %v316_v18, 0.0  ;;  %v322_v30 = vadd.f32 %v707_v2, %v187_v21  ;;  %v445_v34 = vmax.f32 %v317_v22, 0.0  ;;  %v446_v35 = vmax.f32 %v318_v23, 0.0 }
  0x4b   :  { %v447_v36 = vmax.f32 %v319_v24, 0.0  ;;  %v448_v41 = vmax.f32 %v320_v28, 0.0  ;;  %v449_v42 = vmax.f32 %v321_v29, 0.0 }
  0x4c   :  { %v450_v43 = vmax.f32 %v322_v30, 0.0 }
  0x4f   :  { %v53_v13 = vld [vmem:[%s1740_s0 + $0x138] sm:$0xff] }
  0x50   :  { %565 = vst [vmem:[%s1743_s3 + $0xc8] sm:$0xff] %v437_v0  ;;  %566 = vst [vmem:[%s1743_s3 + $0xd0] sm:$0xff] %v438_v3  ;;  %v188_v25 = vmul.f32 %v702_v1, %v53_v13 }
  0x51   :  { %567 = vst [vmem:[%s1743_s3 + $0xd8] sm:$0xff] %v439_v4  ;;  %568 = vst [vmem:[%s1743_s3 + $0xe0] sm:$0xff] %v440_v9 }
  0x52   :  { %569 = vst [vmem:[%s1743_s3 + $0xe8] sm:$0xff] %v441_v10  ;;  %570 = vst [vmem:[%s1743_s3 + $0xf0] sm:$0xff] %v442_v11  ;;  %v323_v37 = vadd.f32 %v707_v2, %v188_v25 }
  0x53   :  { %571 = vst [vmem:[%s1743_s3 + $0xf8] sm:$0xff] %v443_v14 }
  0x54   :  { %v451_v46 = vmax.f32 %v323_v37, 0.0 }
  0x5a   :  { %v54_v26 = vld [vmem:[%s1740_s0 + $0x140] sm:$0xff]  ;;  %v55_v31 = vld [vmem:[%s1740_s0 + $0x148] sm:$0xff]  ;;  %v56_v32 = vld [vmem:[%s1740_s0 + $0x150] sm:$0xff] }
  0x5b   :  { %v57_v33 = vld [vmem:[%s1740_s0 + $0x158] sm:$0xff]  ;;  %v58_v38 = vld [vmem:[%s1740_s0 + $0x160] sm:$0xff]  ;;  %v59_v39 = vld [vmem:[%s1740_s0 + $0x168] sm:$0xff]  ;;  %v189_v44 = vmul.f32 %v702_v1, %v54_v26  ;;  %v190_v47 = vmul.f32 %v702_v1, %v55_v31  ;;  %v191_v48 = vmul.f32 %v702_v1, %v56_v32 }
  0x5c   :  { %v60_v40 = vld [vmem:[%s1740_s0 + $0x170] sm:$0xff]  ;;  %v192_v49 = vmul.f32 %v702_v1, %v57_v33  ;;  %v193_v51 = vmul.f32 %v702_v1, %v58_v38  ;;  %v194_v52 = vmul.f32 %v702_v1, %v59_v39 }
  0x5d   :  { %572 = vst [vmem:[%s1743_s3 + $0x100] sm:$0xff] %v444_v27  ;;  %v324_v50 = vadd.f32 %v707_v2, %v189_v44  ;;  %v195_v53 = vmul.f32 %v702_v1, %v60_v40  ;;  %v325_v54 = vadd.f32 %v707_v2, %v190_v47  ;;  %v326_v55 = vadd.f32 %v707_v2, %v191_v48 }
  0x5e   :  { %v327_v56 = vadd.f32 %v707_v2, %v192_v49  ;;  %v328_v60 = vadd.f32 %v707_v2, %v193_v51  ;;  %v329_v61 = vadd.f32 %v707_v2, %v194_v52 }
  0x5f   :  { %v452_v59 = vmax.f32 %v324_v50, 0.0  ;;  %v330_v62 = vadd.f32 %v707_v2, %v195_v53  ;;  %v453_v4 = vmax.f32 %v325_v54, 0.0  ;;  %v454_v5 = vmax.f32 %v326_v55, 0.0 }
  0x60   :  { %v455_v6 = vmax.f32 %v327_v56, 0.0  ;;  %v456_v11 = vmax.f32 %v328_v60, 0.0  ;;  %v457_v12 = vmax.f32 %v329_v61, 0.0 }
  0x61   :  { %v458_v13 = vmax.f32 %v330_v62, 0.0 }
  0x64   :  { %v61_v45 = vld [vmem:[%s1740_s0 + $0x178] sm:$0xff] }
  0x65   :  { %573 = vst [vmem:[%s1743_s3 + $0x108] sm:$0xff] %v445_v34  ;;  %574 = vst [vmem:[%s1743_s3 + $0x110] sm:$0xff] %v446_v35  ;;  %v196_v57 = vmul.f32 %v702_v1, %v61_v45 }
  0x66   :  { %575 = vst [vmem:[%s1743_s3 + $0x118] sm:$0xff] %v447_v36  ;;  %576 = vst [vmem:[%s1743_s3 + $0x120] sm:$0xff] %v448_v41 }
  0x67   :  { %577 = vst [vmem:[%s1743_s3 + $0x128] sm:$0xff] %v449_v42  ;;  %578 = vst [vmem:[%s1743_s3 + $0x130] sm:$0xff] %v450_v43  ;;  %v331_v7 = vadd.f32 %v707_v2, %v196_v57 }
  0x68   :  { %579 = vst [vmem:[%s1743_s3 + $0x138] sm:$0xff] %v451_v46 }
  0x69   :  { %v459_v16 = vmax.f32 %v331_v7, 0.0 }
  0x6f   :  { %v62_v58 = vld [vmem:[%s1740_s0 + $0x180] sm:$0xff]  ;;  %v63_v63 = vld [vmem:[%s1740_s0 + $0x188] sm:$0xff]  ;;  %v64_v0 = vld [vmem:[%s1740_s0 + $0x190] sm:$0xff] }
  0x70   :  { %v65_v3 = vld [vmem:[%s1740_s0 + $0x198] sm:$0xff]  ;;  %v66_v8 = vld [vmem:[%s1740_s0 + $0x1a0] sm:$0xff]  ;;  %v67_v9 = vld [vmem:[%s1740_s0 + $0x1a8] sm:$0xff]  ;;  %v197_v14 = vmul.f32 %v702_v1, %v62_v58  ;;  %v198_v17 = vmul.f32 %v702_v1, %v63_v63  ;;  %v199_v18 = vmul.f32 %v702_v1, %v64_v0 }
  0x71   :  { %v68_v10 = vld [vmem:[%s1740_s0 + $0x1b0] sm:$0xff]  ;;  %v200_v19 = vmul.f32 %v702_v1, %v65_v3  ;;  %v201_v21 = vmul.f32 %v702_v1, %v66_v8  ;;  %v202_v22 = vmul.f32 %v702_v1, %v67_v9 }
  0x72   :  { %580 = vst [vmem:[%s1743_s3 + $0x140] sm:$0xff] %v452_v59  ;;  %v332_v20 = vadd.f32 %v707_v2, %v197_v14  ;;  %v203_v23 = vmul.f32 %v702_v1, %v68_v10  ;;  %v333_v24 = vadd.f32 %v707_v2, %v198_v17  ;;  %v334_v25 = vadd.f32 %v707_v2, %v199_v18 }
  0x73   :  { %v335_v26 = vadd.f32 %v707_v2, %v200_v19  ;;  %v336_v30 = vadd.f32 %v707_v2, %v201_v21  ;;  %v337_v31 = vadd.f32 %v707_v2, %v202_v22 }
  0x74   :  { %v460_v29 = vmax.f32 %v332_v20, 0.0  ;;  %v338_v32 = vadd.f32 %v707_v2, %v203_v23  ;;  %v461_v36 = vmax.f32 %v333_v24, 0.0  ;;  %v462_v37 = vmax.f32 %v334_v25, 0.0 }
  0x75   :  { %v463_v38 = vmax.f32 %v335_v26, 0.0  ;;  %v464_v43 = vmax.f32 %v336_v30, 0.0  ;;  %v465_v44 = vmax.f32 %v337_v31, 0.0 }
  0x76   :  { %v466_v45 = vmax.f32 %v338_v32, 0.0 }
  0x79   :  { %v69_v15 = vld [vmem:[%s1740_s0 + $0x1b8] sm:$0xff] }
  0x7a   :  { %581 = vst [vmem:[%s1743_s3 + $0x148] sm:$0xff] %v453_v4  ;;  %582 = vst [vmem:[%s1743_s3 + $0x150] sm:$0xff] %v454_v5  ;;  %v204_v27 = vmul.f32 %v702_v1, %v69_v15 }
  0x7b   :  { %583 = vst [vmem:[%s1743_s3 + $0x158] sm:$0xff] %v455_v6  ;;  %584 = vst [vmem:[%s1743_s3 + $0x160] sm:$0xff] %v456_v11 }
  0x7c   :  { %585 = vst [vmem:[%s1743_s3 + $0x168] sm:$0xff] %v457_v12  ;;  %586 = vst [vmem:[%s1743_s3 + $0x170] sm:$0xff] %v458_v13  ;;  %v339_v39 = vadd.f32 %v707_v2, %v204_v27 }
  0x7d   :  { %587 = vst [vmem:[%s1743_s3 + $0x178] sm:$0xff] %v459_v16 }
  0x7e   :  { %v467_v48 = vmax.f32 %v339_v39, 0.0 }
  0x84   :  { %v70_v28 = vld [vmem:[%s1740_s0 + $0x1c0] sm:$0xff]  ;;  %v71_v33 = vld [vmem:[%s1740_s0 + $0x1c8] sm:$0xff]  ;;  %v72_v34 = vld [vmem:[%s1740_s0 + $0x1d0] sm:$0xff] }
  0x85   :  { %v73_v35 = vld [vmem:[%s1740_s0 + $0x1d8] sm:$0xff]  ;;  %v74_v40 = vld [vmem:[%s1740_s0 + $0x1e0] sm:$0xff]  ;;  %v75_v41 = vld [vmem:[%s1740_s0 + $0x1e8] sm:$0xff]  ;;  %v205_v46 = vmul.f32 %v702_v1, %v70_v28  ;;  %v206_v49 = vmul.f32 %v702_v1, %v71_v33  ;;  %v207_v50 = vmul.f32 %v702_v1, %v72_v34 }
  0x86   :  { %v76_v42 = vld [vmem:[%s1740_s0 + $0x1f0] sm:$0xff]  ;;  %v208_v51 = vmul.f32 %v702_v1, %v73_v35  ;;  %v209_v53 = vmul.f32 %v702_v1, %v74_v40  ;;  %v210_v54 = vmul.f32 %v702_v1, %v75_v41 }
  0x87   :  { %588 = vst [vmem:[%s1743_s3 + $0x180] sm:$0xff] %v460_v29  ;;  %v340_v52 = vadd.f32 %v707_v2, %v205_v46  ;;  %v211_v55 = vmul.f32 %v702_v1, %v76_v42  ;;  %v341_v56 = vadd.f32 %v707_v2, %v206_v49  ;;  %v342_v57 = vadd.f32 %v707_v2, %v207_v50 }
  0x88   :  { %v343_v58 = vadd.f32 %v707_v2, %v208_v51  ;;  %v344_v62 = vadd.f32 %v707_v2, %v209_v53  ;;  %v345_v63 = vadd.f32 %v707_v2, %v210_v54 }
  0x89   :  { %v468_v61 = vmax.f32 %v340_v52, 0.0  ;;  %v346_v0 = vadd.f32 %v707_v2, %v211_v55  ;;  %v469_v6 = vmax.f32 %v341_v56, 0.0  ;;  %v470_v7 = vmax.f32 %v342_v57, 0.0 }
  0x8a   :  { %v471_v8 = vmax.f32 %v343_v58, 0.0  ;;  %v472_v13 = vmax.f32 %v344_v62, 0.0  ;;  %v473_v14 = vmax.f32 %v345_v63, 0.0 }
  0x8b   :  { %v474_v15 = vmax.f32 %v346_v0, 0.0 }
  0x8e   :  { %v77_v47 = vld [vmem:[%s1740_s0 + $0x1f8] sm:$0xff] }
  0x8f   :  { %589 = vst [vmem:[%s1743_s3 + $0x188] sm:$0xff] %v461_v36  ;;  %590 = vst [vmem:[%s1743_s3 + $0x190] sm:$0xff] %v462_v37  ;;  %v212_v59 = vmul.f32 %v702_v1, %v77_v47 }
  0x90   :  { %591 = vst [vmem:[%s1743_s3 + $0x198] sm:$0xff] %v463_v38  ;;  %592 = vst [vmem:[%s1743_s3 + $0x1a0] sm:$0xff] %v464_v43 }
  0x91   :  { %593 = vst [vmem:[%s1743_s3 + $0x1a8] sm:$0xff] %v465_v44  ;;  %594 = vst [vmem:[%s1743_s3 + $0x1b0] sm:$0xff] %v466_v45  ;;  %v347_v9 = vadd.f32 %v707_v2, %v212_v59 }
  0x92   :  { %595 = vst [vmem:[%s1743_s3 + $0x1b8] sm:$0xff] %v467_v48 }
  0x93   :  { %v475_v18 = vmax.f32 %v347_v9, 0.0 }
  0x99   :  { %v78_v60 = vld [vmem:[%s1740_s0 + $0x200] sm:$0xff]  ;;  %v79_v3 = vld [vmem:[%s1740_s0 + $0x208] sm:$0xff]  ;;  %v80_v4 = vld [vmem:[%s1740_s0 + $0x210] sm:$0xff] }
  0x9a   :  { %v81_v5 = vld [vmem:[%s1740_s0 + $0x218] sm:$0xff]  ;;  %v82_v10 = vld [vmem:[%s1740_s0 + $0x220] sm:$0xff]  ;;  %v83_v11 = vld [vmem:[%s1740_s0 + $0x228] sm:$0xff]  ;;  %v213_v16 = vmul.f32 %v702_v1, %v78_v60  ;;  %v214_v19 = vmul.f32 %v702_v1, %v79_v3  ;;  %v215_v20 = vmul.f32 %v702_v1, %v80_v4 }
  0x9b   :  { %v84_v12 = vld [vmem:[%s1740_s0 + $0x230] sm:$0xff]  ;;  %v216_v21 = vmul.f32 %v702_v1, %v81_v5  ;;  %v217_v23 = vmul.f32 %v702_v1, %v82_v10  ;;  %v218_v24 = vmul.f32 %v702_v1, %v83_v11 }
  0x9c   :  { %596 = vst [vmem:[%s1743_s3 + $0x1c0] sm:$0xff] %v468_v61  ;;  %v348_v22 = vadd.f32 %v707_v2, %v213_v16  ;;  %v219_v25 = vmul.f32 %v702_v1, %v84_v12  ;;  %v349_v26 = vadd.f32 %v707_v2, %v214_v19  ;;  %v350_v27 = vadd.f32 %v707_v2, %v215_v20 }
  0x9d   :  { %v351_v28 = vadd.f32 %v707_v2, %v216_v21  ;;  %v352_v32 = vadd.f32 %v707_v2, %v217_v23  ;;  %v353_v33 = vadd.f32 %v707_v2, %v218_v24 }
  0x9e   :  { %v476_v31 = vmax.f32 %v348_v22, 0.0  ;;  %v354_v34 = vadd.f32 %v707_v2, %v219_v25  ;;  %v477_v38 = vmax.f32 %v349_v26, 0.0  ;;  %v478_v39 = vmax.f32 %v350_v27, 0.0 }
  0x9f   :  { %v479_v40 = vmax.f32 %v351_v28, 0.0  ;;  %v480_v45 = vmax.f32 %v352_v32, 0.0  ;;  %v481_v46 = vmax.f32 %v353_v33, 0.0 }
  0xa0   :  { %v482_v47 = vmax.f32 %v354_v34, 0.0 }
  0xa3   :  { %v85_v17 = vld [vmem:[%s1740_s0 + $0x238] sm:$0xff] }
  0xa4   :  { %597 = vst [vmem:[%s1743_s3 + $0x1c8] sm:$0xff] %v469_v6  ;;  %598 = vst [vmem:[%s1743_s3 + $0x1d0] sm:$0xff] %v470_v7  ;;  %v220_v29 = vmul.f32 %v702_v1, %v85_v17 }
  0xa5   :  { %599 = vst [vmem:[%s1743_s3 + $0x1d8] sm:$0xff] %v471_v8  ;;  %600 = vst [vmem:[%s1743_s3 + $0x1e0] sm:$0xff] %v472_v13 }
  0xa6   :  { %601 = vst [vmem:[%s1743_s3 + $0x1e8] sm:$0xff] %v473_v14  ;;  %602 = vst [vmem:[%s1743_s3 + $0x1f0] sm:$0xff] %v474_v15  ;;  %v355_v41 = vadd.f32 %v707_v2, %v220_v29 }
  0xa7   :  { %603 = vst [vmem:[%s1743_s3 + $0x1f8] sm:$0xff] %v475_v18 }
  0xa8   :  { %v483_v50 = vmax.f32 %v355_v41, 0.0 }
  0xae   :  { %v86_v30 = vld [vmem:[%s1740_s0 + $0x240] sm:$0xff]  ;;  %v87_v35 = vld [vmem:[%s1740_s0 + $0x248] sm:$0xff]  ;;  %v88_v36 = vld [vmem:[%s1740_s0 + $0x250] sm:$0xff] }
  0xaf   :  { %v89_v37 = vld [vmem:[%s1740_s0 + $0x258] sm:$0xff]  ;;  %v90_v42 = vld [vmem:[%s1740_s0 + $0x260] sm:$0xff]  ;;  %v91_v43 = vld [vmem:[%s1740_s0 + $0x268] sm:$0xff]  ;;  %v221_v48 = vmul.f32 %v702_v1, %v86_v30  ;;  %v222_v51 = vmul.f32 %v702_v1, %v87_v35  ;;  %v223_v52 = vmul.f32 %v702_v1, %v88_v36 }
  0xb0   :  { %v92_v44 = vld [vmem:[%s1740_s0 + $0x270] sm:$0xff]  ;;  %v224_v53 = vmul.f32 %v702_v1, %v89_v37  ;;  %v225_v55 = vmul.f32 %v702_v1, %v90_v42  ;;  %v226_v56 = vmul.f32 %v702_v1, %v91_v43 }
  0xb1   :  { %604 = vst [vmem:[%s1743_s3 + $0x200] sm:$0xff] %v476_v31  ;;  %v356_v54 = vadd.f32 %v707_v2, %v221_v48  ;;  %v227_v57 = vmul.f32 %v702_v1, %v92_v44  ;;  %v357_v58 = vadd.f32 %v707_v2, %v222_v51  ;;  %v358_v59 = vadd.f32 %v707_v2, %v223_v52 }
  0xb2   :  { %v359_v60 = vadd.f32 %v707_v2, %v224_v53  ;;  %v360_v0 = vadd.f32 %v707_v2, %v225_v55  ;;  %v361_v3 = vadd.f32 %v707_v2, %v226_v56 }
  0xb3   :  { %v484_v63 = vmax.f32 %v356_v54, 0.0  ;;  %v362_v4 = vadd.f32 %v707_v2, %v227_v57  ;;  %v485_v8 = vmax.f32 %v357_v58, 0.0  ;;  %v486_v9 = vmax.f32 %v358_v59, 0.0 }
  0xb4   :  { %v487_v10 = vmax.f32 %v359_v60, 0.0  ;;  %v488_v15 = vmax.f32 %v360_v0, 0.0  ;;  %v489_v16 = vmax.f32 %v361_v3, 0.0 }
  0xb5   :  { %v490_v17 = vmax.f32 %v362_v4, 0.0 }
  0xb8   :  { %v93_v49 = vld [vmem:[%s1740_s0 + $0x278] sm:$0xff] }
  0xb9   :  { %605 = vst [vmem:[%s1743_s3 + $0x208] sm:$0xff] %v477_v38  ;;  %606 = vst [vmem:[%s1743_s3 + $0x210] sm:$0xff] %v478_v39  ;;  %v228_v61 = vmul.f32 %v702_v1, %v93_v49 }
  0xba   :  { %607 = vst [vmem:[%s1743_s3 + $0x218] sm:$0xff] %v479_v40  ;;  %608 = vst [vmem:[%s1743_s3 + $0x220] sm:$0xff] %v480_v45 }
  0xbb   :  { %609 = vst [vmem:[%s1743_s3 + $0x228] sm:$0xff] %v481_v46  ;;  %610 = vst [vmem:[%s1743_s3 + $0x230] sm:$0xff] %v482_v47  ;;  %v363_v11 = vadd.f32 %v707_v2, %v228_v61 }
  0xbc   :  { %611 = vst [vmem:[%s1743_s3 + $0x238] sm:$0xff] %v483_v50 }
  0xbd   :  { %v491_v20 = vmax.f32 %v363_v11, 0.0 }
  0xc3   :  { %v94_v62 = vld [vmem:[%s1740_s0 + $0x280] sm:$0xff]  ;;  %v95_v5 = vld [vmem:[%s1740_s0 + $0x288] sm:$0xff]  ;;  %v96_v6 = vld [vmem:[%s1740_s0 + $0x290] sm:$0xff] }
  0xc4   :  { %v97_v7 = vld [vmem:[%s1740_s0 + $0x298] sm:$0xff]  ;;  %v98_v12 = vld [vmem:[%s1740_s0 + $0x2a0] sm:$0xff]  ;;  %v99_v13 = vld [vmem:[%s1740_s0 + $0x2a8] sm:$0xff]  ;;  %v229_v18 = vmul.f32 %v702_v1, %v94_v62  ;;  %v230_v21 = vmul.f32 %v702_v1, %v95_v5  ;;  %v231_v22 = vmul.f32 %v702_v1, %v96_v6 }
  0xc5   :  { %v100_v14 = vld [vmem:[%s1740_s0 + $0x2b0] sm:$0xff]  ;;  %v232_v23 = vmul.f32 %v702_v1, %v97_v7  ;;  %v233_v25 = vmul.f32 %v702_v1, %v98_v12  ;;  %v234_v26 = vmul.f32 %v702_v1, %v99_v13 }
  0xc6   :  { %612 = vst [vmem:[%s1743_s3 + $0x240] sm:$0xff] %v484_v63  ;;  %v364_v24 = vadd.f32 %v707_v2, %v229_v18  ;;  %v235_v27 = vmul.f32 %v702_v1, %v100_v14  ;;  %v365_v28 = vadd.f32 %v707_v2, %v230_v21  ;;  %v366_v29 = vadd.f32 %v707_v2, %v231_v22 }
  0xc7   :  { %v367_v30 = vadd.f32 %v707_v2, %v232_v23  ;;  %v368_v34 = vadd.f32 %v707_v2, %v233_v25  ;;  %v369_v35 = vadd.f32 %v707_v2, %v234_v26 }
  0xc8   :  { %v492_v33 = vmax.f32 %v364_v24, 0.0  ;;  %v370_v36 = vadd.f32 %v707_v2, %v235_v27  ;;  %v493_v40 = vmax.f32 %v365_v28, 0.0  ;;  %v494_v41 = vmax.f32 %v366_v29, 0.0 }
  0xc9   :  { %v495_v42 = vmax.f32 %v367_v30, 0.0  ;;  %v496_v47 = vmax.f32 %v368_v34, 0.0  ;;  %v497_v48 = vmax.f32 %v369_v35, 0.0 }
  0xca   :  { %v498_v49 = vmax.f32 %v370_v36, 0.0 }
  0xcd   :  { %v101_v19 = vld [vmem:[%s1740_s0 + $0x2b8] sm:$0xff] }
  0xce   :  { %613 = vst [vmem:[%s1743_s3 + $0x248] sm:$0xff] %v485_v8  ;;  %614 = vst [vmem:[%s1743_s3 + $0x250] sm:$0xff] %v486_v9  ;;  %v236_v31 = vmul.f32 %v702_v1, %v101_v19 }
  0xcf   :  { %615 = vst [vmem:[%s1743_s3 + $0x258] sm:$0xff] %v487_v10  ;;  %616 = vst [vmem:[%s1743_s3 + $0x260] sm:$0xff] %v488_v15 }
  0xd0   :  { %617 = vst [vmem:[%s1743_s3 + $0x268] sm:$0xff] %v489_v16  ;;  %618 = vst [vmem:[%s1743_s3 + $0x270] sm:$0xff] %v490_v17  ;;  %v371_v43 = vadd.f32 %v707_v2, %v236_v31 }
  0xd1   :  { %619 = vst [vmem:[%s1743_s3 + $0x278] sm:$0xff] %v491_v20 }
  0xd2   :  { %v499_v52 = vmax.f32 %v371_v43, 0.0 }
  0xd8   :  { %v102_v32 = vld [vmem:[%s1740_s0 + $0x2c0] sm:$0xff]  ;;  %v103_v37 = vld [vmem:[%s1740_s0 + $0x2c8] sm:$0xff]  ;;  %v104_v38 = vld [vmem:[%s1740_s0 + $0x2d0] sm:$0xff] }
  0xd9   :  { %v105_v39 = vld [vmem:[%s1740_s0 + $0x2d8] sm:$0xff]  ;;  %v106_v44 = vld [vmem:[%s1740_s0 + $0x2e0] sm:$0xff]  ;;  %v107_v45 = vld [vmem:[%s1740_s0 + $0x2e8] sm:$0xff]  ;;  %v237_v50 = vmul.f32 %v702_v1, %v102_v32  ;;  %v238_v53 = vmul.f32 %v702_v1, %v103_v37  ;;  %v239_v54 = vmul.f32 %v702_v1, %v104_v38 }
  0xda   :  { %v108_v46 = vld [vmem:[%s1740_s0 + $0x2f0] sm:$0xff]  ;;  %v240_v55 = vmul.f32 %v702_v1, %v105_v39  ;;  %v241_v57 = vmul.f32 %v702_v1, %v106_v44  ;;  %v242_v58 = vmul.f32 %v702_v1, %v107_v45  ;;  %v1528_v44 = vld [vmem:[%s1742_s2] ss:$0 sm:$0xff] }
  0xdb   :  { %620 = vst [vmem:[%s1743_s3 + $0x280] sm:$0xff] %v492_v33  ;;  %v372_v56 = vadd.f32 %v707_v2, %v237_v50  ;;  %v243_v59 = vmul.f32 %v702_v1, %v108_v46  ;;  %v373_v60 = vadd.f32 %v707_v2, %v238_v53  ;;  %v374_v61 = vadd.f32 %v707_v2, %v239_v54 }
  0xdc   :  { %v375_v62 = vadd.f32 %v707_v2, %v240_v55  ;;  %v376_v4 = vadd.f32 %v707_v2, %v241_v57  ;;  %v377_v5 = vadd.f32 %v707_v2, %v242_v58 }
  0xdd   :  { %v500_v3 = vmax.f32 %v372_v56, 0.0  ;;  %v378_v6 = vadd.f32 %v707_v2, %v243_v59  ;;  %v501_v10 = vmax.f32 %v373_v60, 0.0  ;;  %v502_v11 = vmax.f32 %v374_v61, 0.0 }
  0xde   :  { %v503_v12 = vmax.f32 %v375_v62, 0.0  ;;  %v504_v17 = vmax.f32 %v376_v4, 0.0  ;;  %v505_v18 = vmax.f32 %v377_v5, 0.0 }
  0xdf   :  { %v506_v19 = vmax.f32 %v378_v6, 0.0 }
  0xe2   :  { %v109_v51 = vld [vmem:[%s1740_s0 + $0x2f8] sm:$0xff] }
  0xe3   :  { %621 = vst [vmem:[%s1743_s3 + $0x288] sm:$0xff] %v493_v40  ;;  %622 = vst [vmem:[%s1743_s3 + $0x290] sm:$0xff] %v494_v41  ;;  %v244_v63 = vmul.f32 %v702_v1, %v109_v51  ;;  %v1546_v51 = vld [vmem:[%s1741_s1] ss:$0 sm:$0xff] }
  0xe4   :  { %623 = vst [vmem:[%s1743_s3 + $0x298] sm:$0xff] %v495_v42  ;;  %624 = vst [vmem:[%s1743_s3 + $0x2a0] sm:$0xff] %v496_v47 }
  0xe5   :  { %625 = vst [vmem:[%s1743_s3 + $0x2a8] sm:$0xff] %v497_v48  ;;  %626 = vst [vmem:[%s1743_s3 + $0x2b0] sm:$0xff] %v498_v49  ;;  %v379_v13 = vadd.f32 %v707_v2, %v244_v63 }
  0xe6   :  { %627 = vst [vmem:[%s1743_s3 + $0x2b8] sm:$0xff] %v499_v52 }
  0xe7   :  { %v507_v22 = vmax.f32 %v379_v13, 0.0 }
  0xed   :  { %v110_v0 = vld [vmem:[%s1740_s0 + $0x300] sm:$0xff]  ;;  %v111_v7 = vld [vmem:[%s1740_s0 + $0x308] sm:$0xff]  ;;  %v112_v8 = vld [vmem:[%s1740_s0 + $0x310] sm:$0xff] }
  0xee   :  { %v113_v9 = vld [vmem:[%s1740_s0 + $0x318] sm:$0xff]  ;;  %v114_v14 = vld [vmem:[%s1740_s0 + $0x320] sm:$0xff]  ;;  %v115_v15 = vld [vmem:[%s1740_s0 + $0x328] sm:$0xff]  ;;  %v245_v20 = vmul.f32 %v702_v1, %v110_v0  ;;  %v246_v23 = vmul.f32 %v702_v1, %v111_v7  ;;  %v247_v24 = vmul.f32 %v702_v1, %v112_v8 }
  0xef   :  { %v116_v16 = vld [vmem:[%s1740_s0 + $0x330] sm:$0xff]  ;;  %v248_v25 = vmul.f32 %v702_v1, %v113_v9  ;;  %v249_v27 = vmul.f32 %v702_v1, %v114_v14  ;;  %v250_v28 = vmul.f32 %v702_v1, %v115_v15 }
  0xf0   :  { %628 = vst [vmem:[%s1743_s3 + $0x2c0] sm:$0xff] %v500_v3  ;;  %v380_v26 = vadd.f32 %v707_v2, %v245_v20  ;;  %v251_v29 = vmul.f32 %v702_v1, %v116_v16  ;;  %v381_v30 = vadd.f32 %v707_v2, %v246_v23  ;;  %v382_v31 = vadd.f32 %v707_v2, %v247_v24 }
  0xf1   :  { %v383_v32 = vadd.f32 %v707_v2, %v248_v25  ;;  %v384_v36 = vadd.f32 %v707_v2, %v249_v27  ;;  %v385_v37 = vadd.f32 %v707_v2, %v250_v28 }
  0xf2   :  { %v508_v35 = vmax.f32 %v380_v26, 0.0  ;;  %v386_v38 = vadd.f32 %v707_v2, %v251_v29  ;;  %v509_v41 = vmax.f32 %v381_v30, 0.0  ;;  %v510_v42 = vmax.f32 %v382_v31, 0.0 }
  0xf3   :  { %v511_v43 = vmax.f32 %v383_v32, 0.0  ;;  %v512_v48 = vmax.f32 %v384_v36, 0.0  ;;  %v513_v49 = vmax.f32 %v385_v37, 0.0 }
  0xf4   :  { %v514_v50 = vmax.f32 %v386_v38, 0.0 }
  0xf7   :  { %v117_v21 = vld [vmem:[%s1740_s0 + $0x338] sm:$0xff] }
  0xf8   :  { %629 = vst [vmem:[%s1743_s3 + $0x2c8] sm:$0xff] %v501_v10  ;;  %630 = vst [vmem:[%s1743_s3 + $0x2d0] sm:$0xff] %v502_v11  ;;  %v252_v33 = vmul.f32 %v702_v1, %v117_v21 }
  0xf9   :  { %631 = vst [vmem:[%s1743_s3 + $0x2d8] sm:$0xff] %v503_v12  ;;  %632 = vst [vmem:[%s1743_s3 + $0x2e0] sm:$0xff] %v504_v17 }
  0xfa   :  { %633 = vst [vmem:[%s1743_s3 + $0x2e8] sm:$0xff] %v505_v18  ;;  %634 = vst [vmem:[%s1743_s3 + $0x2f0] sm:$0xff] %v506_v19  ;;  %v387_v2 = vadd.f32 %v1528_v44, %v252_v33 }
  0xfb   :  { %635 = vst [vmem:[%s1743_s3 + $0x2f8] sm:$0xff] %v507_v22 }
  0xfc   :  { %v515_v54 = vmax.f32 %v387_v2, 0.0 }
 0x102   :  { %v118_v34 = vld [vmem:[%s1740_s0 + $0x340] sm:$0xff]  ;;  %v119_v39 = vld [vmem:[%s1740_s0 + $0x348] sm:$0xff]  ;;  %v120_v40 = vld [vmem:[%s1740_s0 + $0x350] sm:$0xff] }
 0x103   :  { %v121_v1 = vld [vmem:[%s1740_s0 + $0x358] sm:$0xff]  ;;  %v122_v45 = vld [vmem:[%s1740_s0 + $0x360] sm:$0xff]  ;;  %v123_v46 = vld [vmem:[%s1740_s0 + $0x368] sm:$0xff]  ;;  %v253_v52 = vmul.f32 %v1546_v51, %v118_v34  ;;  %v254_v55 = vmul.f32 %v1546_v51, %v119_v39  ;;  %v255_v56 = vmul.f32 %v1546_v51, %v120_v40 }
 0x104   :  { %v124_v47 = vld [vmem:[%s1740_s0 + $0x370] sm:$0xff]  ;;  %v256_v57 = vmul.f32 %v1546_v51, %v121_v1  ;;  %v257_v59 = vmul.f32 %v1546_v51, %v122_v45  ;;  %v258_v60 = vmul.f32 %v1546_v51, %v123_v46 }
 0x105   :  { %636 = vst [vmem:[%s1743_s3 + $0x300] sm:$0xff] %v508_v35  ;;  %v388_v58 = vadd.f32 %v1528_v44, %v253_v52  ;;  %v259_v61 = vmul.f32 %v1546_v51, %v124_v47  ;;  %v389_v62 = vadd.f32 %v1528_v44, %v254_v55  ;;  %v390_v63 = vadd.f32 %v1528_v44, %v255_v56 }
 0x106   :  { %v391_v0 = vadd.f32 %v1528_v44, %v256_v57  ;;  %v392_v6 = vadd.f32 %v1528_v44, %v257_v59  ;;  %v393_v7 = vadd.f32 %v1528_v44, %v258_v60 }
 0x107   :  { %v516_v5 = vmax.f32 %v388_v58, 0.0  ;;  %v394_v8 = vadd.f32 %v1528_v44, %v259_v61  ;;  %v517_v12 = vmax.f32 %v389_v62, 0.0  ;;  %v518_v13 = vmax.f32 %v390_v63, 0.0 }
 0x108   :  { %v519_v14 = vmax.f32 %v391_v0, 0.0  ;;  %v520_v19 = vmax.f32 %v392_v6, 0.0  ;;  %v521_v20 = vmax.f32 %v393_v7, 0.0 }
 0x109   :  { %v522_v21 = vmax.f32 %v394_v8, 0.0 }
 0x10c   :  { %v125_v53 = vld [vmem:[%s1740_s0 + $0x378] sm:$0xff] }
 0x10d   :  { %637 = vst [vmem:[%s1743_s3 + $0x308] sm:$0xff] %v509_v41  ;;  %638 = vst [vmem:[%s1743_s3 + $0x310] sm:$0xff] %v510_v42  ;;  %v260_v3 = vmul.f32 %v1546_v51, %v125_v53 }
 0x10e   :  { %639 = vst [vmem:[%s1743_s3 + $0x318] sm:$0xff] %v511_v43  ;;  %640 = vst [vmem:[%s1743_s3 + $0x320] sm:$0xff] %v512_v48 }
 0x10f   :  { %641 = vst [vmem:[%s1743_s3 + $0x328] sm:$0xff] %v513_v49  ;;  %642 = vst [vmem:[%s1743_s3 + $0x330] sm:$0xff] %v514_v50  ;;  %v395_v15 = vadd.f32 %v1528_v44, %v260_v3 }
 0x110   :  { %643 = vst [vmem:[%s1743_s3 + $0x338] sm:$0xff] %v515_v54 }
 0x111   :  { %v523_v24 = vmax.f32 %v395_v15, 0.0 }
 0x117   :  { %v126_v4 = vld [vmem:[%s1740_s0 + $0x380] sm:$0xff]  ;;  %v127_v9 = vld [vmem:[%s1740_s0 + $0x388] sm:$0xff]  ;;  %v128_v10 = vld [vmem:[%s1740_s0 + $0x390] sm:$0xff] }
 0x118   :  { %v129_v11 = vld [vmem:[%s1740_s0 + $0x398] sm:$0xff]  ;;  %v130_v16 = vld [vmem:[%s1740_s0 + $0x3a0] sm:$0xff]  ;;  %v131_v17 = vld [vmem:[%s1740_s0 + $0x3a8] sm:$0xff]  ;;  %v261_v22 = vmul.f32 %v1546_v51, %v126_v4  ;;  %v262_v25 = vmul.f32 %v1546_v51, %v127_v9  ;;  %v263_v26 = vmul.f32 %v1546_v51, %v128_v10 }
 0x119   :  { %v132_v18 = vld [vmem:[%s1740_s0 + $0x3b0] sm:$0xff]  ;;  %v264_v27 = vmul.f32 %v1546_v51, %v129_v11  ;;  %v265_v29 = vmul.f32 %v1546_v51, %v130_v16  ;;  %v266_v30 = vmul.f32 %v1546_v51, %v131_v17 }
 0x11a   :  { %644 = vst [vmem:[%s1743_s3 + $0x340] sm:$0xff] %v516_v5  ;;  %v396_v28 = vadd.f32 %v1528_v44, %v261_v22  ;;  %v267_v31 = vmul.f32 %v1546_v51, %v132_v18  ;;  %v397_v32 = vadd.f32 %v1528_v44, %v262_v25  ;;  %v398_v33 = vadd.f32 %v1528_v44, %v263_v26 }
 0x11b   :  { %v399_v34 = vadd.f32 %v1528_v44, %v264_v27  ;;  %v400_v38 = vadd.f32 %v1528_v44, %v265_v29  ;;  %v401_v39 = vadd.f32 %v1528_v44, %v266_v30 }
 0x11c   :  { %v524_v37 = vmax.f32 %v396_v28, 0.0  ;;  %v402_v40 = vadd.f32 %v1528_v44, %v267_v31  ;;  %v525_v43 = vmax.f32 %v397_v32, 0.0  ;;  %v526_v2 = vmax.f32 %v398_v33, 0.0 }
 0x11d   :  { %v527_v45 = vmax.f32 %v399_v34, 0.0  ;;  %v528_v50 = vmax.f32 %v400_v38, 0.0  ;;  %v529_v52 = vmax.f32 %v401_v39, 0.0 }
 0x11e   :  { %v530_v53 = vmax.f32 %v402_v40, 0.0 }
 0x121   :  { %v133_v23 = vld [vmem:[%s1740_s0 + $0x3b8] sm:$0xff] }
 0x122   :  { %645 = vst [vmem:[%s1743_s3 + $0x348] sm:$0xff] %v517_v12  ;;  %646 = vst [vmem:[%s1743_s3 + $0x350] sm:$0xff] %v518_v13  ;;  %v268_v35 = vmul.f32 %v1546_v51, %v133_v23 }
 0x123   :  { %647 = vst [vmem:[%s1743_s3 + $0x358] sm:$0xff] %v519_v14  ;;  %648 = vst [vmem:[%s1743_s3 + $0x360] sm:$0xff] %v520_v19 }
 0x124   :  { %649 = vst [vmem:[%s1743_s3 + $0x368] sm:$0xff] %v521_v20  ;;  %650 = vst [vmem:[%s1743_s3 + $0x370] sm:$0xff] %v522_v21  ;;  %v403_v46 = vadd.f32 %v1528_v44, %v268_v35 }
 0x125   :  { %651 = vst [vmem:[%s1743_s3 + $0x378] sm:$0xff] %v523_v24 }
 0x126   :  { %v531_v56 = vmax.f32 %v403_v46, 0.0 }
 0x12c   :  { %v134_v36 = vld [vmem:[%s1740_s0 + $0x3c0] sm:$0xff]  ;;  %v135_v1 = vld [vmem:[%s1740_s0 + $0x3c8] sm:$0xff]  ;;  %v136_v41 = vld [vmem:[%s1740_s0 + $0x3d0] sm:$0xff] }
 0x12d   :  { %v137_v42 = vld [vmem:[%s1740_s0 + $0x3d8] sm:$0xff]  ;;  %v138_v47 = vld [vmem:[%s1740_s0 + $0x3e0] sm:$0xff]  ;;  %v139_v48 = vld [vmem:[%s1740_s0 + $0x3e8] sm:$0xff]  ;;  %v269_v54 = vmul.f32 %v1546_v51, %v134_v36  ;;  %v270_v57 = vmul.f32 %v1546_v51, %v135_v1  ;;  %v271_v58 = vmul.f32 %v1546_v51, %v136_v41 }
 0x12e   :  { %v140_v49 = vld [vmem:[%s1740_s0 + $0x3f0] sm:$0xff]  ;;  %v272_v59 = vmul.f32 %v1546_v51, %v137_v42  ;;  %v273_v61 = vmul.f32 %v1546_v51, %v138_v47  ;;  %v274_v62 = vmul.f32 %v1546_v51, %v139_v48 }
 0x12f   :  { %652 = vst [vmem:[%s1743_s3 + $0x380] sm:$0xff] %v524_v37  ;;  %v404_v60 = vadd.f32 %v1528_v44, %v269_v54  ;;  %v275_v63 = vmul.f32 %v1546_v51, %v140_v49  ;;  %v405_v0 = vadd.f32 %v1528_v44, %v270_v57  ;;  %v406_v3 = vadd.f32 %v1528_v44, %v271_v58 }
 0x130   :  { %v407_v4 = vadd.f32 %v1528_v44, %v272_v59  ;;  %v408_v7 = vadd.f32 %v1528_v44, %v273_v61  ;;  %v409_v8 = vadd.f32 %v1528_v44, %v274_v62 }
 0x131   :  { %v532_v6 = vmax.f32 %v404_v60, 0.0  ;;  %v410_v9 = vadd.f32 %v1528_v44, %v275_v63  ;;  %v533_v10 = vmax.f32 %v405_v0, 0.0  ;;  %v534_v11 = vmax.f32 %v406_v3, 0.0 }
 0x132   :  { %v535_v12 = vmax.f32 %v407_v4, 0.0  ;;  %v536_v14 = vmax.f32 %v408_v7, 0.0  ;;  %v537_v15 = vmax.f32 %v409_v8, 0.0 }
 0x133   :  { %v538_v16 = vmax.f32 %v410_v9, 0.0 }
 0x136   :  { %v141_v55 = vld [vmem:[%s1740_s0 + $0x3f8] sm:$0xff] }
 0x137   :  { %653 = vst [vmem:[%s1743_s3 + $0x388] sm:$0xff] %v525_v43  ;;  %654 = vst [vmem:[%s1743_s3 + $0x390] sm:$0xff] %v526_v2  ;;  %v276_v5 = vmul.f32 %v1546_v51, %v141_v55 }
 0x138   :  { %655 = vst [vmem:[%s1743_s3 + $0x398] sm:$0xff] %v527_v45  ;;  %656 = vst [vmem:[%s1743_s3 + $0x3a0] sm:$0xff] %v528_v50 }
 0x139   :  { %657 = vst [vmem:[%s1743_s3 + $0x3a8] sm:$0xff] %v529_v52  ;;  %658 = vst [vmem:[%s1743_s3 + $0x3b0] sm:$0xff] %v530_v53  ;;  %v411_v13 = vadd.f32 %v1528_v44, %v276_v5 }
 0x13a   :  { %659 = vst [vmem:[%s1743_s3 + $0x3b8] sm:$0xff] %v531_v56  ;;  %660 = vst [vmem:[%s1743_s3 + $0x3c0] sm:$0xff] %v532_v6 }
 0x13b   :  { %661 = vst [vmem:[%s1743_s3 + $0x3c8] sm:$0xff] %v533_v10  ;;  %662 = vst [vmem:[%s1743_s3 + $0x3d0] sm:$0xff] %v534_v11  ;;  %v539_v44 = vmax.f32 %v411_v13, 0.0 }
 0x13c   :  { %663 = vst [vmem:[%s1743_s3 + $0x3d8] sm:$0xff] %v535_v12  ;;  %664 = vst [vmem:[%s1743_s3 + $0x3e0] sm:$0xff] %v536_v14 }
 0x13d   :  { %665 = vst [vmem:[%s1743_s3 + $0x3e8] sm:$0xff] %v537_v15  ;;  %666 = vst [vmem:[%s1743_s3 + $0x3f0] sm:$0xff] %v538_v16 }
 0x13e   :  { %667 = vst [vmem:[%s1743_s3 + $0x3f8] sm:$0xff] %v539_v44 }

// kernel: split_forward.31
= control target key start
LH: loop header
LB: loop body
LE: loop exit
PB: predicated region body
PF: predicated region fallthrough
CT: control target
= control target key end

     0   :  { %s1317_s1 = inlined_call_operand.vmem [shape: bf16[128,128], index: 1, kind: input, shape index: {}]   ;;  %s1318_s0 = inlined_call_operand.vmem [shape: bf16[512,128], index: 0, kind: input, shape index: {}]   ;;  %s1319_s2 = inlined_call_operand.vmem [shape: f32[1,128], index: 2, kind: input, shape index: {}]   ;;  %s1320_s3 = inlined_call_operand.vmem [shape: f32[512,128], index: 3, kind: output, shape index: {}]  }
   0x1   :  { %v876_v0 = vld [vmem:[%s1317_s1] sm:$0xff]   ;;  %v877_v1 = vld [vmem:[%s1317_s1 + $0x8] sm:$0xff]   ;;  %v878_v2 = vld [vmem:[%s1317_s1 + $0x10] sm:$0xff]  }
   0x2   :  { %780 = vmatprep.subr.bf16.mxu0 %v876_v0  ;;  %860 = vmatprep.subr.bf16.mxu1 %v876_v0  ;;  %v879_v3 = vld [vmem:[%s1317_s1 + $0x18] sm:$0xff]   ;;  %v884_v4 = vld [vmem:[%s1318_s0] sm:$0xff]   ;;  %v881_v7 = vld [vmem:[%s1317_s1 + $0x28] sm:$0xff]  }
   0x3   :  { %781 = vmatpush3.bf16.msra.mxu0 %v876_v0  ;;  %868 = vmatpush3.bf16.msra.mxu1 %v876_v0  ;;  %v885_v5 = vld [vmem:[%s1318_s0 + $0x80] sm:$0xff]   ;;  %v882_v8 = vld [vmem:[%s1317_s1 + $0x30] sm:$0xff]   ;;  %v883_v9 = vld [vmem:[%s1317_s1 + $0x38] sm:$0xff]  }
   0x4   :  { %782 = vmatprep.subr.bf16.mxu0 %v877_v1  ;;  %861 = vmatprep.subr.bf16.mxu1 %v877_v1  ;;  %v880_v6 = vld [vmem:[%s1317_s1 + $0x20] sm:$0xff]   ;;  %v886_v10 = vld [vmem:[%s1318_s0 + $0x8] sm:$0xff]   ;;  %v888_v12 = vld [vmem:[%s1318_s0 + $0x10] sm:$0xff]  }
   0x5   :  { %796 = vmatprep.mubr.bf16.mxu0 %v884_v4  ;;  %828 = vmatprep.mubr.bf16.mxu1 %v885_v5  ;;  %v887_v11 = vld [vmem:[%s1318_s0 + $0x88] sm:$0xff]   ;;  %v889_v13 = vld [vmem:[%s1318_s0 + $0x90] sm:$0xff]   ;;  %v890_v14 = vld [vmem:[%s1318_s0 + $0x18] sm:$0xff]  }
   0x6   :  { %v891_v15 = vld [vmem:[%s1318_s0 + $0x98] sm:$0xff]   ;;  %v892_v16 = vld [vmem:[%s1318_s0 + $0x20] sm:$0xff]   ;;  %v894_v18 = vld [vmem:[%s1318_s0 + $0x28] sm:$0xff]  }
   0x7   :  { %783 = vmatpush3.bf16.msra.mxu0 %v877_v1  ;;  %869 = vmatpush3.bf16.msra.mxu1 %v877_v1  ;;  %v893_v17 = vld [vmem:[%s1318_s0 + $0xa0] sm:$0xff]   ;;  %v895_v19 = vld [vmem:[%s1318_s0 + $0xa8] sm:$0xff]   ;;  %v896_v20 = vld [vmem:[%s1318_s0 + $0x30] sm:$0xff]  }
   0x8   :  { %784 = vmatprep.subr.bf16.mxu0 %v878_v2  ;;  %862 = vmatprep.subr.bf16.mxu1 %v878_v2  ;;  %v897_v21 = vld [vmem:[%s1318_s0 + $0xb0] sm:$0xff]   ;;  %v898_v22 = vld [vmem:[%s1318_s0 + $0x38] sm:$0xff]   ;;  %v900_v24 = vld [vmem:[%s1318_s0 + $0x40] sm:$0xff]  }
   0x9   :  { %v899_v23 = vld [vmem:[%s1318_s0 + $0xb8] sm:$0xff]   ;;  %v901_v25 = vld [vmem:[%s1318_s0 + $0xc0] sm:$0xff]   ;;  %v902_v26 = vld [vmem:[%s1318_s0 + $0x48] sm:$0xff]  }
   0xa   :  { %v903_v27 = vld [vmem:[%s1318_s0 + $0xc8] sm:$0xff]   ;;  %v904_v28 = vld [vmem:[%s1318_s0 + $0x50] sm:$0xff]   ;;  %v906_v30 = vld [vmem:[%s1318_s0 + $0x58] sm:$0xff]  }
   0xb   :  { %785 = vmatpush3.bf16.msra.mxu0 %v878_v2  ;;  %870 = vmatpush3.bf16.msra.mxu1 %v878_v2  ;;  %v905_v29 = vld [vmem:[%s1318_s0 + $0xd0] sm:$0xff]   ;;  %v907_v31 = vld [vmem:[%s1318_s0 + $0xd8] sm:$0xff]   ;;  %v908_v32 = vld [vmem:[%s1318_s0 + $0x60] sm:$0xff]  }
   0xc   :  { %786 = vmatprep.subr.bf16.mxu0 %v879_v3  ;;  %863 = vmatprep.subr.bf16.mxu1 %v879_v3  ;;  %v909_v33 = vld [vmem:[%s1318_s0 + $0xe0] sm:$0xff]   ;;  %v910_v34 = vld [vmem:[%s1318_s0 + $0x68] sm:$0xff]   ;;  %v912_v36 = vld [vmem:[%s1318_s0 + $0x70] sm:$0xff]  }
   0xd   :  { %v911_v35 = vld [vmem:[%s1318_s0 + $0xe8] sm:$0xff]   ;;  %v913_v37 = vld [vmem:[%s1318_s0 + $0xf0] sm:$0xff]   ;;  %v914_v38 = vld [vmem:[%s1318_s0 + $0x78] sm:$0xff]  }
   0xe   :  { %v915_v39 = vld [vmem:[%s1318_s0 + $0xf8] sm:$0xff]   ;;  %v1059_v40 = vld [vmem:[%s1319_s2] ss:$0 sm:$0xff] }
   0xf   :  { %787 = vmatpush3.bf16.msra.mxu0 %v879_v3  ;;  %871 = vmatpush3.bf16.msra.mxu1 %v879_v3 }
  0x10   :  { %788 = vmatprep.subr.bf16.mxu0 %v880_v6  ;;  %864 = vmatprep.subr.bf16.mxu1 %v880_v6 }
  0x13   :  { %789 = vmatpush3.bf16.msra.mxu0 %v880_v6  ;;  %872 = vmatpush3.bf16.msra.mxu1 %v880_v6 }
  0x14   :  { %790 = vmatprep.subr.bf16.mxu0 %v881_v7  ;;  %865 = vmatprep.subr.bf16.mxu1 %v881_v7 }
  0x17   :  { %791 = vmatpush3.bf16.msra.mxu0 %v881_v7  ;;  %873 = vmatpush3.bf16.msra.mxu1 %v881_v7 }
  0x18   :  { %792 = vmatprep.subr.bf16.mxu0 %v882_v8  ;;  %866 = vmatprep.subr.bf16.mxu1 %v882_v8 }
  0x1b   :  { %793 = vmatpush3.bf16.msra.mxu0 %v882_v8  ;;  %874 = vmatpush3.bf16.msra.mxu1 %v882_v8 }
  0x1c   :  { %794 = vmatprep.subr.bf16.mxu0 %v883_v9  ;;  %867 = vmatprep.subr.bf16.mxu1 %v883_v9 }
  0x1f   :  { %795 = vmatpush3.bf16.msra.mxu0 %v883_v9  ;;  %875 = vmatpush3.bf16.msra.mxu1 %v883_v9 }
  0x22   :  { %797 = vmatmul.mubr.bf16.vlgmr.msra.gmra.mrb[0].mxu0 %v886_v10  ;;  %829 = vmatmul.mubr.bf16.vlgmr.msra.gmra.mrb[0].mxu1 %v887_v11 }
  0x23   :  { %800 = vmatprep.mubr.bf16.mxu0 %v888_v12  ;;  %832 = vmatprep.mubr.bf16.mxu1 %v889_v13 }
  0x2a   :  { %801 = vmatmul.mubr.bf16.gmra.mrb[4].mxu0 %v890_v14  ;;  %833 = vmatmul.mubr.bf16.gmra.mrb[4].mxu1 %v891_v15 }
  0x2b   :  { %804 = vmatprep.mubr.bf16.mxu0 %v892_v16  ;;  %836 = vmatprep.mubr.bf16.mxu1 %v893_v17 }
  0x32   :  { %805 = vmatmul.mubr.bf16.gmra.mrb[8].mxu0 %v894_v18  ;;  %837 = vmatmul.mubr.bf16.gmra.mrb[8].mxu1 %v895_v19 }
  0x33   :  { %808 = vmatprep.mubr.bf16.mxu0 %v896_v20  ;;  %840 = vmatprep.mubr.bf16.mxu1 %v897_v21 }
  0x3a   :  { %809 = vmatmul.mubr.bf16.gmra.mrb[12].mxu0 %v898_v22  ;;  %841 = vmatmul.mubr.bf16.gmra.mrb[12].mxu1 %v899_v23 }
  0x3b   :  { %812 = vmatprep.mubr.bf16.mxu0 %v900_v24  ;;  %844 = vmatprep.mubr.bf16.mxu1 %v901_v25 }
  0x42   :  { %813 = vmatmul.mubr.bf16.gmra.mrb[16].mxu0 %v902_v26  ;;  %845 = vmatmul.mubr.bf16.gmra.mrb[16].mxu1 %v903_v27 }
  0x43   :  { %816 = vmatprep.mubr.bf16.mxu0 %v904_v28  ;;  %848 = vmatprep.mubr.bf16.mxu1 %v905_v29 }
  0x4a   :  { %817 = vmatmul.mubr.bf16.gmra.mrb[20].mxu0 %v906_v30  ;;  %849 = vmatmul.mubr.bf16.gmra.mrb[20].mxu1 %v907_v31 }
  0x4b   :  { %820 = vmatprep.mubr.bf16.mxu0 %v908_v32  ;;  %852 = vmatprep.mubr.bf16.mxu1 %v909_v33 }
  0x52   :  { %821 = vmatmul.mubr.bf16.gmra.mrb[24].mxu0 %v910_v34  ;;  %853 = vmatmul.mubr.bf16.gmra.mrb[24].mxu1 %v911_v35 }
  0x53   :  { %824 = vmatprep.mubr.bf16.mxu0 %v912_v36  ;;  %856 = vmatprep.mubr.bf16.mxu1 %v913_v37 }
  0x5a   :  { %825 = vmatmul.mubr.bf16.gmra.mrb[28].mxu0 %v914_v38  ;;  %857 = vmatmul.mubr.bf16.gmra.mrb[28].mxu1 %v915_v39 }
  0xf5   :  { %v798_v41 = vpop.f32.mrb[0].mxu0  ;;  %v830_v42 = vpop.f32.mrb[0].mxu1 }
  0xf6   :  { %v385_v43 = vadd.f32 %v798_v41, %v1059_v40  ;;  %v513_v44 = vadd.f32 %v830_v42, %v1059_v40  ;;  %v376_v45 = vpop.f32.mrb[1].mxu0  ;;  %v504_v46 = vpop.f32.mrb[1].mxu1 }
  0xf7   :  { %v377_v47 = vadd.f32 %v1059_v40, %v376_v45  ;;  %v505_v48 = vadd.f32 %v1059_v40, %v504_v46  ;;  %v799_v49 = vpop.f32.mrb[2].mxu0  ;;  %v831_v50 = vpop.f32.mrb[2].mxu1 }
  0xf8   :  { %633 = vst [vmem:[%s1320_s3 + $0x10] sm:$0xff] %v385_v43  ;;  %665 = vst [vmem:[%s1320_s3 + $0x110] sm:$0xff] %v513_v44  ;;  %v388_v51 = vadd.f32 %v799_v49, %v1059_v40  ;;  %v516_v52 = vadd.f32 %v831_v50, %v1059_v40  ;;  %v379_v53 = vpop.f32.mrb[3].mxu0  ;;  %v507_v54 = vpop.f32.mrb[3].mxu1 }
  0xf9   :  { %631 = vst [vmem:[%s1320_s3] sm:$0xff] %v377_v47  ;;  %663 = vst [vmem:[%s1320_s3 + $0x100] sm:$0xff] %v505_v48  ;;  %v380_v55 = vadd.f32 %v1059_v40, %v379_v53  ;;  %v508_v56 = vadd.f32 %v1059_v40, %v507_v54 }
  0xfa   :  { %634 = vst [vmem:[%s1320_s3 + $0x18] sm:$0xff] %v388_v51  ;;  %666 = vst [vmem:[%s1320_s3 + $0x118] sm:$0xff] %v516_v52 }
  0xfb   :  { %632 = vst [vmem:[%s1320_s3 + $0x8] sm:$0xff] %v380_v55  ;;  %664 = vst [vmem:[%s1320_s3 + $0x108] sm:$0xff] %v508_v56 }
  0xfd   :  { %v802_v57 = vpop.f32.mrb[4].mxu0  ;;  %v834_v58 = vpop.f32.mrb[4].mxu1 }
  0xfe   :  { %v401_v59 = vadd.f32 %v802_v57, %v1059_v40  ;;  %v529_v60 = vadd.f32 %v834_v58, %v1059_v40  ;;  %v392_v61 = vpop.f32.mrb[5].mxu0  ;;  %v520_v62 = vpop.f32.mrb[5].mxu1 }
  0xff   :  { %v393_v63 = vadd.f32 %v1059_v40, %v392_v61  ;;  %v521_v0 = vadd.f32 %v1059_v40, %v520_v62  ;;  %v803_v1 = vpop.f32.mrb[6].mxu0  ;;  %v835_v2 = vpop.f32.mrb[6].mxu1 }
 0x100   :  { %637 = vst [vmem:[%s1320_s3 + $0x30] sm:$0xff] %v401_v59  ;;  %669 = vst [vmem:[%s1320_s3 + $0x130] sm:$0xff] %v529_v60  ;;  %v404_v3 = vadd.f32 %v803_v1, %v1059_v40  ;;  %v532_v4 = vadd.f32 %v835_v2, %v1059_v40  ;;  %v395_v5 = vpop.f32.mrb[7].mxu0  ;;  %v523_v6 = vpop.f32.mrb[7].mxu1 }
 0x101   :  { %635 = vst [vmem:[%s1320_s3 + $0x20] sm:$0xff] %v393_v63  ;;  %667 = vst [vmem:[%s1320_s3 + $0x120] sm:$0xff] %v521_v0  ;;  %v396_v7 = vadd.f32 %v1059_v40, %v395_v5  ;;  %v524_v8 = vadd.f32 %v1059_v40, %v523_v6 }
 0x102   :  { %638 = vst [vmem:[%s1320_s3 + $0x38] sm:$0xff] %v404_v3  ;;  %670 = vst [vmem:[%s1320_s3 + $0x138] sm:$0xff] %v532_v4 }
 0x103   :  { %636 = vst [vmem:[%s1320_s3 + $0x28] sm:$0xff] %v396_v7  ;;  %668 = vst [vmem:[%s1320_s3 + $0x128] sm:$0xff] %v524_v8 }
 0x105   :  { %v806_v9 = vpop.f32.mrb[8].mxu0  ;;  %v838_v10 = vpop.f32.mrb[8].mxu1 }
 0x106   :  { %v417_v11 = vadd.f32 %v806_v9, %v1059_v40  ;;  %v545_v12 = vadd.f32 %v838_v10, %v1059_v40  ;;  %v408_v13 = vpop.f32.mrb[9].mxu0  ;;  %v536_v14 = vpop.f32.mrb[9].mxu1 }
 0x107   :  { %v409_v15 = vadd.f32 %v1059_v40, %v408_v13  ;;  %v537_v16 = vadd.f32 %v1059_v40, %v536_v14  ;;  %v807_v17 = vpop.f32.mrb[10].mxu0  ;;  %v839_v18 = vpop.f32.mrb[10].mxu1 }
 0x108   :  { %641 = vst [vmem:[%s1320_s3 + $0x50] sm:$0xff] %v417_v11  ;;  %673 = vst [vmem:[%s1320_s3 + $0x150] sm:$0xff] %v545_v12  ;;  %v420_v19 = vadd.f32 %v807_v17, %v1059_v40  ;;  %v548_v20 = vadd.f32 %v839_v18, %v1059_v40  ;;  %v411_v21 = vpop.f32.mrb[11].mxu0  ;;  %v539_v22 = vpop.f32.mrb[11].mxu1 }
 0x109   :  { %639 = vst [vmem:[%s1320_s3 + $0x40] sm:$0xff] %v409_v15  ;;  %671 = vst [vmem:[%s1320_s3 + $0x140] sm:$0xff] %v537_v16  ;;  %v412_v23 = vadd.f32 %v1059_v40, %v411_v21  ;;  %v540_v24 = vadd.f32 %v1059_v40, %v539_v22 }
 0x10a   :  { %642 = vst [vmem:[%s1320_s3 + $0x58] sm:$0xff] %v420_v19  ;;  %674 = vst [vmem:[%s1320_s3 + $0x158] sm:$0xff] %v548_v20 }
 0x10b   :  { %640 = vst [vmem:[%s1320_s3 + $0x48] sm:$0xff] %v412_v23  ;;  %672 = vst [vmem:[%s1320_s3 + $0x148] sm:$0xff] %v540_v24 }
 0x10d   :  { %v810_v25 = vpop.f32.mrb[12].mxu0  ;;  %v842_v26 = vpop.f32.mrb[12].mxu1 }
 0x10e   :  { %v433_v27 = vadd.f32 %v810_v25, %v1059_v40  ;;  %v561_v28 = vadd.f32 %v842_v26, %v1059_v40  ;;  %v424_v29 = vpop.f32.mrb[13].mxu0  ;;  %v552_v30 = vpop.f32.mrb[13].mxu1 }
 0x10f   :  { %v425_v31 = vadd.f32 %v1059_v40, %v424_v29  ;;  %v553_v32 = vadd.f32 %v1059_v40, %v552_v30  ;;  %v811_v33 = vpop.f32.mrb[14].mxu0  ;;  %v843_v34 = vpop.f32.mrb[14].mxu1 }
 0x110   :  { %645 = vst [vmem:[%s1320_s3 + $0x70] sm:$0xff] %v433_v27  ;;  %677 = vst [vmem:[%s1320_s3 + $0x170] sm:$0xff] %v561_v28  ;;  %v436_v35 = vadd.f32 %v811_v33, %v1059_v40  ;;  %v564_v36 = vadd.f32 %v843_v34, %v1059_v40  ;;  %v427_v37 = vpop.f32.mrb[15].mxu0  ;;  %v555_v38 = vpop.f32.mrb[15].mxu1 }
 0x111   :  { %643 = vst [vmem:[%s1320_s3 + $0x60] sm:$0xff] %v425_v31  ;;  %675 = vst [vmem:[%s1320_s3 + $0x160] sm:$0xff] %v553_v32  ;;  %v428_v39 = vadd.f32 %v1059_v40, %v427_v37  ;;  %v556_v41 = vadd.f32 %v1059_v40, %v555_v38 }
 0x112   :  { %646 = vst [vmem:[%s1320_s3 + $0x78] sm:$0xff] %v436_v35  ;;  %678 = vst [vmem:[%s1320_s3 + $0x178] sm:$0xff] %v564_v36 }
 0x113   :  { %644 = vst [vmem:[%s1320_s3 + $0x68] sm:$0xff] %v428_v39  ;;  %676 = vst [vmem:[%s1320_s3 + $0x168] sm:$0xff] %v556_v41 }
 0x115   :  { %v814_v42 = vpop.f32.mrb[16].mxu0  ;;  %v846_v43 = vpop.f32.mrb[16].mxu1 }
 0x116   :  { %v449_v44 = vadd.f32 %v814_v42, %v1059_v40  ;;  %v577_v45 = vadd.f32 %v846_v43, %v1059_v40  ;;  %v440_v46 = vpop.f32.mrb[17].mxu0  ;;  %v568_v47 = vpop.f32.mrb[17].mxu1 }
 0x117   :  { %v441_v48 = vadd.f32 %v1059_v40, %v440_v46  ;;  %v569_v49 = vadd.f32 %v1059_v40, %v568_v47  ;;  %v815_v50 = vpop.f32.mrb[18].mxu0  ;;  %v847_v51 = vpop.f32.mrb[18].mxu1 }
 0x118   :  { %649 = vst [vmem:[%s1320_s3 + $0x90] sm:$0xff] %v449_v44  ;;  %681 = vst [vmem:[%s1320_s3 + $0x190] sm:$0xff] %v577_v45  ;;  %v452_v52 = vadd.f32 %v815_v50, %v1059_v40  ;;  %v580_v53 = vadd.f32 %v847_v51, %v1059_v40  ;;  %v443_v54 = vpop.f32.mrb[19].mxu0  ;;  %v571_v55 = vpop.f32.mrb[19].mxu1 }
 0x119   :  { %647 = vst [vmem:[%s1320_s3 + $0x80] sm:$0xff] %v441_v48  ;;  %679 = vst [vmem:[%s1320_s3 + $0x180] sm:$0xff] %v569_v49  ;;  %v444_v56 = vadd.f32 %v1059_v40, %v443_v54  ;;  %v572_v57 = vadd.f32 %v1059_v40, %v571_v55 }
 0x11a   :  { %650 = vst [vmem:[%s1320_s3 + $0x98] sm:$0xff] %v452_v52  ;;  %682 = vst [vmem:[%s1320_s3 + $0x198] sm:$0xff] %v580_v53 }
 0x11b   :  { %648 = vst [vmem:[%s1320_s3 + $0x88] sm:$0xff] %v444_v56  ;;  %680 = vst [vmem:[%s1320_s3 + $0x188] sm:$0xff] %v572_v57 }
 0x11d   :  { %v818_v58 = vpop.f32.mrb[20].mxu0  ;;  %v850_v59 = vpop.f32.mrb[20].mxu1 }
 0x11e   :  { %v465_v60 = vadd.f32 %v818_v58, %v1059_v40  ;;  %v593_v61 = vadd.f32 %v850_v59, %v1059_v40  ;;  %v456_v62 = vpop.f32.mrb[21].mxu0  ;;  %v584_v63 = vpop.f32.mrb[21].mxu1 }
 0x11f   :  { %v457_v0 = vadd.f32 %v1059_v40, %v456_v62  ;;  %v585_v1 = vadd.f32 %v1059_v40, %v584_v63  ;;  %v819_v2 = vpop.f32.mrb[22].mxu0  ;;  %v851_v3 = vpop.f32.mrb[22].mxu1 }
 0x120   :  { %653 = vst [vmem:[%s1320_s3 + $0xb0] sm:$0xff] %v465_v60  ;;  %685 = vst [vmem:[%s1320_s3 + $0x1b0] sm:$0xff] %v593_v61  ;;  %v468_v4 = vadd.f32 %v819_v2, %v1059_v40  ;;  %v596_v5 = vadd.f32 %v851_v3, %v1059_v40  ;;  %v459_v6 = vpop.f32.mrb[23].mxu0  ;;  %v587_v7 = vpop.f32.mrb[23].mxu1 }
 0x121   :  { %651 = vst [vmem:[%s1320_s3 + $0xa0] sm:$0xff] %v457_v0  ;;  %683 = vst [vmem:[%s1320_s3 + $0x1a0] sm:$0xff] %v585_v1  ;;  %v460_v8 = vadd.f32 %v1059_v40, %v459_v6  ;;  %v588_v9 = vadd.f32 %v1059_v40, %v587_v7 }
 0x122   :  { %654 = vst [vmem:[%s1320_s3 + $0xb8] sm:$0xff] %v468_v4  ;;  %686 = vst [vmem:[%s1320_s3 + $0x1b8] sm:$0xff] %v596_v5 }
 0x123   :  { %652 = vst [vmem:[%s1320_s3 + $0xa8] sm:$0xff] %v460_v8  ;;  %684 = vst [vmem:[%s1320_s3 + $0x1a8] sm:$0xff] %v588_v9 }
 0x125   :  { %v822_v10 = vpop.f32.mrb[24].mxu0  ;;  %v854_v11 = vpop.f32.mrb[24].mxu1 }
 0x126   :  { %v481_v12 = vadd.f32 %v822_v10, %v1059_v40  ;;  %v609_v13 = vadd.f32 %v854_v11, %v1059_v40  ;;  %v472_v14 = vpop.f32.mrb[25].mxu0  ;;  %v600_v15 = vpop.f32.mrb[25].mxu1 }
 0x127   :  { %v473_v16 = vadd.f32 %v1059_v40, %v472_v14  ;;  %v601_v17 = vadd.f32 %v1059_v40, %v600_v15  ;;  %v823_v18 = vpop.f32.mrb[26].mxu0  ;;  %v855_v19 = vpop.f32.mrb[26].mxu1 }
 0x128   :  { %657 = vst [vmem:[%s1320_s3 + $0xd0] sm:$0xff] %v481_v12  ;;  %689 = vst [vmem:[%s1320_s3 + $0x1d0] sm:$0xff] %v609_v13  ;;  %v484_v20 = vadd.f32 %v823_v18, %v1059_v40  ;;  %v612_v21 = vadd.f32 %v855_v19, %v1059_v40  ;;  %v475_v22 = vpop.f32.mrb[27].mxu0  ;;  %v603_v23 = vpop.f32.mrb[27].mxu1 }
 0x129   :  { %655 = vst [vmem:[%s1320_s3 + $0xc0] sm:$0xff] %v473_v16  ;;  %687 = vst [vmem:[%s1320_s3 + $0x1c0] sm:$0xff] %v601_v17  ;;  %v476_v24 = vadd.f32 %v1059_v40, %v475_v22  ;;  %v604_v25 = vadd.f32 %v1059_v40, %v603_v23 }
 0x12a   :  { %658 = vst [vmem:[%s1320_s3 + $0xd8] sm:$0xff] %v484_v20  ;;  %690 = vst [vmem:[%s1320_s3 + $0x1d8] sm:$0xff] %v612_v21 }
 0x12b   :  { %656 = vst [vmem:[%s1320_s3 + $0xc8] sm:$0xff] %v476_v24  ;;  %688 = vst [vmem:[%s1320_s3 + $0x1c8] sm:$0xff] %v604_v25 }
 0x12d   :  { %v826_v26 = vpop.f32.mrb[28].mxu0  ;;  %v858_v27 = vpop.f32.mrb[28].mxu1 }
 0x12e   :  { %v497_v28 = vadd.f32 %v826_v26, %v1059_v40  ;;  %v625_v29 = vadd.f32 %v858_v27, %v1059_v40  ;;  %v488_v30 = vpop.f32.mrb[29].mxu0  ;;  %v616_v31 = vpop.f32.mrb[29].mxu1 }
 0x12f   :  { %v489_v32 = vadd.f32 %v1059_v40, %v488_v30  ;;  %v617_v33 = vadd.f32 %v1059_v40, %v616_v31  ;;  %v827_v34 = vpop.f32.mrb[30].mxu0  ;;  %v859_v35 = vpop.f32.mrb[30].mxu1 }
 0x130   :  { %661 = vst [vmem:[%s1320_s3 + $0xf0] sm:$0xff] %v497_v28  ;;  %693 = vst [vmem:[%s1320_s3 + $0x1f0] sm:$0xff] %v625_v29  ;;  %v500_v36 = vadd.f32 %v827_v34, %v1059_v40  ;;  %v628_v37 = vadd.f32 %v859_v35, %v1059_v40  ;;  %v491_v38 = vpop.f32.mrb[31].mxu0  ;;  %v619_v39 = vpop.f32.mrb[31].mxu1 }
 0x131   :  { %659 = vst [vmem:[%s1320_s3 + $0xe0] sm:$0xff] %v489_v32  ;;  %691 = vst [vmem:[%s1320_s3 + $0x1e0] sm:$0xff] %v617_v33  ;;  %v492_v41 = vadd.f32 %v1059_v40, %v491_v38  ;;  %v620_v42 = vadd.f32 %v1059_v40, %v619_v39 }
 0x132   :  { %662 = vst [vmem:[%s1320_s3 + $0xf8] sm:$0xff] %v500_v36  ;;  %694 = vst [vmem:[%s1320_s3 + $0x1f8] sm:$0xff] %v628_v37 }
 0x133   :  { %660 = vst [vmem:[%s1320_s3 + $0xe8] sm:$0xff] %v492_v41  ;;  %692 = vst [vmem:[%s1320_s3 + $0x1e8] sm:$0xff] %v620_v42 }

</bundles_post_ra>
